<compile_context>
chip_gen: v5e
topology: v5e:2x2
jax: 0.10.0
libtpu: 0.0.40
codegen_flags: <defaults>
</compile_context>

<pallas_src>
import functools

import jax
import jax.numpy as jnp
from jax import lax
from jax.experimental import pallas as pl
from jax.experimental.pallas import tpu as pltpu


def _pool3d_kernel(x_ref, o_ref, *, Do, Ho, Wo):
    # x_ref: (TB, D, H, W) natural-layout block; o_ref: (TB, Do, Ho, Wo).
    TB, D, H, W = x_ref.shape

    # Carry the trailing D-plane across output-depth steps so every input plane is
    # read from VMEM at most once (stride-2 in D handled by the loop structure).
    p0 = x_ref[:, 0]                                            # (TB, H, W)
    for dp in range(Do):
        p1 = x_ref[:, 2 * dp + 1]
        p2 = x_ref[:, 2 * dp + 2]
        # Depth pass: window-3 max over D.
        slab = jnp.maximum(jnp.maximum(p0, p1), p2)             # (TB, H, W)
        p0 = p2                                                 # = plane 2*(dp+1)

        # Width pass: stride-1 window-3 max along the lane axis (unit-stride shifted
        # slices, fully vectorized).
        tw = jnp.maximum(jnp.maximum(slab[:, :, 0:W - 2],
                                     slab[:, :, 1:W - 1]),
                         slab[:, :, 2:W])                       # (TB, H, W-2)
        # Stride-2 column compaction BEFORE the H pass so later ops only touch the
        # Wo output columns (unit-stride slices + concat; no strided lane access).
        cw = jnp.concatenate([tw[:, :, 2 * wp:2 * wp + 1] for wp in range(Wo)],
                             axis=-1)                           # (TB, H, Wo)

        # Height pass: stride-1 window-3 max along the sublane axis.
        th = jnp.maximum(jnp.maximum(cw[:, 0:H - 2, :],
                                     cw[:, 1:H - 1, :]),
                         cw[:, 2:H, :])                         # (TB, H-2, Wo)
        # Stride-2 row compaction.
        chw = jnp.concatenate([th[:, 2 * hp:2 * hp + 1, :] for hp in range(Ho)],
                              axis=-2)                          # (TB, Ho, Wo)

        # Per-depth store keeps live ranges short (only the 3 current planes plus
        # the current intermediates stay resident in vregs).
        o_ref[:, dp, :, :] = chw.astype(o_ref.dtype)


def _choose_tb(nc, d, h, w, itemsize, max_block_bytes=4 << 20):
    """Pick how many (D, H, W) volumes to process per grid step."""
    # (a) VMEM footprint of one volume after (8, 128) tile padding (the runtime
    #     double-buffers the block on top of this).
    h_pad = ((h + 7) // 8) * 8
    w_pad = ((w + 127) // 128) * 128
    slice_bytes = d * h_pad * w_pad * itemsize
    tb_bytes = max(1, max_block_bytes // max(slice_bytes, 1))
    # (b) vreg-pressure cap: one (tb, H, W) plane costs tb*ceil(H/8)*ceil(W/128)
    #     vregs; ~3 planes + intermediates must stay well under the 64-vreg file.
    plane_vregs = (-(-h // 8)) * (-(-w // 128))
    tb_vreg = max(1, 8 // max(plane_vregs, 1))
    tb = max(1, min(nc, tb_bytes, tb_vreg))
    if nc >= 2:                      # keep >= 2 grid steps: v7x has 2 TensorCores
        tb = min(tb, max(1, nc // 2))
    while nc % tb:                   # blocks must tile NC exactly
        tb -= 1
    return tb


def pool3d_block(x):
    """Dense equivalent of Pool3DBlock.forward: max_pool3d(kernel=3, stride=2, pad=0).

    x: (N, C, D, H, W) -> (N, C, Do, Ho, Wo), dtype preserving.
    """
    N, C, D, H, W = x.shape
    assert D >= 3 and H >= 3 and W >= 3, "spatial dims must be >= kernel size (3)"
    Do, Ho, Wo = (D - 3) // 2 + 1, (H - 3) // 2 + 1, (W - 3) // 2 + 1

    NC = N * C
    x2 = x.reshape(NC, D, H, W)            # free reshape: no HBM transpose/extra pass
    TB = _choose_tb(NC, D, H, W, x.dtype.itemsize)

    kernel = functools.partial(_pool3d_kernel, Do=Do, Ho=Ho, Wo=Wo)
    out = pl.pallas_call(
        kernel,
        out_shape=jax.ShapeDtypeStruct((NC, Do, Ho, Wo), x.dtype),
        grid_spec=pltpu.PrefetchScalarGridSpec(
            num_scalar_prefetch=0,
            grid=(NC // TB,),
            in_specs=[pl.BlockSpec((TB, D, H, W), lambda i: (i, 0, 0, 0))],
            out_specs=pl.BlockSpec((TB, Do, Ho, Wo), lambda i: (i, 0, 0, 0)),
        ),
        compiler_params=pltpu.CompilerParams(
            dimension_semantics=("parallel",),
        ),
    )(x2)
    return out.reshape(N, C, Do, Ho, Wo)


if __name__ == "__main__":
    key = jax.random.PRNGKey(0)
    N, C, D, H, W = 2, 4, 16, 16, 16
    x = jax.random.normal(key, (N, C, D, H, W), dtype=jnp.float32)

    y = jax.block_until_ready(pool3d_block(x))

    # Reference: dense 3-D max pool, kernel=3, stride=2, VALID padding.
    y_ref = lax.reduce_window(
        x, -jnp.inf, lax.max,
        window_dimensions=(1, 1, 3, 3, 3),
        window_strides=(1, 1, 2, 2, 2),
        padding="VALID",
    )

    assert y.shape == y_ref.shape, (y.shape, y_ref.shape)
    assert jnp.allclose(y, y_ref), "mismatch vs reduce_window reference"
    print("KERNEL_OK")
</pallas_src>

<mosaic_0001>
module attributes {stable_mosaic.version = 11 : i64} {
  func.func @_pool3d_kernel(%arg0: i32, %arg1: memref<4x16x16x16xf32, #tpu.memory_space<vmem>>, %arg2: memref<4x7x7x7xf32, #tpu.memory_space<vmem>>) attributes {dimension_semantics = [#tpu.dimension_semantics<parallel>], iteration_bounds = array<i64: 2>, scalar_prefetch = 0 : i64, scratch_operands = 0 : i64, tpu.core_type = #tpu.core_type<tc>, window_params = [{transform_indices = @transform_0, window_bounds = array<i64: 4, 16, 16, 16>}, {transform_indices = @transform_1, window_bounds = array<i64: 4, 7, 7, 7>}]} {
    %c0 = arith.constant 0 : index
    %c0_0 = arith.constant 0 : index
    %c0_1 = arith.constant 0 : index
    %c0_2 = arith.constant 0 : index
    %0 = vector.load %arg1[%c0, %c0_0, %c0_1, %c0_2] : memref<4x16x16x16xf32, #tpu.memory_space<vmem>>, vector<4x1x16x16xf32>
    %1 = vector.shape_cast %0 : vector<4x1x16x16xf32> to vector<4x16x16xf32>
    %c0_3 = arith.constant 0 : index
    %c1 = arith.constant 1 : index
    %c0_4 = arith.constant 0 : index
    %c0_5 = arith.constant 0 : index
    %2 = vector.load %arg1[%c0_3, %c1, %c0_4, %c0_5] : memref<4x16x16x16xf32, #tpu.memory_space<vmem>>, vector<4x1x16x16xf32>
    %3 = vector.shape_cast %2 : vector<4x1x16x16xf32> to vector<4x16x16xf32>
    %c0_6 = arith.constant 0 : index
    %c2 = arith.constant 2 : index
    %c0_7 = arith.constant 0 : index
    %c0_8 = arith.constant 0 : index
    %4 = vector.load %arg1[%c0_6, %c2, %c0_7, %c0_8] : memref<4x16x16x16xf32, #tpu.memory_space<vmem>>, vector<4x1x16x16xf32>
    %5 = vector.shape_cast %4 : vector<4x1x16x16xf32> to vector<4x16x16xf32>
    %6 = arith.maximumf %1, %3 : vector<4x16x16xf32>
    %7 = arith.maximumf %6, %5 : vector<4x16x16xf32>
    %8 = vector.extract_strided_slice %7 {offsets = [0, 0, 0], sizes = [4, 16, 14], strides = [1, 1, 1]} : vector<4x16x16xf32> to vector<4x16x14xf32>
    %9 = vector.extract_strided_slice %7 {offsets = [0, 0, 1], sizes = [4, 16, 14], strides = [1, 1, 1]} : vector<4x16x16xf32> to vector<4x16x14xf32>
    %10 = arith.maximumf %8, %9 : vector<4x16x14xf32>
    %11 = vector.extract_strided_slice %7 {offsets = [0, 0, 2], sizes = [4, 16, 14], strides = [1, 1, 1]} : vector<4x16x16xf32> to vector<4x16x14xf32>
    %12 = arith.maximumf %10, %11 : vector<4x16x14xf32>
    %13 = vector.extract_strided_slice %12 {offsets = [0, 0, 0], sizes = [4, 16, 1], strides = [1, 1, 1]} : vector<4x16x14xf32> to vector<4x16x1xf32>
    %14 = vector.extract_strided_slice %12 {offsets = [0, 0, 2], sizes = [4, 16, 1], strides = [1, 1, 1]} : vector<4x16x14xf32> to vector<4x16x1xf32>
    %15 = vector.extract_strided_slice %12 {offsets = [0, 0, 4], sizes = [4, 16, 1], strides = [1, 1, 1]} : vector<4x16x14xf32> to vector<4x16x1xf32>
    %16 = vector.extract_strided_slice %12 {offsets = [0, 0, 6], sizes = [4, 16, 1], strides = [1, 1, 1]} : vector<4x16x14xf32> to vector<4x16x1xf32>
    %17 = vector.extract_strided_slice %12 {offsets = [0, 0, 8], sizes = [4, 16, 1], strides = [1, 1, 1]} : vector<4x16x14xf32> to vector<4x16x1xf32>
    %18 = vector.extract_strided_slice %12 {offsets = [0, 0, 10], sizes = [4, 16, 1], strides = [1, 1, 1]} : vector<4x16x14xf32> to vector<4x16x1xf32>
    %19 = vector.extract_strided_slice %12 {offsets = [0, 0, 12], sizes = [4, 16, 1], strides = [1, 1, 1]} : vector<4x16x14xf32> to vector<4x16x1xf32>
    %20 = tpu.concatenate %13, %14, %15, %16, %17, %18, %19 in 2 : vector<4x16x1xf32>, vector<4x16x1xf32>, vector<4x16x1xf32>, vector<4x16x1xf32>, vector<4x16x1xf32>, vector<4x16x1xf32>, vector<4x16x1xf32> -> vector<4x16x7xf32>
    %21 = vector.extract_strided_slice %20 {offsets = [0, 0, 0], sizes = [4, 14, 7], strides = [1, 1, 1]} : vector<4x16x7xf32> to vector<4x14x7xf32>
    %22 = vector.extract_strided_slice %20 {offsets = [0, 1, 0], sizes = [4, 14, 7], strides = [1, 1, 1]} : vector<4x16x7xf32> to vector<4x14x7xf32>
    %23 = arith.maximumf %21, %22 : vector<4x14x7xf32>
    %24 = vector.extract_strided_slice %20 {offsets = [0, 2, 0], sizes = [4, 14, 7], strides = [1, 1, 1]} : vector<4x16x7xf32> to vector<4x14x7xf32>
    %25 = arith.maximumf %23, %24 : vector<4x14x7xf32>
    %26 = vector.extract_strided_slice %25 {offsets = [0, 0, 0], sizes = [4, 1, 7], strides = [1, 1, 1]} : vector<4x14x7xf32> to vector<4x1x7xf32>
    %27 = vector.extract_strided_slice %25 {offsets = [0, 2, 0], sizes = [4, 1, 7], strides = [1, 1, 1]} : vector<4x14x7xf32> to vector<4x1x7xf32>
    %28 = vector.extract_strided_slice %25 {offsets = [0, 4, 0], sizes = [4, 1, 7], strides = [1, 1, 1]} : vector<4x14x7xf32> to vector<4x1x7xf32>
    %29 = vector.extract_strided_slice %25 {offsets = [0, 6, 0], sizes = [4, 1, 7], strides = [1, 1, 1]} : vector<4x14x7xf32> to vector<4x1x7xf32>
    %30 = vector.extract_strided_slice %25 {offsets = [0, 8, 0], sizes = [4, 1, 7], strides = [1, 1, 1]} : vector<4x14x7xf32> to vector<4x1x7xf32>
    %31 = vector.extract_strided_slice %25 {offsets = [0, 10, 0], sizes = [4, 1, 7], strides = [1, 1, 1]} : vector<4x14x7xf32> to vector<4x1x7xf32>
    %32 = vector.extract_strided_slice %25 {offsets = [0, 12, 0], sizes = [4, 1, 7], strides = [1, 1, 1]} : vector<4x14x7xf32> to vector<4x1x7xf32>
    %33 = tpu.concatenate %26, %27, %28, %29, %30, %31, %32 in 1 : vector<4x1x7xf32>, vector<4x1x7xf32>, vector<4x1x7xf32>, vector<4x1x7xf32>, vector<4x1x7xf32>, vector<4x1x7xf32>, vector<4x1x7xf32> -> vector<4x7x7xf32>
    %c0_9 = arith.constant 0 : index
    %c0_10 = arith.constant 0 : index
    %c0_11 = arith.constant 0 : index
    %c0_12 = arith.constant 0 : index
    %34 = vector.load %arg2[%c0_9, %c0_10, %c0_11, %c0_12] : memref<4x7x7x7xf32, #tpu.memory_space<vmem>>, vector<4x1x7x7xf32>
    %35 = vector.shape_cast %34 : vector<4x1x7x7xf32> to vector<4x7x7xf32>
    %36 = vector.shape_cast %33 : vector<4x7x7xf32> to vector<4x1x7x7xf32>
    tpu.vector_store %arg2[%c0_9, %c0_10, %c0_11, %c0_12], %36 {strides = array<i32>} : memref<4x7x7x7xf32, #tpu.memory_space<vmem>>, vector<4x1x7x7xf32>,
    %c0_13 = arith.constant 0 : index
    %c3 = arith.constant 3 : index
    %c0_14 = arith.constant 0 : index
    %c0_15 = arith.constant 0 : index
    %37 = vector.load %arg1[%c0_13, %c3, %c0_14, %c0_15] : memref<4x16x16x16xf32, #tpu.memory_space<vmem>>, vector<4x1x16x16xf32>
    %38 = vector.shape_cast %37 : vector<4x1x16x16xf32> to vector<4x16x16xf32>
    %c0_16 = arith.constant 0 : index
    %c4 = arith.constant 4 : index
    %c0_17 = arith.constant 0 : index
    %c0_18 = arith.constant 0 : index
    %39 = vector.load %arg1[%c0_16, %c4, %c0_17, %c0_18] : memref<4x16x16x16xf32, #tpu.memory_space<vmem>>, vector<4x1x16x16xf32>
    %40 = vector.shape_cast %39 : vector<4x1x16x16xf32> to vector<4x16x16xf32>
    %41 = arith.maximumf %5, %38 : vector<4x16x16xf32>
    %42 = arith.maximumf %41, %40 : vector<4x16x16xf32>
    %43 = vector.extract_strided_slice %42 {offsets = [0, 0, 0], sizes = [4, 16, 14], strides = [1, 1, 1]} : vector<4x16x16xf32> to vector<4x16x14xf32>
    %44 = vector.extract_strided_slice %42 {offsets = [0, 0, 1], sizes = [4, 16, 14], strides = [1, 1, 1]} : vector<4x16x16xf32> to vector<4x16x14xf32>
    %45 = arith.maximumf %43, %44 : vector<4x16x14xf32>
    %46 = vector.extract_strided_slice %42 {offsets = [0, 0, 2], sizes = [4, 16, 14], strides = [1, 1, 1]} : vector<4x16x16xf32> to vector<4x16x14xf32>
    %47 = arith.maximumf %45, %46 : vector<4x16x14xf32>
    %48 = vector.extract_strided_slice %47 {offsets = [0, 0, 0], sizes = [4, 16, 1], strides = [1, 1, 1]} : vector<4x16x14xf32> to vector<4x16x1xf32>
    %49 = vector.extract_strided_slice %47 {offsets = [0, 0, 2], sizes = [4, 16, 1], strides = [1, 1, 1]} : vector<4x16x14xf32> to vector<4x16x1xf32>
    %50 = vector.extract_strided_slice %47 {offsets = [0, 0, 4], sizes = [4, 16, 1], strides = [1, 1, 1]} : vector<4x16x14xf32> to vector<4x16x1xf32>
    %51 = vector.extract_strided_slice %47 {offsets = [0, 0, 6], sizes = [4, 16, 1], strides = [1, 1, 1]} : vector<4x16x14xf32> to vector<4x16x1xf32>
    %52 = vector.extract_strided_slice %47 {offsets = [0, 0, 8], sizes = [4, 16, 1], strides = [1, 1, 1]} : vector<4x16x14xf32> to vector<4x16x1xf32>
    %53 = vector.extract_strided_slice %47 {offsets = [0, 0, 10], sizes = [4, 16, 1], strides = [1, 1, 1]} : vector<4x16x14xf32> to vector<4x16x1xf32>
    %54 = vector.extract_strided_slice %47 {offsets = [0, 0, 12], sizes = [4, 16, 1], strides = [1, 1, 1]} : vector<4x16x14xf32> to vector<4x16x1xf32>
    %55 = tpu.concatenate %48, %49, %50, %51, %52, %53, %54 in 2 : vector<4x16x1xf32>, vector<4x16x1xf32>, vector<4x16x1xf32>, vector<4x16x1xf32>, vector<4x16x1xf32>, vector<4x16x1xf32>, vector<4x16x1xf32> -> vector<4x16x7xf32>
    %56 = vector.extract_strided_slice %55 {offsets = [0, 0, 0], sizes = [4, 14, 7], strides = [1, 1, 1]} : vector<4x16x7xf32> to vector<4x14x7xf32>
    %57 = vector.extract_strided_slice %55 {offsets = [0, 1, 0], sizes = [4, 14, 7], strides = [1, 1, 1]} : vector<4x16x7xf32> to vector<4x14x7xf32>
    %58 = arith.maximumf %56, %57 : vector<4x14x7xf32>
    %59 = vector.extract_strided_slice %55 {offsets = [0, 2, 0], sizes = [4, 14, 7], strides = [1, 1, 1]} : vector<4x16x7xf32> to vector<4x14x7xf32>
    %60 = arith.maximumf %58, %59 : vector<4x14x7xf32>
    %61 = vector.extract_strided_slice %60 {offsets = [0, 0, 0], sizes = [4, 1, 7], strides = [1, 1, 1]} : vector<4x14x7xf32> to vector<4x1x7xf32>
    %62 = vector.extract_strided_slice %60 {offsets = [0, 2, 0], sizes = [4, 1, 7], strides = [1, 1, 1]} : vector<4x14x7xf32> to vector<4x1x7xf32>
    %63 = vector.extract_strided_slice %60 {offsets = [0, 4, 0], sizes = [4, 1, 7], strides = [1, 1, 1]} : vector<4x14x7xf32> to vector<4x1x7xf32>
    %64 = vector.extract_strided_slice %60 {offsets = [0, 6, 0], sizes = [4, 1, 7], strides = [1, 1, 1]} : vector<4x14x7xf32> to vector<4x1x7xf32>
    %65 = vector.extract_strided_slice %60 {offsets = [0, 8, 0], sizes = [4, 1, 7], strides = [1, 1, 1]} : vector<4x14x7xf32> to vector<4x1x7xf32>
    %66 = vector.extract_strided_slice %60 {offsets = [0, 10, 0], sizes = [4, 1, 7], strides = [1, 1, 1]} : vector<4x14x7xf32> to vector<4x1x7xf32>
    %67 = vector.extract_strided_slice %60 {offsets = [0, 12, 0], sizes = [4, 1, 7], strides = [1, 1, 1]} : vector<4x14x7xf32> to vector<4x1x7xf32>
    %68 = tpu.concatenate %61, %62, %63, %64, %65, %66, %67 in 1 : vector<4x1x7xf32>, vector<4x1x7xf32>, vector<4x1x7xf32>, vector<4x1x7xf32>, vector<4x1x7xf32>, vector<4x1x7xf32>, vector<4x1x7xf32> -> vector<4x7x7xf32>
    %c0_19 = arith.constant 0 : index
    %c1_20 = arith.constant 1 : index
    %c0_21 = arith.constant 0 : index
    %c0_22 = arith.constant 0 : index
    %69 = vector.load %arg2[%c0_19, %c1_20, %c0_21, %c0_22] : memref<4x7x7x7xf32, #tpu.memory_space<vmem>>, vector<4x1x7x7xf32>
    %70 = vector.shape_cast %69 : vector<4x1x7x7xf32> to vector<4x7x7xf32>
    %71 = vector.shape_cast %68 : vector<4x7x7xf32> to vector<4x1x7x7xf32>
    tpu.vector_store %arg2[%c0_19, %c1_20, %c0_21, %c0_22], %71 {strides = array<i32>} : memref<4x7x7x7xf32, #tpu.memory_space<vmem>>, vector<4x1x7x7xf32>,
    %c0_23 = arith.constant 0 : index
    %c5 = arith.constant 5 : index
    %c0_24 = arith.constant 0 : index
    %c0_25 = arith.constant 0 : index
    %72 = vector.load %arg1[%c0_23, %c5, %c0_24, %c0_25] : memref<4x16x16x16xf32, #tpu.memory_space<vmem>>, vector<4x1x16x16xf32>
    %73 = vector.shape_cast %72 : vector<4x1x16x16xf32> to vector<4x16x16xf32>
    %c0_26 = arith.constant 0 : index
    %c6 = arith.constant 6 : index
    %c0_27 = arith.constant 0 : index
    %c0_28 = arith.constant 0 : index
    %74 = vector.load %arg1[%c0_26, %c6, %c0_27, %c0_28] : memref<4x16x16x16xf32, #tpu.memory_space<vmem>>, vector<4x1x16x16xf32>
    %75 = vector.shape_cast %74 : vector<4x1x16x16xf32> to vector<4x16x16xf32>
    %76 = arith.maximumf %40, %73 : vector<4x16x16xf32>
    %77 = arith.maximumf %76, %75 : vector<4x16x16xf32>
    %78 = vector.extract_strided_slice %77 {offsets = [0, 0, 0], sizes = [4, 16, 14], strides = [1, 1, 1]} : vector<4x16x16xf32> to vector<4x16x14xf32>
    %79 = vector.extract_strided_slice %77 {offsets = [0, 0, 1], sizes = [4, 16, 14], strides = [1, 1, 1]} : vector<4x16x16xf32> to vector<4x16x14xf32>
    %80 = arith.maximumf %78, %79 : vector<4x16x14xf32>
    %81 = vector.extract_strided_slice %77 {offsets = [0, 0, 2], sizes = [4, 16, 14], strides = [1, 1, 1]} : vector<4x16x16xf32> to vector<4x16x14xf32>
    %82 = arith.maximumf %80, %81 : vector<4x16x14xf32>
    %83 = vector.extract_strided_slice %82 {offsets = [0, 0, 0], sizes = [4, 16, 1], strides = [1, 1, 1]} : vector<4x16x14xf32> to vector<4x16x1xf32>
    %84 = vector.extract_strided_slice %82 {offsets = [0, 0, 2], sizes = [4, 16, 1], strides = [1, 1, 1]} : vector<4x16x14xf32> to vector<4x16x1xf32>
    %85 = vector.extract_strided_slice %82 {offsets = [0, 0, 4], sizes = [4, 16, 1], strides = [1, 1, 1]} : vector<4x16x14xf32> to vector<4x16x1xf32>
    %86 = vector.extract_strided_slice %82 {offsets = [0, 0, 6], sizes = [4, 16, 1], strides = [1, 1, 1]} : vector<4x16x14xf32> to vector<4x16x1xf32>
    %87 = vector.extract_strided_slice %82 {offsets = [0, 0, 8], sizes = [4, 16, 1], strides = [1, 1, 1]} : vector<4x16x14xf32> to vector<4x16x1xf32>
    %88 = vector.extract_strided_slice %82 {offsets = [0, 0, 10], sizes = [4, 16, 1], strides = [1, 1, 1]} : vector<4x16x14xf32> to vector<4x16x1xf32>
    %89 = vector.extract_strided_slice %82 {offsets = [0, 0, 12], sizes = [4, 16, 1], strides = [1, 1, 1]} : vector<4x16x14xf32> to vector<4x16x1xf32>
    %90 = tpu.concatenate %83, %84, %85, %86, %87, %88, %89 in 2 : vector<4x16x1xf32>, vector<4x16x1xf32>, vector<4x16x1xf32>, vector<4x16x1xf32>, vector<4x16x1xf32>, vector<4x16x1xf32>, vector<4x16x1xf32> -> vector<4x16x7xf32>
    %91 = vector.extract_strided_slice %90 {offsets = [0, 0, 0], sizes = [4, 14, 7], strides = [1, 1, 1]} : vector<4x16x7xf32> to vector<4x14x7xf32>
    %92 = vector.extract_strided_slice %90 {offsets = [0, 1, 0], sizes = [4, 14, 7], strides = [1, 1, 1]} : vector<4x16x7xf32> to vector<4x14x7xf32>
    %93 = arith.maximumf %91, %92 : vector<4x14x7xf32>
    %94 = vector.extract_strided_slice %90 {offsets = [0, 2, 0], sizes = [4, 14, 7], strides = [1, 1, 1]} : vector<4x16x7xf32> to vector<4x14x7xf32>
    %95 = arith.maximumf %93, %94 : vector<4x14x7xf32>
    %96 = vector.extract_strided_slice %95 {offsets = [0, 0, 0], sizes = [4, 1, 7], strides = [1, 1, 1]} : vector<4x14x7xf32> to vector<4x1x7xf32>
    %97 = vector.extract_strided_slice %95 {offsets = [0, 2, 0], sizes = [4, 1, 7], strides = [1, 1, 1]} : vector<4x14x7xf32> to vector<4x1x7xf32>
    %98 = vector.extract_strided_slice %95 {offsets = [0, 4, 0], sizes = [4, 1, 7], strides = [1, 1, 1]} : vector<4x14x7xf32> to vector<4x1x7xf32>
    %99 = vector.extract_strided_slice %95 {offsets = [0, 6, 0], sizes = [4, 1, 7], strides = [1, 1, 1]} : vector<4x14x7xf32> to vector<4x1x7xf32>
    %100 = vector.extract_strided_slice %95 {offsets = [0, 8, 0], sizes = [4, 1, 7], strides = [1, 1, 1]} : vector<4x14x7xf32> to vector<4x1x7xf32>
    %101 = vector.extract_strided_slice %95 {offsets = [0, 10, 0], sizes = [4, 1, 7], strides = [1, 1, 1]} : vector<4x14x7xf32> to vector<4x1x7xf32>
    %102 = vector.extract_strided_slice %95 {offsets = [0, 12, 0], sizes = [4, 1, 7], strides = [1, 1, 1]} : vector<4x14x7xf32> to vector<4x1x7xf32>
    %103 = tpu.concatenate %96, %97, %98, %99, %100, %101, %102 in 1 : vector<4x1x7xf32>, vector<4x1x7xf32>, vector<4x1x7xf32>, vector<4x1x7xf32>, vector<4x1x7xf32>, vector<4x1x7xf32>, vector<4x1x7xf32> -> vector<4x7x7xf32>
    %c0_29 = arith.constant 0 : index
    %c2_30 = arith.constant 2 : index
    %c0_31 = arith.constant 0 : index
    %c0_32 = arith.constant 0 : index
    %104 = vector.load %arg2[%c0_29, %c2_30, %c0_31, %c0_32] : memref<4x7x7x7xf32, #tpu.memory_space<vmem>>, vector<4x1x7x7xf32>
    %105 = vector.shape_cast %104 : vector<4x1x7x7xf32> to vector<4x7x7xf32>
    %106 = vector.shape_cast %103 : vector<4x7x7xf32> to vector<4x1x7x7xf32>
    tpu.vector_store %arg2[%c0_29, %c2_30, %c0_31, %c0_32], %106 {strides = array<i32>} : memref<4x7x7x7xf32, #tpu.memory_space<vmem>>, vector<4x1x7x7xf32>,
    %c0_33 = arith.constant 0 : index
    %c7 = arith.constant 7 : index
    %c0_34 = arith.constant 0 : index
    %c0_35 = arith.constant 0 : index
    %107 = vector.load %arg1[%c0_33, %c7, %c0_34, %c0_35] : memref<4x16x16x16xf32, #tpu.memory_space<vmem>>, vector<4x1x16x16xf32>
    %108 = vector.shape_cast %107 : vector<4x1x16x16xf32> to vector<4x16x16xf32>
    %c0_36 = arith.constant 0 : index
    %c8 = arith.constant 8 : index
    %c0_37 = arith.constant 0 : index
    %c0_38 = arith.constant 0 : index
    %109 = vector.load %arg1[%c0_36, %c8, %c0_37, %c0_38] : memref<4x16x16x16xf32, #tpu.memory_space<vmem>>, vector<4x1x16x16xf32>
    %110 = vector.shape_cast %109 : vector<4x1x16x16xf32> to vector<4x16x16xf32>
    %111 = arith.maximumf %75, %108 : vector<4x16x16xf32>
    %112 = arith.maximumf %111, %110 : vector<4x16x16xf32>
    %113 = vector.extract_strided_slice %112 {offsets = [0, 0, 0], sizes = [4, 16, 14], strides = [1, 1, 1]} : vector<4x16x16xf32> to vector<4x16x14xf32>
    %114 = vector.extract_strided_slice %112 {offsets = [0, 0, 1], sizes = [4, 16, 14], strides = [1, 1, 1]} : vector<4x16x16xf32> to vector<4x16x14xf32>
    %115 = arith.maximumf %113, %114 : vector<4x16x14xf32>
    %116 = vector.extract_strided_slice %112 {offsets = [0, 0, 2], sizes = [4, 16, 14], strides = [1, 1, 1]} : vector<4x16x16xf32> to vector<4x16x14xf32>
    %117 = arith.maximumf %115, %116 : vector<4x16x14xf32>
    %118 = vector.extract_strided_slice %117 {offsets = [0, 0, 0], sizes = [4, 16, 1], strides = [1, 1, 1]} : vector<4x16x14xf32> to vector<4x16x1xf32>
    %119 = vector.extract_strided_slice %117 {offsets = [0, 0, 2], sizes = [4, 16, 1], strides = [1, 1, 1]} : vector<4x16x14xf32> to vector<4x16x1xf32>
    %120 = vector.extract_strided_slice %117 {offsets = [0, 0, 4], sizes = [4, 16, 1], strides = [1, 1, 1]} : vector<4x16x14xf32> to vector<4x16x1xf32>
    %121 = vector.extract_strided_slice %117 {offsets = [0, 0, 6], sizes = [4, 16, 1], strides = [1, 1, 1]} : vector<4x16x14xf32> to vector<4x16x1xf32>
    %122 = vector.extract_strided_slice %117 {offsets = [0, 0, 8], sizes = [4, 16, 1], strides = [1, 1, 1]} : vector<4x16x14xf32> to vector<4x16x1xf32>
    %123 = vector.extract_strided_slice %117 {offsets = [0, 0, 10], sizes = [4, 16, 1], strides = [1, 1, 1]} : vector<4x16x14xf32> to vector<4x16x1xf32>
    %124 = vector.extract_strided_slice %117 {offsets = [0, 0, 12], sizes = [4, 16, 1], strides = [1, 1, 1]} : vector<4x16x14xf32> to vector<4x16x1xf32>
    %125 = tpu.concatenate %118, %119, %120, %121, %122, %123, %124 in 2 : vector<4x16x1xf32>, vector<4x16x1xf32>, vector<4x16x1xf32>, vector<4x16x1xf32>, vector<4x16x1xf32>, vector<4x16x1xf32>, vector<4x16x1xf32> -> vector<4x16x7xf32>
    %126 = vector.extract_strided_slice %125 {offsets = [0, 0, 0], sizes = [4, 14, 7], strides = [1, 1, 1]} : vector<4x16x7xf32> to vector<4x14x7xf32>
    %127 = vector.extract_strided_slice %125 {offsets = [0, 1, 0], sizes = [4, 14, 7], strides = [1, 1, 1]} : vector<4x16x7xf32> to vector<4x14x7xf32>
    %128 = arith.maximumf %126, %127 : vector<4x14x7xf32>
    %129 = vector.extract_strided_slice %125 {offsets = [0, 2, 0], sizes = [4, 14, 7], strides = [1, 1, 1]} : vector<4x16x7xf32> to vector<4x14x7xf32>
    %130 = arith.maximumf %128, %129 : vector<4x14x7xf32>
    %131 = vector.extract_strided_slice %130 {offsets = [0, 0, 0], sizes = [4, 1, 7], strides = [1, 1, 1]} : vector<4x14x7xf32> to vector<4x1x7xf32>
    %132 = vector.extract_strided_slice %130 {offsets = [0, 2, 0], sizes = [4, 1, 7], strides = [1, 1, 1]} : vector<4x14x7xf32> to vector<4x1x7xf32>
    %133 = vector.extract_strided_slice %130 {offsets = [0, 4, 0], sizes = [4, 1, 7], strides = [1, 1, 1]} : vector<4x14x7xf32> to vector<4x1x7xf32>
    %134 = vector.extract_strided_slice %130 {offsets = [0, 6, 0], sizes = [4, 1, 7], strides = [1, 1, 1]} : vector<4x14x7xf32> to vector<4x1x7xf32>
    %135 = vector.extract_strided_slice %130 {offsets = [0, 8, 0], sizes = [4, 1, 7], strides = [1, 1, 1]} : vector<4x14x7xf32> to vector<4x1x7xf32>
    %136 = vector.extract_strided_slice %130 {offsets = [0, 10, 0], sizes = [4, 1, 7], strides = [1, 1, 1]} : vector<4x14x7xf32> to vector<4x1x7xf32>
    %137 = vector.extract_strided_slice %130 {offsets = [0, 12, 0], sizes = [4, 1, 7], strides = [1, 1, 1]} : vector<4x14x7xf32> to vector<4x1x7xf32>
    %138 = tpu.concatenate %131, %132, %133, %134, %135, %136, %137 in 1 : vector<4x1x7xf32>, vector<4x1x7xf32>, vector<4x1x7xf32>, vector<4x1x7xf32>, vector<4x1x7xf32>, vector<4x1x7xf32>, vector<4x1x7xf32> -> vector<4x7x7xf32>
    %c0_39 = arith.constant 0 : index
    %c3_40 = arith.constant 3 : index
    %c0_41 = arith.constant 0 : index
    %c0_42 = arith.constant 0 : index
    %139 = vector.load %arg2[%c0_39, %c3_40, %c0_41, %c0_42] : memref<4x7x7x7xf32, #tpu.memory_space<vmem>>, vector<4x1x7x7xf32>
    %140 = vector.shape_cast %139 : vector<4x1x7x7xf32> to vector<4x7x7xf32>
    %141 = vector.shape_cast %138 : vector<4x7x7xf32> to vector<4x1x7x7xf32>
    tpu.vector_store %arg2[%c0_39, %c3_40, %c0_41, %c0_42], %141 {strides = array<i32>} : memref<4x7x7x7xf32, #tpu.memory_space<vmem>>, vector<4x1x7x7xf32>,
    %c0_43 = arith.constant 0 : index
    %c9 = arith.constant 9 : index
    %c0_44 = arith.constant 0 : index
    %c0_45 = arith.constant 0 : index
    %142 = vector.load %arg1[%c0_43, %c9, %c0_44, %c0_45] : memref<4x16x16x16xf32, #tpu.memory_space<vmem>>, vector<4x1x16x16xf32>
    %143 = vector.shape_cast %142 : vector<4x1x16x16xf32> to vector<4x16x16xf32>
    %c0_46 = arith.constant 0 : index
    %c10 = arith.constant 10 : index
    %c0_47 = arith.constant 0 : index
    %c0_48 = arith.constant 0 : index
    %144 = vector.load %arg1[%c0_46, %c10, %c0_47, %c0_48] : memref<4x16x16x16xf32, #tpu.memory_space<vmem>>, vector<4x1x16x16xf32>
    %145 = vector.shape_cast %144 : vector<4x1x16x16xf32> to vector<4x16x16xf32>
    %146 = arith.maximumf %110, %143 : vector<4x16x16xf32>
    %147 = arith.maximumf %146, %145 : vector<4x16x16xf32>
    %148 = vector.extract_strided_slice %147 {offsets = [0, 0, 0], sizes = [4, 16, 14], strides = [1, 1, 1]} : vector<4x16x16xf32> to vector<4x16x14xf32>
    %149 = vector.extract_strided_slice %147 {offsets = [0, 0, 1], sizes = [4, 16, 14], strides = [1, 1, 1]} : vector<4x16x16xf32> to vector<4x16x14xf32>
    %150 = arith.maximumf %148, %149 : vector<4x16x14xf32>
    %151 = vector.extract_strided_slice %147 {offsets = [0, 0, 2], sizes = [4, 16, 14], strides = [1, 1, 1]} : vector<4x16x16xf32> to vector<4x16x14xf32>
    %152 = arith.maximumf %150, %151 : vector<4x16x14xf32>
    %153 = vector.extract_strided_slice %152 {offsets = [0, 0, 0], sizes = [4, 16, 1], strides = [1, 1, 1]} : vector<4x16x14xf32> to vector<4x16x1xf32>
    %154 = vector.extract_strided_slice %152 {offsets = [0, 0, 2], sizes = [4, 16, 1], strides = [1, 1, 1]} : vector<4x16x14xf32> to vector<4x16x1xf32>
    %155 = vector.extract_strided_slice %152 {offsets = [0, 0, 4], sizes = [4, 16, 1], strides = [1, 1, 1]} : vector<4x16x14xf32> to vector<4x16x1xf32>
    %156 = vector.extract_strided_slice %152 {offsets = [0, 0, 6], sizes = [4, 16, 1], strides = [1, 1, 1]} : vector<4x16x14xf32> to vector<4x16x1xf32>
    %157 = vector.extract_strided_slice %152 {offsets = [0, 0, 8], sizes = [4, 16, 1], strides = [1, 1, 1]} : vector<4x16x14xf32> to vector<4x16x1xf32>
    %158 = vector.extract_strided_slice %152 {offsets = [0, 0, 10], sizes = [4, 16, 1], strides = [1, 1, 1]} : vector<4x16x14xf32> to vector<4x16x1xf32>
    %159 = vector.extract_strided_slice %152 {offsets = [0, 0, 12], sizes = [4, 16, 1], strides = [1, 1, 1]} : vector<4x16x14xf32> to vector<4x16x1xf32>
    %160 = tpu.concatenate %153, %154, %155, %156, %157, %158, %159 in 2 : vector<4x16x1xf32>, vector<4x16x1xf32>, vector<4x16x1xf32>, vector<4x16x1xf32>, vector<4x16x1xf32>, vector<4x16x1xf32>, vector<4x16x1xf32> -> vector<4x16x7xf32>
    %161 = vector.extract_strided_slice %160 {offsets = [0, 0, 0], sizes = [4, 14, 7], strides = [1, 1, 1]} : vector<4x16x7xf32> to vector<4x14x7xf32>
    %162 = vector.extract_strided_slice %160 {offsets = [0, 1, 0], sizes = [4, 14, 7], strides = [1, 1, 1]} : vector<4x16x7xf32> to vector<4x14x7xf32>
    %163 = arith.maximumf %161, %162 : vector<4x14x7xf32>
    %164 = vector.extract_strided_slice %160 {offsets = [0, 2, 0], sizes = [4, 14, 7], strides = [1, 1, 1]} : vector<4x16x7xf32> to vector<4x14x7xf32>
    %165 = arith.maximumf %163, %164 : vector<4x14x7xf32>
    %166 = vector.extract_strided_slice %165 {offsets = [0, 0, 0], sizes = [4, 1, 7], strides = [1, 1, 1]} : vector<4x14x7xf32> to vector<4x1x7xf32>
    %167 = vector.extract_strided_slice %165 {offsets = [0, 2, 0], sizes = [4, 1, 7], strides = [1, 1, 1]} : vector<4x14x7xf32> to vector<4x1x7xf32>
    %168 = vector.extract_strided_slice %165 {offsets = [0, 4, 0], sizes = [4, 1, 7], strides = [1, 1, 1]} : vector<4x14x7xf32> to vector<4x1x7xf32>
    %169 = vector.extract_strided_slice %165 {offsets = [0, 6, 0], sizes = [4, 1, 7], strides = [1, 1, 1]} : vector<4x14x7xf32> to vector<4x1x7xf32>
    %170 = vector.extract_strided_slice %165 {offsets = [0, 8, 0], sizes = [4, 1, 7], strides = [1, 1, 1]} : vector<4x14x7xf32> to vector<4x1x7xf32>
    %171 = vector.extract_strided_slice %165 {offsets = [0, 10, 0], sizes = [4, 1, 7], strides = [1, 1, 1]} : vector<4x14x7xf32> to vector<4x1x7xf32>
    %172 = vector.extract_strided_slice %165 {offsets = [0, 12, 0], sizes = [4, 1, 7], strides = [1, 1, 1]} : vector<4x14x7xf32> to vector<4x1x7xf32>
    %173 = tpu.concatenate %166, %167, %168, %169, %170, %171, %172 in 1 : vector<4x1x7xf32>, vector<4x1x7xf32>, vector<4x1x7xf32>, vector<4x1x7xf32>, vector<4x1x7xf32>, vector<4x1x7xf32>, vector<4x1x7xf32> -> vector<4x7x7xf32>
    %c0_49 = arith.constant 0 : index
    %c4_50 = arith.constant 4 : index
    %c0_51 = arith.constant 0 : index
    %c0_52 = arith.constant 0 : index
    %174 = vector.load %arg2[%c0_49, %c4_50, %c0_51, %c0_52] : memref<4x7x7x7xf32, #tpu.memory_space<vmem>>, vector<4x1x7x7xf32>
    %175 = vector.shape_cast %174 : vector<4x1x7x7xf32> to vector<4x7x7xf32>
    %176 = vector.shape_cast %173 : vector<4x7x7xf32> to vector<4x1x7x7xf32>
    tpu.vector_store %arg2[%c0_49, %c4_50, %c0_51, %c0_52], %176 {strides = array<i32>} : memref<4x7x7x7xf32, #tpu.memory_space<vmem>>, vector<4x1x7x7xf32>,
    %c0_53 = arith.constant 0 : index
    %c11 = arith.constant 11 : index
    %c0_54 = arith.constant 0 : index
    %c0_55 = arith.constant 0 : index
    %177 = vector.load %arg1[%c0_53, %c11, %c0_54, %c0_55] : memref<4x16x16x16xf32, #tpu.memory_space<vmem>>, vector<4x1x16x16xf32>
    %178 = vector.shape_cast %177 : vector<4x1x16x16xf32> to vector<4x16x16xf32>
    %c0_56 = arith.constant 0 : index
    %c12 = arith.constant 12 : index
    %c0_57 = arith.constant 0 : index
    %c0_58 = arith.constant 0 : index
    %179 = vector.load %arg1[%c0_56, %c12, %c0_57, %c0_58] : memref<4x16x16x16xf32, #tpu.memory_space<vmem>>, vector<4x1x16x16xf32>
    %180 = vector.shape_cast %179 : vector<4x1x16x16xf32> to vector<4x16x16xf32>
    %181 = arith.maximumf %145, %178 : vector<4x16x16xf32>
    %182 = arith.maximumf %181, %180 : vector<4x16x16xf32>
    %183 = vector.extract_strided_slice %182 {offsets = [0, 0, 0], sizes = [4, 16, 14], strides = [1, 1, 1]} : vector<4x16x16xf32> to vector<4x16x14xf32>
    %184 = vector.extract_strided_slice %182 {offsets = [0, 0, 1], sizes = [4, 16, 14], strides = [1, 1, 1]} : vector<4x16x16xf32> to vector<4x16x14xf32>
    %185 = arith.maximumf %183, %184 : vector<4x16x14xf32>
    %186 = vector.extract_strided_slice %182 {offsets = [0, 0, 2], sizes = [4, 16, 14], strides = [1, 1, 1]} : vector<4x16x16xf32> to vector<4x16x14xf32>
    %187 = arith.maximumf %185, %186 : vector<4x16x14xf32>
    %188 = vector.extract_strided_slice %187 {offsets = [0, 0, 0], sizes = [4, 16, 1], strides = [1, 1, 1]} : vector<4x16x14xf32> to vector<4x16x1xf32>
    %189 = vector.extract_strided_slice %187 {offsets = [0, 0, 2], sizes = [4, 16, 1], strides = [1, 1, 1]} : vector<4x16x14xf32> to vector<4x16x1xf32>
    %190 = vector.extract_strided_slice %187 {offsets = [0, 0, 4], sizes = [4, 16, 1], strides = [1, 1, 1]} : vector<4x16x14xf32> to vector<4x16x1xf32>
    %191 = vector.extract_strided_slice %187 {offsets = [0, 0, 6], sizes = [4, 16, 1], strides = [1, 1, 1]} : vector<4x16x14xf32> to vector<4x16x1xf32>
    %192 = vector.extract_strided_slice %187 {offsets = [0, 0, 8], sizes = [4, 16, 1], strides = [1, 1, 1]} : vector<4x16x14xf32> to vector<4x16x1xf32>
    %193 = vector.extract_strided_slice %187 {offsets = [0, 0, 10], sizes = [4, 16, 1], strides = [1, 1, 1]} : vector<4x16x14xf32> to vector<4x16x1xf32>
    %194 = vector.extract_strided_slice %187 {offsets = [0, 0, 12], sizes = [4, 16, 1], strides = [1, 1, 1]} : vector<4x16x14xf32> to vector<4x16x1xf32>
    %195 = tpu.concatenate %188, %189, %190, %191, %192, %193, %194 in 2 : vector<4x16x1xf32>, vector<4x16x1xf32>, vector<4x16x1xf32>, vector<4x16x1xf32>, vector<4x16x1xf32>, vector<4x16x1xf32>, vector<4x16x1xf32> -> vector<4x16x7xf32>
    %196 = vector.extract_strided_slice %195 {offsets = [0, 0, 0], sizes = [4, 14, 7], strides = [1, 1, 1]} : vector<4x16x7xf32> to vector<4x14x7xf32>
    %197 = vector.extract_strided_slice %195 {offsets = [0, 1, 0], sizes = [4, 14, 7], strides = [1, 1, 1]} : vector<4x16x7xf32> to vector<4x14x7xf32>
    %198 = arith.maximumf %196, %197 : vector<4x14x7xf32>
    %199 = vector.extract_strided_slice %195 {offsets = [0, 2, 0], sizes = [4, 14, 7], strides = [1, 1, 1]} : vector<4x16x7xf32> to vector<4x14x7xf32>
    %200 = arith.maximumf %198, %199 : vector<4x14x7xf32>
    %201 = vector.extract_strided_slice %200 {offsets = [0, 0, 0], sizes = [4, 1, 7], strides = [1, 1, 1]} : vector<4x14x7xf32> to vector<4x1x7xf32>
    %202 = vector.extract_strided_slice %200 {offsets = [0, 2, 0], sizes = [4, 1, 7], strides = [1, 1, 1]} : vector<4x14x7xf32> to vector<4x1x7xf32>
    %203 = vector.extract_strided_slice %200 {offsets = [0, 4, 0], sizes = [4, 1, 7], strides = [1, 1, 1]} : vector<4x14x7xf32> to vector<4x1x7xf32>
    %204 = vector.extract_strided_slice %200 {offsets = [0, 6, 0], sizes = [4, 1, 7], strides = [1, 1, 1]} : vector<4x14x7xf32> to vector<4x1x7xf32>
    %205 = vector.extract_strided_slice %200 {offsets = [0, 8, 0], sizes = [4, 1, 7], strides = [1, 1, 1]} : vector<4x14x7xf32> to vector<4x1x7xf32>
    %206 = vector.extract_strided_slice %200 {offsets = [0, 10, 0], sizes = [4, 1, 7], strides = [1, 1, 1]} : vector<4x14x7xf32> to vector<4x1x7xf32>
    %207 = vector.extract_strided_slice %200 {offsets = [0, 12, 0], sizes = [4, 1, 7], strides = [1, 1, 1]} : vector<4x14x7xf32> to vector<4x1x7xf32>
    %208 = tpu.concatenate %201, %202, %203, %204, %205, %206, %207 in 1 : vector<4x1x7xf32>, vector<4x1x7xf32>, vector<4x1x7xf32>, vector<4x1x7xf32>, vector<4x1x7xf32>, vector<4x1x7xf32>, vector<4x1x7xf32> -> vector<4x7x7xf32>
    %c0_59 = arith.constant 0 : index
    %c5_60 = arith.constant 5 : index
    %c0_61 = arith.constant 0 : index
    %c0_62 = arith.constant 0 : index
    %209 = vector.load %arg2[%c0_59, %c5_60, %c0_61, %c0_62] : memref<4x7x7x7xf32, #tpu.memory_space<vmem>>, vector<4x1x7x7xf32>
    %210 = vector.shape_cast %209 : vector<4x1x7x7xf32> to vector<4x7x7xf32>
    %211 = vector.shape_cast %208 : vector<4x7x7xf32> to vector<4x1x7x7xf32>
    tpu.vector_store %arg2[%c0_59, %c5_60, %c0_61, %c0_62], %211 {strides = array<i32>} : memref<4x7x7x7xf32, #tpu.memory_space<vmem>>, vector<4x1x7x7xf32>,
    %c0_63 = arith.constant 0 : index
    %c13 = arith.constant 13 : index
    %c0_64 = arith.constant 0 : index
    %c0_65 = arith.constant 0 : index
    %212 = vector.load %arg1[%c0_63, %c13, %c0_64, %c0_65] : memref<4x16x16x16xf32, #tpu.memory_space<vmem>>, vector<4x1x16x16xf32>
    %213 = vector.shape_cast %212 : vector<4x1x16x16xf32> to vector<4x16x16xf32>
    %c0_66 = arith.constant 0 : index
    %c14 = arith.constant 14 : index
    %c0_67 = arith.constant 0 : index
    %c0_68 = arith.constant 0 : index
    %214 = vector.load %arg1[%c0_66, %c14, %c0_67, %c0_68] : memref<4x16x16x16xf32, #tpu.memory_space<vmem>>, vector<4x1x16x16xf32>
    %215 = vector.shape_cast %214 : vector<4x1x16x16xf32> to vector<4x16x16xf32>
    %216 = arith.maximumf %180, %213 : vector<4x16x16xf32>
    %217 = arith.maximumf %216, %215 : vector<4x16x16xf32>
    %218 = vector.extract_strided_slice %217 {offsets = [0, 0, 0], sizes = [4, 16, 14], strides = [1, 1, 1]} : vector<4x16x16xf32> to vector<4x16x14xf32>
    %219 = vector.extract_strided_slice %217 {offsets = [0, 0, 1], sizes = [4, 16, 14], strides = [1, 1, 1]} : vector<4x16x16xf32> to vector<4x16x14xf32>
    %220 = arith.maximumf %218, %219 : vector<4x16x14xf32>
    %221 = vector.extract_strided_slice %217 {offsets = [0, 0, 2], sizes = [4, 16, 14], strides = [1, 1, 1]} : vector<4x16x16xf32> to vector<4x16x14xf32>
    %222 = arith.maximumf %220, %221 : vector<4x16x14xf32>
    %223 = vector.extract_strided_slice %222 {offsets = [0, 0, 0], sizes = [4, 16, 1], strides = [1, 1, 1]} : vector<4x16x14xf32> to vector<4x16x1xf32>
    %224 = vector.extract_strided_slice %222 {offsets = [0, 0, 2], sizes = [4, 16, 1], strides = [1, 1, 1]} : vector<4x16x14xf32> to vector<4x16x1xf32>
    %225 = vector.extract_strided_slice %222 {offsets = [0, 0, 4], sizes = [4, 16, 1], strides = [1, 1, 1]} : vector<4x16x14xf32> to vector<4x16x1xf32>
    %226 = vector.extract_strided_slice %222 {offsets = [0, 0, 6], sizes = [4, 16, 1], strides = [1, 1, 1]} : vector<4x16x14xf32> to vector<4x16x1xf32>
    %227 = vector.extract_strided_slice %222 {offsets = [0, 0, 8], sizes = [4, 16, 1], strides = [1, 1, 1]} : vector<4x16x14xf32> to vector<4x16x1xf32>
    %228 = vector.extract_strided_slice %222 {offsets = [0, 0, 10], sizes = [4, 16, 1], strides = [1, 1, 1]} : vector<4x16x14xf32> to vector<4x16x1xf32>
    %229 = vector.extract_strided_slice %222 {offsets = [0, 0, 12], sizes = [4, 16, 1], strides = [1, 1, 1]} : vector<4x16x14xf32> to vector<4x16x1xf32>
    %230 = tpu.concatenate %223, %224, %225, %226, %227, %228, %229 in 2 : vector<4x16x1xf32>, vector<4x16x1xf32>, vector<4x16x1xf32>, vector<4x16x1xf32>, vector<4x16x1xf32>, vector<4x16x1xf32>, vector<4x16x1xf32> -> vector<4x16x7xf32>
    %231 = vector.extract_strided_slice %230 {offsets = [0, 0, 0], sizes = [4, 14, 7], strides = [1, 1, 1]} : vector<4x16x7xf32> to vector<4x14x7xf32>
    %232 = vector.extract_strided_slice %230 {offsets = [0, 1, 0], sizes = [4, 14, 7], strides = [1, 1, 1]} : vector<4x16x7xf32> to vector<4x14x7xf32>
    %233 = arith.maximumf %231, %232 : vector<4x14x7xf32>
    %234 = vector.extract_strided_slice %230 {offsets = [0, 2, 0], sizes = [4, 14, 7], strides = [1, 1, 1]} : vector<4x16x7xf32> to vector<4x14x7xf32>
    %235 = arith.maximumf %233, %234 : vector<4x14x7xf32>
    %236 = vector.extract_strided_slice %235 {offsets = [0, 0, 0], sizes = [4, 1, 7], strides = [1, 1, 1]} : vector<4x14x7xf32> to vector<4x1x7xf32>
    %237 = vector.extract_strided_slice %235 {offsets = [0, 2, 0], sizes = [4, 1, 7], strides = [1, 1, 1]} : vector<4x14x7xf32> to vector<4x1x7xf32>
    %238 = vector.extract_strided_slice %235 {offsets = [0, 4, 0], sizes = [4, 1, 7], strides = [1, 1, 1]} : vector<4x14x7xf32> to vector<4x1x7xf32>
    %239 = vector.extract_strided_slice %235 {offsets = [0, 6, 0], sizes = [4, 1, 7], strides = [1, 1, 1]} : vector<4x14x7xf32> to vector<4x1x7xf32>
    %240 = vector.extract_strided_slice %235 {offsets = [0, 8, 0], sizes = [4, 1, 7], strides = [1, 1, 1]} : vector<4x14x7xf32> to vector<4x1x7xf32>
    %241 = vector.extract_strided_slice %235 {offsets = [0, 10, 0], sizes = [4, 1, 7], strides = [1, 1, 1]} : vector<4x14x7xf32> to vector<4x1x7xf32>
    %242 = vector.extract_strided_slice %235 {offsets = [0, 12, 0], sizes = [4, 1, 7], strides = [1, 1, 1]} : vector<4x14x7xf32> to vector<4x1x7xf32>
    %243 = tpu.concatenate %236, %237, %238, %239, %240, %241, %242 in 1 : vector<4x1x7xf32>, vector<4x1x7xf32>, vector<4x1x7xf32>, vector<4x1x7xf32>, vector<4x1x7xf32>, vector<4x1x7xf32>, vector<4x1x7xf32> -> vector<4x7x7xf32>
    %c0_69 = arith.constant 0 : index
    %c6_70 = arith.constant 6 : index
    %c0_71 = arith.constant 0 : index
    %c0_72 = arith.constant 0 : index
    %244 = vector.load %arg2[%c0_69, %c6_70, %c0_71, %c0_72] : memref<4x7x7x7xf32, #tpu.memory_space<vmem>>, vector<4x1x7x7xf32>
    %245 = vector.shape_cast %244 : vector<4x1x7x7xf32> to vector<4x7x7xf32>
    %246 = vector.shape_cast %243 : vector<4x7x7xf32> to vector<4x1x7x7xf32>
    tpu.vector_store %arg2[%c0_69, %c6_70, %c0_71, %c0_72], %246 {strides = array<i32>} : memref<4x7x7x7xf32, #tpu.memory_space<vmem>>, vector<4x1x7x7xf32>,
    return
  }
  func.func @transform_0(%arg0: i32) -> (i32, i32, i32, i32) {
    %c0_i32 = arith.constant 0 : i32
    %c0_i32_0 = arith.constant 0 : i32
    %c0_i32_1 = arith.constant 0 : i32
    %c0_i32_2 = arith.constant 0 : i32
    return %arg0, %c0_i32, %c0_i32_0, %c0_i32_1 : i32, i32, i32, i32
  }
  func.func @transform_1(%arg0: i32) -> (i32, i32, i32, i32) {
    %c0_i32 = arith.constant 0 : i32
    %c0_i32_0 = arith.constant 0 : i32
    %c0_i32_1 = arith.constant 0 : i32
    %c0_i32_2 = arith.constant 0 : i32
    return %arg0, %c0_i32, %c0_i32_0, %c0_i32_1 : i32, i32, i32, i32
  }
}

</mosaic_0001>

<bundles_post_ra>
// kernel: tpu_custom_call.1
= control target key start
LH: loop header
LB: loop body
LE: loop exit
PB: predicated region body
PF: predicated region fallthrough
CT: control target
= control target key end

     0   :  { %6 = vsyncpa [#allocation3], 0  ;;  %s6405_s0 = inlined_call_operand.hbm [shape: f32[8,16,16,16], index: 0, kind: input, shape index: {}]   ;;  %s6406_s1 = inlined_call_operand.vmem [shape: f32[8,7,7,7], index: 1, kind: output, shape index: {}]  }
   0x1   :  { %8 = vsyncpa [#allocation3 + $0x1], 0  ;;  %s3703_s6 = smov 0   ;;  %s3705_s7 = smov 0  }
   0x2   :  { %s3707_s8 = smov 0   ;;  %s3709_s9 = smov 0  }
   0x3 LB: > { %s3419_s10 = sadd.s32 4294967295, %s3683_s9   ;;  %s3723_s11 = sadd.s32 1, %s3683_s9   ;;  %s3683_s9 = sphi %s3709_s9, %s6515_s9   ;;  %s3679_s8 = sphi %s3707_s8, %s6514_s8   ;;  %s3675_s7 = sphi %s3705_s7, %s6513_s7   ;;  %s3671_s6 = sphi %s3703_s6, %s6512_s6  }
   0x4   : > { %s18_s12 = ssub.s32 %s3683_s9, %s3723_s11  ;;  %s21_s13 = sadd.s32 1, %s3679_s8 }
   0x5   : > { %p19_p0 = scmp.eq.s32.totalorder %s18_s12, 0  ;;  %p28_p1 = scmp.ne.s32.totalorder %s3679_s8, %s3675_s7 }
   0x6   : > { %p29_p2 = scmp.eq.s32.totalorder %s3683_s9, 0  ;;  %p34_p3 = scmp.ne.s32.totalorder %s3675_s7, %s3671_s6 }
   0x7   : > { %s3733_s14 = scalar_select %p19_p0, %s3679_s8, %s21_s13  }
   0x8   : > { %p3735_p4 = por %p29_p2, %p28_p1  ;;  %p35_p5 = scmp.eq.s32.totalorder %s3419_s10, 0 }
   0x9   : > { %p3578_p6 = scmp.lt.s32.totalorder %s3683_s9, 2  ;;  %s84_s17 = sand.u32 1, %s3679_s8  }
   0xa   : > { %p3742_p7 = por %p35_p5, %p34_p3  ;;  %s3423_s18 = sshll.u32 %s84_s17, 10 }
   0xb   : > { %s3570_s19 = sshll.u32 %s3683_s9, 10  ;;  %s88_s23 = scalar_lea.vmem [#allocation2], %s3423_s18 }
   0xc   : > { %s94_s22 = scalar_lea.hbm %s6405_s0, %s3570_s19  ;;  %s97_s24 = sshll.u32 %s88_s23, 4  ;;  %s98_s24 = int_to_ptr.vmem [resolvable:$true] %s97_s24 }
   0xd   : > { %s95_s25 = sshll.u32 %s94_s22, 4  ;;  %p3753_p8 = pnand %p3578_p6, %p3735_p4  ;;  %s96_s25 = int_to_ptr.hbm [resolvable:$true] %s95_s25 }
   0xe   : > { %p3427_p9 = scmp.ge.s32.totalorder %s3683_s9, 1  ;;  %s85_s27 = scalar_lea.sflag [#allocation3], %s84_s17 }
   0xf   : > { %s3619_s28 = sshra.s32 %s96_s25, 4  ;;  %p3623_p11 = pneg %p3753_p8  ;;  %s3620_s28 = int_to_ptr.hbm [resolvable:$true] %s3619_s28 }
  0x10   : > { %s3621_s29 = scalar_lea.hbm %s3620_s28, 1024  ;;  %s3626_s3 = scalar_lea.hbm %s6405_s0, 2048 }
  0x11   : > { %p3622_p10 = scmp.ne.s32.totalorder %s3620_s28, %s3621_s29  ;;  %p3627_p0 = scmp.lt.s32.totalorder %s3620_s28, %s6405_s0 }
  0x12   : > { %p3628_p1 = scmp.lt.s32.totalorder %s3626_s3, %s3621_s29 }
  0x13   : > { %p3624_p12 = pnand %p3623_p11, %p3622_p10 }
  0x14   : > { %p3629_p2 = por %p3628_p1, %p3627_p0 }
  0x15   : > { %p3625_p13 = pneg %p3624_p12 }
  0x17   : > { %p3630_p3 = pnand %p3629_p2, %p3625_p13 }
  0x19   : > { %3633 = shalt.err (!%p3630_p3)
}
  0x1a   : > { %s3685_s6 = smov 128   ;;  %s3686_s12 = smov 8  }
  0x1b   : > { %3577 = dma.hbm_to_vmem [thread:$0]  (!%p3753_p8), %s96_s25, 16384, %s98_s24, %s85_s27, %s3685_s6, %s3685_s6, %s3686_s12  }
  0x1c   : > { %p105_p4 = scmp.lt.s32.totalorder %s3683_s9, 3 }
  0x1e   : > { %p106_p5 = pnand %p3427_p9, %p105_p4 }
  0x20   : > { %109 = sbr.rel (%p106_p5) target bundleno = 1989 (0x7c5), region = 24 }
  0x25   : > { %s111_s13 = sand.u32 1, %s3675_s7  }
  0x26   : > { %s3428_s15 = sshll.u32 %s111_s13, 10  ;;  %s112_s17 = scalar_lea.sflag [#allocation3], %s111_s13 }
  0x27   : > { %s3772_s18 = scalar_lea.vmem [#allocation2], %s3428_s15 }
  0x28   : > { %3666 = dma.done.wait (%p3742_p7), %s112_s17, 16384  }
  0x29   : > { %3668 = vsyncadd (%p3742_p7), %s112_s17, 4294950912  ;;  %v146_v0 = vld [vmem:[%s3772_s18 + $0x100] sm:$0xff]  ;;  %v3433_v1 = vld [vmem:[%s3772_s18 + $0x110] sm:$0xff]  ;;  %s3687_s16 = smov 127   ;;  %s3688_s19 = smov 126   ;;  %vm410_vm0 = vcmask 7168  }
  0x2a   : > { %v3781_v2 = vld [vmem:[%s3772_s18 + $0x120] sm:$0xff]  ;;  %v172_v3 = vmax.f32 %v146_v0, %v3433_v1  ;;  %v3431_v5 = vld [vmem:[%s3772_s18 + $0x10] sm:$0xff]  ;;  %v147_v8 = vld [vmem:[%s3772_s18 + $0x108] sm:$0xff]  ;;  %s3689_s20 = smov 125   ;;  %s3690_s21 = smov 124   ;;  %vm419_vm1 = vcmask 15360  }
  0x2b   : > { %v144_v4 = vld [vmem:[%s3772_s18] sm:$0xff]  ;;  %v3434_v9 = vld [vmem:[%s3772_s18 + $0x118] sm:$0xff]  ;;  %v145_v11 = vld [vmem:[%s3772_s18 + $0x8] sm:$0xff]  ;;  %s3691_s22 = smov 123   ;;  %s3692_s23 = smov 122   ;;  %vm428_vm2 = vcmask 23552  }
  0x2c   : > { %v3786_v6 = vld [vmem:[%s3772_s18 + $0x20] sm:$0xff]  ;;  %v170_v7 = vmax.f32 %v144_v4, %v3431_v5  ;;  %v3791_v10 = vmax.f32 %v172_v3, %v3781_v2  ;;  %v3432_v12 = vld [vmem:[%s3772_s18 + $0x18] sm:$0xff]  ;;  %v3435_v15 = vld [vmem:[%s3772_s18 + $0x210] sm:$0xff]  ;;  %v173_v17 = vmax.f32 %v147_v8, %v3434_v9  ;;  %vm437_vm3 = vcmask 31744   ;;  %s4179_s24 = sshll.u32 %s3419_s10, 2 }
  0x2d   : > { %v148_v14 = vld [vmem:[%s3772_s18 + $0x200] sm:$0xff]  ;;  %v3805_v19 = vld [vmem:[%s3772_s18 + $0x128] sm:$0xff]  ;;  %v171_v20 = vmax.f32 %v145_v11, %v3432_v12  ;;  %v3436_v24 = vld [vmem:[%s3772_s18 + $0x218] sm:$0xff]  ;;  %vm446_vm4 = vcmask 39936   ;;  %vm455_vm5 = vcmask 48128   ;;  %vm472_vm6 = vcmask 1046528  }
  0x2e   : > { %v178_v13 = vmax.f32 %v170_v7, %v3786_v6  ;;  %v3799_v16 = vld [vmem:[%s3772_s18 + $0x220] sm:$0xff]  ;;  %198 = vrot.lane.b32.xlu1 %v3791_v10, %s3687_s16  ;;  %v174_v18 = vmax.f32 %v148_v14, %v3435_v15  ;;  %v3808_v21 = vld [vmem:[%s3772_s18 + $0x28] sm:$0xff]  ;;  %v181_v25 = vmax.f32 %v173_v17, %v3805_v19  ;;  %v3438_v29 = vld [vmem:[%s3772_s18 + $0x318] sm:$0xff]  ;;  %vm501_vm7 = vcmask 1045504   ;;  %p138_p6 = scmp.lt.s32.totalorder %s4179_s24, 7 }
  0x2f   : > { %v149_v23 = vld [vmem:[%s3772_s18 + $0x208] sm:$0xff]  ;;  %v179_v27 = vmax.f32 %v171_v20, %v3808_v21  ;;  %v150_v31 = vld [vmem:[%s3772_s18 + $0x300] sm:$0xff]  ;;  %v3437_v32 = vld [vmem:[%s3772_s18 + $0x310] sm:$0xff]  ;;  %vm586_vm8 = vcmask 1040384   ;;  %vm591_vm9 = vcmask 1041408   ;;  %vm596_vm10 = vcmask 1042432  }
  0x30   : > { %194 = vrot.lane.b32.xlu0 %v178_v13, %s3687_s16  ;;  %v3811_v22 = vmax.f32 %v174_v18, %v3799_v16  ;;  %v175_v26 = vmax.f32 %v149_v23, %v3436_v24  ;;  %v151_v28 = vld [vmem:[%s3772_s18 + $0x308] sm:$0xff]  ;;  %v176_v36 = vmax.f32 %v150_v31, %v3437_v32  ;;  %v3833_v37 = vld [vmem:[%s3772_s18 + $0x320] sm:$0xff]  ;;  %v3447_v12 = vld [vmem:[%s3772_s18 + $0x30] sm:$0xff]  ;;  %s6517_s24 = smov (!%p138_p6, %s4179_s24), 7  ;;  %vm601_vm11 = vcmask 1043456  }
  0x31   : > { %v3822_v30 = vld [vmem:[%s3772_s18 + $0x228] sm:$0xff]  ;;  %v177_v33 = vmax.f32 %v151_v28, %v3438_v29  ;;  %v638_v14 = vmax.f32 %v3786_v6, %v3447_v12  ;;  %v3961_v15 = vld [vmem:[%s3772_s18 + $0x40] sm:$0xff]  ;;  %v3450_v20 = vld [vmem:[%s3772_s18 + $0x138] sm:$0xff]  ;;  %vm606_vm12 = vcmask 1044480   ;;  %s3571_s9 = smul.u32 56, %s6517_s24  ;;  %vm615_vm13 = vcmask 55296  }
  0x32   : > { %202 = vrot.lane.b32.xlu2 %v3811_v22, %s3687_s16  ;;  %v183_v34 = vmax.f32 %v175_v26, %v3822_v30  ;;  %v3830_v35 = vld [vmem:[%s3772_s18 + $0x328] sm:$0xff]  ;;  %v184_v39 = vmax.f32 %v176_v36, %v3833_v37  ;;  %6444 = vst [vmem:[#allocation5_spill] sm:$0xff] %v3961_v15  ;;  %v3453_v26 = vld [vmem:[%s3772_s18 + $0x330] sm:$0xff]  ;;  %v3999_v29 = vld [vmem:[%s3772_s18 + $0x340] sm:$0xff] }
  0x33   : > { %v185_v38 = vmax.f32 %v177_v33, %v3830_v35  ;;  %v3966_v18 = vmax.f32 %v638_v14, %v3961_v15  ;;  %v3979_v23 = vld [vmem:[%s3772_s18 + $0x148] sm:$0xff]  ;;  %v644_v28 = vmax.f32 %v3833_v37, %v3453_v26  ;;  %6446 = vst [vmem:[#allocation7_spill] sm:$0xff] %v3999_v29  ;;  %v3449_v32 = vld [vmem:[%s3772_s18 + $0x130] sm:$0xff]  ;;  %v3448_v33 = vld [vmem:[%s3772_s18 + $0x38] sm:$0xff]  ;;  %s4239_s26 = scalar_lea.vmem %s6406_s1, %s3571_s9 }
  0x34   : > { %6445 = vst [vmem:[#allocation6_spill] sm:$0xff] %v3979_v23  ;;  %v640_v36 = vmax.f32 %v3781_v2, %v3449_v32  ;;  %v4014_v37 = vld [vmem:[%s3772_s18 + $0x140] sm:$0xff] }
  0x36   : > { %200 = vrot.lane.b32.xlu1 %v181_v25, %s3687_s16  ;;  %v4027_v2 = vmax.f32 %v640_v36, %v4014_v37 }
  0x38   : > { %196 = vrot.lane.b32.xlu0 %v179_v27, %s3687_s16 }
  0x3a   : > { %204 = vrot.lane.b32.xlu2 %v183_v34, %s3687_s16 }
  0x3e   : > { %208 = vrot.lane.b32.xlu1 %v185_v38, %s3687_s16 }
  0x40   : > { %206 = vrot.lane.b32.xlu0 %v184_v39, %s3687_s16 }
  0x42   : > { %226 = vrot.lane.b32.xlu2 %v178_v13, %s3688_s19 }
  0x46   : > { %230 = vrot.lane.b32.xlu1 %v3791_v10, %s3688_s19 }
  0x48   : > { %228 = vrot.lane.b32.xlu0 %v179_v27, %s3688_s19 }
  0x4a   : > { %232 = vrot.lane.b32.xlu2 %v181_v25, %s3688_s19 }
  0x4e   : > { %236 = vrot.lane.b32.xlu1 %v183_v34, %s3688_s19 }
  0x50   : > { %234 = vrot.lane.b32.xlu0 %v3811_v22, %s3688_s19 }
  0x52   : > { %238 = vrot.lane.b32.xlu2 %v184_v39, %s3688_s19 }
  0x58   : > { %240 = vrot.lane.b32.xlu0 %v185_v38, %s3688_s19 }
  0x8c   : > { %v203_v40 = vpop.permute.xlu2 %202 }
  0x8d   : > { %v222_v0 = vmax.f32 %v3811_v22, %v203_v40  ;;  %v641_v22 = vmax.f32 %v3805_v19, %v3450_v20  ;;  %v4020_v40 = vld [vmem:[%s3772_s18 + $0x48] sm:$0xff] }
  0x8e   : > { %6447 = vst [vmem:[#allocation8_spill] sm:$0xff] %v4020_v40 }
  0x94   : > { %v205_v41 = vpop.permute.xlu2 %204 }
  0x95   : > { %v223_v63 = vmax.f32 %v183_v34, %v205_v41  ;;  %v4006_v34 = vmax.f32 %v644_v28, %v3999_v29 }
  0x9c   : > { %v227_v42 = vpop.permute.xlu2 %226 }
  0xa0   : > { %v199_v43 = vpop.permute.xlu1 %198 }
  0xa1   : > { %v220_v57 = vmax.f32 %v3791_v10, %v199_v43 }
  0xa2   : > { %v195_v44 = vpop.permute.xlu0 %194 }
  0xa3   : > { %v218_v45 = vmax.f32 %v178_v13, %v195_v44  ;;  %v3451_v44 = vld [vmem:[%s3772_s18 + $0x230] sm:$0xff] }
  0xa4   : > { %v233_v47 = vpop.permute.xlu2 %232 }
  0xa5   : > { %v3850_v46 = vmax.f32 %v218_v45, %v227_v42 }
  0xa7   : > { %266 = vrot.lane.b32.xlu1 %v3850_v46, %s3687_s16 }
  0xa8   : > { %v201_v48 = vpop.permute.xlu1 %200 }
  0xa9   : > { %v221_v49 = vmax.f32 %v181_v25, %v201_v48  ;;  %v3984_v25 = vmax.f32 %v641_v22, %v3979_v23  ;;  %v642_v48 = vmax.f32 %v3799_v16, %v3451_v44 }
  0xaa   : > { %v197_v50 = vpop.permute.xlu0 %196 }
  0xab   : > { %v3854_v51 = vmax.f32 %v221_v49, %v233_v47  ;;  %v219_v58 = vmax.f32 %v179_v27, %v197_v50  ;;  %v4042_v47 = vld [vmem:[%s3772_s18 + $0x248] sm:$0xff]  ;;  %v4048_v50 = vld [vmem:[%s3772_s18 + $0x240] sm:$0xff] }
  0xac   : > { %v239_v54 = vpop.permute.xlu2 %238  ;;  %6448 = vst [vmem:[#allocation9_spill] sm:$0xff] %v4042_v47 }
  0xad   : > { %6449 = vst [vmem:[#allocation10_spill] sm:$0xff] %v4048_v50 }
  0xaf   : > { %272 = vrot.lane.b32.xlu1 %v3854_v51, %s3687_s16 }
  0xb0   : > { %v209_v52 = vpop.permute.xlu1 %208 }
  0xb1   : > { %v225_v7 = vmax.f32 %v185_v38, %v209_v52  ;;  %v639_v38 = vmax.f32 %v3808_v21, %v3448_v33  ;;  %v3452_v21 = vld [vmem:[%s3772_s18 + $0x238] sm:$0xff] }
  0xb2   : > { %v207_v53 = vpop.permute.xlu0 %206  ;;  %v643_v45 = vmax.f32 %v3822_v30, %v3452_v21 }
  0xb3   : > { %v224_v55 = vmax.f32 %v184_v39, %v207_v53  ;;  %v4032_v43 = vmax.f32 %v639_v38, %v4020_v40 }
  0xb4   : > { %v4055_v53 = vmax.f32 %v643_v45, %v4042_v47 }
  0xb5   : > { %v3858_v56 = vmax.f32 %v224_v55, %v239_v54  ;;  %v4060_v54 = vmax.f32 %v642_v48, %v4048_v50  ;;  %v3454_v55 = vld [vmem:[%s3772_s18 + $0x338] sm:$0xff] }
  0xb6   : > { %v645_v16 = vmax.f32 %v3830_v35, %v3454_v55 }
  0xb7   : > { %278 = vrot.lane.b32.xlu1 %v3858_v56, %s3687_s16 }
  0xb8   : > { %v231_v59 = vpop.permute.xlu1 %230 }
  0xb9   : > { %v3863_v60 = vmax.f32 %v220_v57, %v231_v59 }
  0xba   : > { %v229_v61 = vpop.permute.xlu0 %228 }
  0xbb   : > { %v3865_v62 = vmax.f32 %v219_v58, %v229_v61  ;;  %270 = vrot.lane.b32.xlu0 %v3863_v60, %s3687_s16  ;;  %v4069_v58 = vld [vmem:[%s3772_s18 + $0x348] sm:$0xff] }
  0xbc   : > { %6450 = vst [vmem:[#allocation11_spill] sm:$0xff] %v4069_v58 }
  0xbd   : > { %268 = vrot.lane.b32.xlu2 %v3865_v62, %s3687_s16 }
  0xbf   : > { %292 = vrot.lane.b32.xlu1 %v3865_v62, %s3688_s19 }
  0xc0   : > { %v237_v1 = vpop.permute.xlu1 %236 }
  0xc1   : > { %v3874_v3 = vmax.f32 %v223_v63, %v237_v1  ;;  %v4074_v63 = vmax.f32 %v645_v16, %v4069_v58 }
  0xc2   : > { %v235_v4 = vpop.permute.xlu0 %234 }
  0xc3   : > { %v3876_v5 = vmax.f32 %v222_v0, %v235_v4  ;;  %276 = vrot.lane.b32.xlu0 %v3874_v3, %s3687_s16 }
  0xc5   : > { %274 = vrot.lane.b32.xlu2 %v3876_v5, %s3687_s16 }
  0xc7   : > { %298 = vrot.lane.b32.xlu1 %v3876_v5, %s3688_s19 }
  0xca   : > { %v241_v8 = vpop.permute.xlu0 %240 }
  0xcb   : > { %v3884_v9 = vmax.f32 %v225_v7, %v241_v8  ;;  %290 = vrot.lane.b32.xlu0 %v3850_v46, %s3688_s19 }
  0xcd   : > { %280 = vrot.lane.b32.xlu2 %v3884_v9, %s3687_s16 }
  0xcf   : > { %304 = vrot.lane.b32.xlu1 %v3884_v9, %s3688_s19 }
  0xd3   : > { %296 = vrot.lane.b32.xlu0 %v3854_v51, %s3688_s19 }
  0xd5   : > { %294 = vrot.lane.b32.xlu2 %v3863_v60, %s3688_s19 }
  0xd7   : > { %318 = vrot.lane.b32.xlu1 %v3863_v60, %s3689_s20 }
  0xdb   : > { %302 = vrot.lane.b32.xlu0 %v3858_v56, %s3688_s19 }
  0xdd   : > { %300 = vrot.lane.b32.xlu2 %v3874_v3, %s3688_s19 }
  0xdf   : > { %324 = vrot.lane.b32.xlu1 %v3874_v3, %s3689_s20 }
  0xe3   : > { %316 = vrot.lane.b32.xlu0 %v3865_v62, %s3689_s20 }
  0xe5   : > { %314 = vrot.lane.b32.xlu2 %v3850_v46, %s3689_s20 }
  0xe7   : > { %338 = vrot.lane.b32.xlu1 %v3850_v46, %s3690_s21 }
  0xeb   : > { %322 = vrot.lane.b32.xlu0 %v3876_v5, %s3689_s20 }
  0xed   : > { %320 = vrot.lane.b32.xlu2 %v3854_v51, %s3689_s20 }
  0xef   : > { %344 = vrot.lane.b32.xlu1 %v3854_v51, %s3690_s21 }
  0xf3   : > { %328 = vrot.lane.b32.xlu0 %v3884_v9, %s3689_s20 }
  0xf5   : > { %326 = vrot.lane.b32.xlu2 %v3858_v56, %s3689_s20 }
  0xf7   : > { %350 = vrot.lane.b32.xlu1 %v3858_v56, %s3690_s21 }
  0xfb   : > { %342 = vrot.lane.b32.xlu0 %v3863_v60, %s3690_s21 }
  0xfd   : > { %340 = vrot.lane.b32.xlu2 %v3865_v62, %s3690_s21 }
  0xff   : > { %364 = vrot.lane.b32.xlu1 %v3865_v62, %s3691_s22 }
 0x103   : > { %348 = vrot.lane.b32.xlu0 %v3874_v3, %s3690_s21 }
 0x105   : > { %346 = vrot.lane.b32.xlu2 %v3876_v5, %s3690_s21 }
 0x107   : > { %370 = vrot.lane.b32.xlu1 %v3876_v5, %s3691_s22 }
 0x10b   : > { %362 = vrot.lane.b32.xlu0 %v3850_v46, %s3691_s22 }
 0x10d   : > { %352 = vrot.lane.b32.xlu2 %v3884_v9, %s3690_s21 }
 0x10f   : > { %376 = vrot.lane.b32.xlu1 %v3884_v9, %s3691_s22 }
 0x113   : > { %368 = vrot.lane.b32.xlu0 %v3854_v51, %s3691_s22 }
 0x115   : > { %366 = vrot.lane.b32.xlu2 %v3863_v60, %s3691_s22 }
 0x117   : > { %v3944_v10 = vpop.permute.xlu2 %268  ;;  %390 = vrot.lane.b32.xlu1 %v3863_v60, %s3692_s23 }
 0x119   : > { %v3948_v11 = vpop.permute.xlu1 %266 }
 0x11b   : > { %374 = vrot.lane.b32.xlu0 %v3858_v56, %s3691_s22 }
 0x11d   : > { %372 = vrot.lane.b32.xlu2 %v3874_v3, %s3691_s22 }
 0x11f   : > { %v3955_v13 = vpop.permute.xlu2 %274  ;;  %396 = vrot.lane.b32.xlu1 %v3874_v3, %s3692_s23 }
 0x121   : > { %v3963_v17 = vpop.permute.xlu1 %272 }
 0x122   : > { %v414_v55 = vsel %vm410_vm0, %v3854_v51, %v3963_v17 }
 0x123   : > { %388 = vrot.lane.b32.xlu0 %v3865_v62, %s3692_s23 }
 0x125   : > { %386 = vrot.lane.b32.xlu2 %v3850_v46, %s3692_s23 }
 0x127   : > { %662 = vrot.lane.b32.xlu1 %v3966_v18, %s3687_s16  ;;  %v3975_v6 = vpop.permute.xlu2 %280 }
 0x129   : > { %v3981_v24 = vpop.permute.xlu1 %278 }
 0x12b   : > { %394 = vrot.lane.b32.xlu0 %v3876_v5, %s3692_s23 }
 0x12d   : > { %392 = vrot.lane.b32.xlu2 %v3854_v51, %s3692_s23  ;;  %v3991_v27 = vpop.permute.xlu0 %270 }
 0x12e   : > { %v413_v16 = vsel %vm410_vm0, %v3863_v60, %v3991_v27 }
 0x12f   : > { %668 = vrot.lane.b32.xlu1 %v3984_v25, %s3687_s16  ;;  %v3995_v19 = vpop.permute.xlu2 %294 }
 0x130   : > { %v422_v58 = vsel %vm419_vm1, %v413_v16, %v3995_v19 }
 0x131   : > { %v4001_v31 = vpop.permute.xlu1 %292 }
 0x133   : > { %400 = vrot.lane.b32.xlu0 %v3884_v9, %s3692_s23 }
 0x135   : > { %398 = vrot.lane.b32.xlu2 %v3858_v56, %s3692_s23  ;;  %v4017_v39 = vpop.permute.xlu0 %276 }
 0x137   : > { %674 = vrot.lane.b32.xlu1 %v4006_v34, %s3687_s16  ;;  %v4024_v41 = vpop.permute.xlu2 %300 }
 0x139   : > { %v4029_v42 = vpop.permute.xlu1 %298 }
 0x13b   : > { %666 = vrot.lane.b32.xlu0 %v4027_v2, %s3687_s16 }
 0x13d   : > { %664 = vrot.lane.b32.xlu2 %v4032_v43, %s3687_s16  ;;  %v4045_v49 = vpop.permute.xlu0 %290 }
 0x13f   : > { %696 = vrot.lane.b32.xlu1 %v4032_v43, %s3688_s19  ;;  %v4052_v52 = vpop.permute.xlu2 %314 }
 0x141   : > { %v4057_v30 = vpop.permute.xlu1 %304 }
 0x143   : > { %672 = vrot.lane.b32.xlu0 %v4055_v53, %s3687_s16 }
 0x145   : > { %670 = vrot.lane.b32.xlu2 %v4060_v54, %s3687_s16  ;;  %v297_v57 = vpop.permute.xlu0 %296 }
 0x146   : > { %v423_v23 = vsel %vm419_vm1, %v414_v55, %v297_v57 }
 0x147   : > { %702 = vrot.lane.b32.xlu1 %v4060_v54, %s3688_s19  ;;  %v321_v59 = vpop.permute.xlu2 %320 }
 0x148   : > { %v432_v50 = vsel %vm428_vm2, %v423_v23, %v321_v59 }
 0x149   : > { %v319_v61 = vpop.permute.xlu1 %318 }
 0x14a   : > { %v431_v15 = vsel %vm428_vm2, %v422_v58, %v319_v61 }
 0x14b   : > { %694 = vrot.lane.b32.xlu0 %v3966_v18, %s3688_s19 }
 0x14d   : > { %676 = vrot.lane.b32.xlu2 %v4074_v63, %s3687_s16  ;;  %v4080_v0 = vpop.permute.xlu0 %302 }
 0x14f   : > { %708 = vrot.lane.b32.xlu1 %v4074_v63, %s3688_s19  ;;  %v4084_v35 = vpop.permute.xlu2 %326 }
 0x151   : > { %v4086_v1 = vpop.permute.xlu1 %324 }
 0x153   : > { %700 = vrot.lane.b32.xlu0 %v3984_v25, %s3688_s19 }
 0x155   : > { %698 = vrot.lane.b32.xlu2 %v4027_v2, %s3688_s19  ;;  %v317_v4 = vpop.permute.xlu0 %316 }
 0x157   : > { %v4092_v7 = vpop.permute.xlu2 %340 }
 0x159   : > { %v339_v8 = vpop.permute.xlu1 %338 }
 0x15b   : > { %706 = vrot.lane.b32.xlu0 %v4006_v34, %s3688_s19 }
 0x15d   : > { %704 = vrot.lane.b32.xlu2 %v4055_v53, %s3688_s19  ;;  %v4098_v12 = vpop.permute.xlu0 %322 }
 0x15f   : > { %v4100_v14 = vpop.permute.xlu2 %346 }
 0x161   : > { %v345_v20 = vpop.permute.xlu1 %344 }
 0x162   : > { %v441_v51 = vsel %vm437_vm3, %v432_v50, %v345_v20 }
 0x165   : > { %v4102_v22 = vpop.permute.xlu0 %328 }
 0x167   : > { %v4104_v26 = vpop.permute.xlu2 %352 }
 0x169   : > { %v4106_v28 = vpop.permute.xlu1 %350 }
 0x16d   : > { %v343_v32 = vpop.permute.xlu0 %342 }
 0x16e   : > { %v440_v17 = vsel %vm437_vm3, %v431_v15, %v343_v32  ;;  %v411_v15 = vsel %vm410_vm0, %v3850_v46, %v3948_v11 }
 0x16f   : > { %v367_v33 = vpop.permute.xlu2 %366  ;;  %v420_v61 = vsel %vm419_vm1, %v411_v15, %v4045_v49 }
 0x170   : > { %v449_v19 = vsel %vm446_vm4, %v440_v17, %v367_v33  ;;  %v429_v46 = vsel %vm428_vm2, %v420_v61, %v4052_v52 }
 0x171   : > { %v4108_v36 = vpop.permute.xlu1 %364  ;;  %v438_v17 = vsel %vm437_vm3, %v429_v46, %v339_v8 }
 0x175   : > { %v4110_v38 = vpop.permute.xlu0 %348 }
 0x177   : > { %v4112_v21 = vpop.permute.xlu2 %372 }
 0x179   : > { %v4114_v44 = vpop.permute.xlu1 %370 }
 0x17d   : > { %v363_v45 = vpop.permute.xlu0 %362 }
 0x17f   : > { %v387_v48 = vpop.permute.xlu2 %386 }
 0x181   : > { %v4122_v29 = vpop.permute.xlu1 %376 }
 0x185   : > { %v369_v60 = vpop.permute.xlu0 %368 }
 0x186   : > { %v450_v47 = vsel %vm446_vm4, %v441_v51, %v369_v60  ;;  %v416_v51 = vsel %vm410_vm0, %v3874_v3, %v4017_v39 }
 0x187   : > { %v393_v27 = vpop.permute.xlu2 %392  ;;  %v425_v39 = vsel %vm419_vm1, %v416_v51, %v4024_v41 }
 0x188   : > { %v459_v57 = vsel %vm455_vm5, %v450_v47, %v393_v27 }
 0x189   : > { %v477_v55 = vrot.slane %v459_v57, 1  ;;  %v391_v40 = vpop.permute.xlu1 %390  ;;  %v506_v23 = vrot.slane %v459_v57, 2 }
 0x18a   : > { %v458_v58 = vsel %vm455_vm5, %v449_v19, %v391_v40  ;;  %v412_v40 = vsel %vm410_vm0, %v3865_v62, %v3944_v10  ;;  %v447_v19 = vsel %vm446_vm4, %v438_v17, %v363_v45  ;;  %v415_v62 = vsel %vm410_vm0, %v3876_v5, %v3955_v13 }
 0x18b   : > { %v476_v59 = vrot.slane %v458_v58, 1  ;;  %v505_v50 = vrot.slane %v458_v58, 2  ;;  %v421_v49 = vsel %vm419_vm1, %v412_v40, %v4001_v31  ;;  %v418_v10 = vsel %vm410_vm0, %v3884_v9, %v3975_v6 }
 0x18c   : > { %v430_v27 = vsel %vm428_vm2, %v421_v49, %v317_v4  ;;  %v417_v31 = vsel %vm410_vm0, %v3858_v56, %v3981_v24  ;;  %v424_v3 = vsel %vm419_vm1, %v415_v62, %v4029_v42  ;;  %v427_v4 = vsel %vm419_vm1, %v418_v10, %v4057_v30 }
 0x18d   : > { %v478_v47 = vsel %vm472_vm6, %v476_v59, %v477_v55  ;;  %v4141_v32 = vpop.permute.xlu0 %374  ;;  %v507_v33 = vsel %vm501_vm7, %v505_v50, %v506_v23  ;;  %v439_v5 = vsel %vm437_vm3, %v430_v27, %v4092_v7  ;;  %v456_v13 = vsel %vm455_vm5, %v447_v19, %v387_v48 }
 0x18e   : > { %v495_v20 = vmax.f32 %v458_v58, %v478_v47  ;;  %v426_v56 = vsel %vm419_vm1, %v417_v31, %v4080_v0  ;;  %v434_v9 = vsel %vm428_vm2, %v425_v39, %v4086_v1  ;;  %v448_v6 = vsel %vm446_vm4, %v439_v5, %v4108_v36 }
 0x18f   : > { %v4144_v16 = vpop.permute.xlu2 %398  ;;  %v443_v41 = vsel %vm437_vm3, %v434_v9, %v4110_v38  ;;  %v496_v42 = vmax.f32 %v459_v57, %v477_v55  ;;  %v473_v45 = vrot.slane %v456_v13, 1  ;;  %v433_v36 = vsel %vm428_vm2, %v424_v3, %v4098_v12 }
 0x190   : > { %v524_v11 = vmax.f32 %v495_v20, %v507_v33  ;;  %v436_v38 = vsel %vm428_vm2, %v427_v4, %v4102_v22  ;;  %v435_v57 = vsel %vm428_vm2, %v426_v56, %v4084_v35  ;;  %v502_v58 = vrot.slane %v456_v13, 2 }
 0x191   : > { %v397_v60 = vpop.permute.xlu1 %396  ;;  %v452_v59 = vsel %vm446_vm4, %v443_v41, %v4112_v21  ;;  %v525_v61 = vmax.f32 %v496_v42, %v506_v23  ;;  %v442_v22 = vsel %vm437_vm3, %v433_v36, %v4100_v14  ;;  %v445_v35 = vsel %vm437_vm3, %v436_v38, %v4104_v26 }
 0x192   : > { %v535_v52 = vrot.slane %v524_v11, 1  ;;  %v543_v30 = vrot.slane %v524_v11, 2  ;;  %v461_v47 = vsel %vm455_vm5, %v452_v59, %v397_v60  ;;  %v551_v33 = vrot.slane %v524_v11, 3 }
 0x193   : > { %v444_v23 = vsel %vm437_vm3, %v435_v57, %v4106_v28  ;;  %v451_v46 = vsel %vm446_vm4, %v442_v22, %v4114_v44  ;;  %v480_v49 = vrot.slane %v461_v47, 1  ;;  %v563_v51 = vrot.slane %v525_v61, 4 }
 0x194   : > { %v588_v0 = vsel %vm586_vm8, %v524_v11, %v535_v52  ;;  %v571_v28 = vrot.slane %v525_v61, 5  ;;  %v453_v62 = vsel %vm446_vm4, %v444_v23, %v4141_v32  ;;  %v509_v3 = vrot.slane %v461_v47, 2 }
 0x195   : > { %v389_v24 = vpop.permute.xlu0 %388  ;;  %v593_v12 = vsel %vm591_vm9, %v588_v0, %v543_v30  ;;  %v498_v5 = vmax.f32 %v461_v47, %v480_v49  ;;  %v462_v0 = vsel %vm455_vm5, %v453_v62, %v4144_v16  ;;  %v454_v36 = vsel %vm446_vm4, %v445_v35, %v4122_v29 }
 0x196   : > { %v457_v7 = vsel %vm455_vm5, %v448_v6, %v389_v24  ;;  %v598_v14 = vsel %vm596_vm10, %v593_v12, %v551_v33  ;;  %v482_v16 = vrot.slane %v462_v0, 1  ;;  %v511_v22 = vrot.slane %v462_v0, 2 }
 0x197   : > { %v4190_v8 = vpop.permute.xlu2 %664  ;;  %v474_v48 = vrot.slane %v457_v7, 1  ;;  %v503_v1 = vrot.slane %v457_v7, 2  ;;  %v603_v44 = vsel %vm601_vm11, %v598_v14, %v563_v51  ;;  %v527_v38 = vmax.f32 %v498_v5, %v509_v3 }
 0x198   : > { %v608_v41 = vsel %vm606_vm12, %v603_v44, %v571_v28 }
 0x199   : > { %v4200_v55 = vpop.permute.xlu1 %662  ;;  %v475_v50 = vsel %vm472_vm6, %v473_v45, %v474_v48  ;;  %v494_v15 = vmax.f32 %v457_v7, %v474_v48  ;;  %v504_v21 = vsel %vm501_vm7, %v502_v58, %v503_v1  ;;  %v579_v45 = vrot.slane %v525_v61, 6 }
 0x19a   : > { %v493_v20 = vmax.f32 %v456_v13, %v475_v50  ;;  %v572_v14 = vrot.slane %v527_v38, 5 }
 0x19b   : > { %v523_v26 = vmax.f32 %v494_v15, %v503_v1  ;;  %v612_v59 = vsel %vm501_vm7, %v608_v41, %v579_v45 }
 0x19c   : > { %v522_v40 = vmax.f32 %v493_v20, %v504_v21  ;;  %617 = vst.msk [vmem:[%s4239_s26 + $0x38] sm:$0x7f] %vm615_vm13, %v612_v59  ;;  %v564_v21 = vrot.slane %v527_v38, 4 }
 0x19d   : > { %v395_v11 = vpop.permute.xlu0 %394  ;;  %v562_v13 = vrot.slane %v523_v26, 4  ;;  %v570_v6 = vrot.slane %v523_v26, 5  ;;  %v578_v42 = vrot.slane %v523_v26, 6 }
 0x19e   : > { %v534_v17 = vrot.slane %v522_v40, 1  ;;  %v542_v60 = vrot.slane %v522_v40, 2  ;;  %v460_v27 = vsel %vm455_vm5, %v451_v46, %v395_v11  ;;  %v550_v39 = vrot.slane %v522_v40, 3 }
 0x19f   : > { %v4223_v19 = vpop.permute.xlu2 %670  ;;  %v479_v10 = vrot.slane %v460_v27, 1  ;;  %v508_v31 = vrot.slane %v460_v27, 2  ;;  %v580_v11 = vrot.slane %v527_v38, 6 }
 0x1a0   : > { %v587_v52 = vsel %vm586_vm8, %v522_v40, %v534_v17 }
 0x1a1   : > { %v4230_v4 = vpop.permute.xlu1 %668  ;;  %v592_v56 = vsel %vm591_vm9, %v587_v52, %v542_v60  ;;  %v481_v9 = vsel %vm472_vm6, %v479_v10, %v480_v49  ;;  %v510_v7 = vsel %vm501_vm7, %v508_v31, %v509_v3  ;;  %v687_v52 = vmax.f32 %v4032_v43, %v4190_v8 }
 0x1a2   : > { %v597_v32 = vsel %vm596_vm10, %v592_v56, %v550_v39  ;;  %v497_v24 = vmax.f32 %v460_v27, %v481_v9 }
 0x1a3   : > { %v602_v30 = vsel %vm601_vm11, %v597_v32, %v562_v13 }
 0x1a4   : > { %v607_v48 = vsel %vm606_vm12, %v602_v30, %v570_v6  ;;  %v526_v1 = vmax.f32 %v497_v24, %v510_v7 }
 0x1a5   : > { %v611_v57 = vsel %vm501_vm7, %v607_v48, %v578_v42  ;;  %v401_v58 = vpop.permute.xlu0 %400  ;;  %v690_v48 = vmax.f32 %v4060_v54, %v4223_v19 }
 0x1a6   : > { %616 = vst.msk [vmem:[%s4239_s26] sm:$0x7f] %vm615_vm13, %v611_v57  ;;  %v536_v50 = vrot.slane %v526_v1, 1  ;;  %v544_v15 = vrot.slane %v526_v1, 2  ;;  %v463_v61 = vsel %vm455_vm5, %v454_v36, %v401_v58  ;;  %v552_v29 = vrot.slane %v526_v1, 3 }
 0x1a7   : > { %v677_v12 = vpop.permute.xlu2 %676  ;;  %v483_v47 = vrot.slane %v463_v61, 1  ;;  %v512_v20 = vrot.slane %v463_v61, 2  ;;  %v686_v57 = vmax.f32 %v3966_v18, %v4200_v55  ;;  %v689_v18 = vmax.f32 %v3984_v25, %v4230_v4 }
 0x1a8   : > { %v589_v35 = vsel %vm586_vm8, %v526_v1, %v536_v50  ;;  %v693_v59 = vmax.f32 %v4074_v63, %v677_v12 }
 0x1a9   : > { %v4256_v33 = vpop.permute.xlu1 %674  ;;  %v594_v23 = vsel %vm591_vm9, %v589_v35, %v544_v15  ;;  %v484_v40 = vsel %vm472_vm6, %v482_v16, %v483_v47  ;;  %v500_v46 = vmax.f32 %v463_v61, %v483_v47  ;;  %v513_v17 = vsel %vm501_vm7, %v511_v22, %v512_v20  ;;  %v3469_v16 = vld [vmem:[%s3772_s18 + $0x150] sm:$0xff]  ;;  %v3468_v47 = vld [vmem:[%s3772_s18 + $0x58] sm:$0xff] }
 0x1aa   : > { %v599_v49 = vsel %vm596_vm10, %v594_v23, %v552_v29  ;;  %v499_v26 = vmax.f32 %v462_v0, %v484_v40  ;;  %v692_v63 = vmax.f32 %v4006_v34, %v4256_v33  ;;  %v1095_v22 = vmax.f32 %v4014_v37, %v3469_v16  ;;  %v6451_v29 = vld [vmem:[#allocation8_spill] sm:$0xff]  ;;  %v4411_v33 = vld [vmem:[%s3772_s18 + $0x160] sm:$0xff]  ;;  %v4416_v23 = vld [vmem:[%s3772_s18 + $0x68] sm:$0xff] }
 0x1ab   : > { %v604_v51 = vsel %vm601_vm11, %v599_v49, %v564_v21  ;;  %v529_v62 = vmax.f32 %v500_v46, %v512_v20  ;;  %v1094_v35 = vmax.f32 %v6451_v29, %v3468_v47  ;;  %6452 = vst [vmem:[#allocation8_spill] sm:$0xff] %v4411_v33  ;;  %v3471_v49 = vld [vmem:[%s3772_s18 + $0x250] sm:$0xff] }
 0x1ac   : > { %v609_v60 = vsel %vm606_vm12, %v604_v51, %v572_v14  ;;  %v528_v27 = vmax.f32 %v499_v26, %v513_v17  ;;  %v4421_v46 = vmax.f32 %v1095_v22, %v4411_v33  ;;  %v3472_v14 = vld [vmem:[%s3772_s18 + $0x258] sm:$0xff]  ;;  %v6454_v17 = vld [vmem:[#allocation10_spill] sm:$0xff] }
 0x1ad   : > { %v613_v28 = vsel %vm501_vm7, %v609_v60, %v580_v11  ;;  %v667_v10 = vpop.permute.xlu0 %666  ;;  %v565_v6 = vrot.slane %v529_v62, 4  ;;  %v573_v41 = vrot.slane %v529_v62, 5  ;;  %v4424_v37 = vmax.f32 %v1094_v35, %v4416_v23  ;;  %v6453_v11 = vld [vmem:[#allocation9_spill] sm:$0xff] }
 0x1ae   : > { %618 = vst.msk [vmem:[%s4239_s26 + $0x70] sm:$0x7f] %vm615_vm13, %v613_v28  ;;  %v537_v31 = vrot.slane %v528_v27, 1  ;;  %v545_v44 = vrot.slane %v528_v27, 2  ;;  %v688_v3 = vmax.f32 %v4027_v2, %v667_v10  ;;  %v553_v5 = vrot.slane %v528_v27, 3 }
 0x1af   : > { %v699_v39 = vpop.permute.xlu2 %698  ;;  %v581_v2 = vrot.slane %v529_v62, 6  ;;  %v1098_v51 = vmax.f32 %v6453_v11, %v3472_v14  ;;  %v1097_v60 = vmax.f32 %v6454_v17, %v3471_v49  ;;  %v4444_v62 = vld [vmem:[%s3772_s18 + $0x260] sm:$0xff] }
 0x1b0   : > { %v590_v13 = vsel %vm586_vm8, %v528_v27, %v537_v31  ;;  %v4271_v9 = vmax.f32 %v688_v3, %v699_v39  ;;  %v4439_v27 = vld [vmem:[%s3772_s18 + $0x268] sm:$0xff]  ;;  %6456 = vst [vmem:[#allocation10_spill] sm:$0xff] %v4444_v62  ;;  %v3467_v31 = vld [vmem:[%s3772_s18 + $0x50] sm:$0xff]  ;;  %v6457_v39 = vld [vmem:[#allocation5_spill] sm:$0xff] }
 0x1b1   : > { %v697_v56 = vpop.permute.xlu1 %696  ;;  %v595_v32 = vsel %vm591_vm9, %v590_v13, %v545_v44  ;;  %6455 = vst [vmem:[#allocation9_spill] sm:$0xff] %v4439_v27  ;;  %v4450_v44 = vmax.f32 %v1098_v51, %v4439_v27  ;;  %v4453_v3 = vmax.f32 %v1097_v60, %v4444_v62  ;;  %v4460_v13 = vld [vmem:[%s3772_s18 + $0x60] sm:$0xff] }
 0x1b2   : > { %v4274_v24 = vmax.f32 %v687_v52, %v697_v56  ;;  %v600_v42 = vsel %vm596_vm10, %v595_v32, %v553_v5  ;;  %738 = vrot.lane.b32.xlu1 %v4271_v9, %s3687_s16  ;;  %v1093_v52 = vmax.f32 %v6457_v39, %v3467_v31  ;;  %v3474_v5 = vld [vmem:[%s3772_s18 + $0x358] sm:$0xff] }
 0x1b3   : > { %v605_v43 = vsel %vm601_vm11, %v600_v42, %v565_v6  ;;  %v6458_v6 = vld [vmem:[#allocation11_spill] sm:$0xff] }
 0x1b4   : > { %736 = vrot.lane.b32.xlu0 %v4274_v24, %s3687_s16  ;;  %v610_v8 = vsel %vm606_vm12, %v605_v43, %v573_v41  ;;  %v1100_v32 = vmax.f32 %v6458_v6, %v3474_v5  ;;  %v4472_v42 = vmax.f32 %v1093_v52, %v4460_v13 }
 0x1b5   : > { %v614_v30 = vsel %vm501_vm7, %v610_v8, %v581_v2  ;;  %v673_v7 = vpop.permute.xlu0 %672  ;;  %v4475_v2 = vld [vmem:[%s3772_s18 + $0x368] sm:$0xff]  ;;  %v3470_v8 = vld [vmem:[%s3772_s18 + $0x158] sm:$0xff] }
 0x1b6   : > { %619 = vst.msk [vmem:[%s4239_s26 + $0xa8] sm:$0x7f] %vm615_vm13, %v614_v30  ;;  %v691_v45 = vmax.f32 %v4055_v53, %v673_v7  ;;  %v4481_v30 = vmax.f32 %v1100_v32, %v4475_v2  ;;  %v6460_v7 = vld [vmem:[#allocation6_spill] sm:$0xff] }
 0x1b7   : > { %v705_v0 = vpop.permute.xlu2 %704  ;;  %6459 = vst [vmem:[#allocation5_spill] sm:$0xff] %v4475_v2 }
 0x1b8   : > { %v4289_v36 = vmax.f32 %v691_v45, %v705_v0  ;;  %v1096_v45 = vmax.f32 %v6460_v7, %v3470_v8  ;;  %v4487_v0 = vld [vmem:[%s3772_s18 + $0x168] sm:$0xff] }
 0x1b9   : > { %v703_v1 = vpop.permute.xlu1 %702  ;;  %6461 = vst [vmem:[#allocation11_spill] sm:$0xff] %v4487_v0 }
 0x1ba   : > { %v4291_v38 = vmax.f32 %v690_v48, %v703_v1  ;;  %744 = vrot.lane.b32.xlu1 %v4289_v36, %s3687_s16 }
 0x1bc   : > { %742 = vrot.lane.b32.xlu0 %v4291_v38, %s3687_s16 }
 0x1bd   : > { %v695_v58 = vpop.permute.xlu0 %694 }
 0x1be   : > { %v4299_v53 = vmax.f32 %v686_v57, %v695_v58  ;;  %v4496_v57 = vmax.f32 %v1096_v45, %v4487_v0 }
 0x1c0   : > { %734 = vrot.lane.b32.xlu2 %v4299_v53, %s3687_s16 }
 0x1c1   : > { %v709_v54 = vpop.permute.xlu1 %708 }
 0x1c2   : > { %v4304_v19 = vmax.f32 %v693_v59, %v709_v54  ;;  %758 = vrot.lane.b32.xlu1 %v4299_v53, %s3688_s19  ;;  %v3473_v59 = vld [vmem:[%s3772_s18 + $0x350] sm:$0xff] }
 0x1c3   : > { %v6462_v54 = vld [vmem:[#allocation7_spill] sm:$0xff] }
 0x1c4   : > { %748 = vrot.lane.b32.xlu0 %v4304_v19, %s3687_s16 }
 0x1c5   : > { %v701_v55 = vpop.permute.xlu0 %700 }
 0x1c6   : > { %v4312_v50 = vmax.f32 %v689_v18, %v701_v55  ;;  %v1099_v18 = vmax.f32 %v6462_v54, %v3473_v59  ;;  %v4505_v55 = vld [vmem:[%s3772_s18 + $0x360] sm:$0xff] }
 0x1c7   : > { %6463 = vst [vmem:[#allocation6_spill] sm:$0xff] %v4505_v55 }
 0x1c8   : > { %740 = vrot.lane.b32.xlu2 %v4312_v50, %s3687_s16  ;;  %v4512_v16 = vmax.f32 %v1099_v18, %v4505_v55 }
 0x1ca   : > { %764 = vrot.lane.b32.xlu1 %v4312_v50, %s3688_s19 }
 0x1cc   : > { %762 = vrot.lane.b32.xlu0 %v4271_v9, %s3688_s19 }
 0x1cd   : > { %v707_v15 = vpop.permute.xlu0 %706 }
 0x1ce   : > { %v4322_v61 = vmax.f32 %v692_v63, %v707_v15 }
 0x1d0   : > { %746 = vrot.lane.b32.xlu2 %v4322_v61, %s3687_s16 }
 0x1d2   : > { %770 = vrot.lane.b32.xlu1 %v4322_v61, %s3688_s19 }
 0x1d4   : > { %768 = vrot.lane.b32.xlu0 %v4289_v36, %s3688_s19 }
 0x1d8   : > { %760 = vrot.lane.b32.xlu2 %v4274_v24, %s3688_s19 }
 0x1da   : > { %784 = vrot.lane.b32.xlu1 %v4274_v24, %s3689_s20 }
 0x1dc   : > { %782 = vrot.lane.b32.xlu0 %v4299_v53, %s3689_s20 }
 0x1e0   : > { %766 = vrot.lane.b32.xlu2 %v4291_v38, %s3688_s19 }
 0x1e2   : > { %790 = vrot.lane.b32.xlu1 %v4291_v38, %s3689_s20 }
 0x1e4   : > { %788 = vrot.lane.b32.xlu0 %v4312_v50, %s3689_s20 }
 0x1e8   : > { %772 = vrot.lane.b32.xlu2 %v4304_v19, %s3688_s19 }
 0x1ea   : > { %796 = vrot.lane.b32.xlu1 %v4304_v19, %s3689_s20 }
 0x1ec   : > { %794 = vrot.lane.b32.xlu0 %v4322_v61, %s3689_s20 }
 0x1f0   : > { %786 = vrot.lane.b32.xlu2 %v4271_v9, %s3689_s20 }
 0x1f2   : > { %810 = vrot.lane.b32.xlu1 %v4271_v9, %s3690_s21 }
 0x1f4   : > { %808 = vrot.lane.b32.xlu0 %v4274_v24, %s3690_s21 }
 0x1f8   : > { %792 = vrot.lane.b32.xlu2 %v4289_v36, %s3689_s20 }
 0x1fa   : > { %816 = vrot.lane.b32.xlu1 %v4289_v36, %s3690_s21 }
 0x1fc   : > { %814 = vrot.lane.b32.xlu0 %v4291_v38, %s3690_s21 }
 0x200   : > { %806 = vrot.lane.b32.xlu2 %v4299_v53, %s3690_s21 }
 0x202   : > { %830 = vrot.lane.b32.xlu1 %v4299_v53, %s3691_s22 }
 0x204   : > { %820 = vrot.lane.b32.xlu0 %v4304_v19, %s3690_s21 }
 0x208   : > { %812 = vrot.lane.b32.xlu2 %v4312_v50, %s3690_s21 }
 0x20a   : > { %836 = vrot.lane.b32.xlu1 %v4312_v50, %s3691_s22 }
 0x20c   : > { %834 = vrot.lane.b32.xlu0 %v4271_v9, %s3691_s22 }
 0x210   : > { %818 = vrot.lane.b32.xlu2 %v4322_v61, %s3690_s21 }
 0x212   : > { %842 = vrot.lane.b32.xlu1 %v4322_v61, %s3691_s22 }
 0x214   : > { %840 = vrot.lane.b32.xlu0 %v4289_v36, %s3691_s22 }
 0x218   : > { %832 = vrot.lane.b32.xlu2 %v4274_v24, %s3691_s22 }
 0x21a   : > { %v4380_v25 = vpop.permute.xlu2 %734  ;;  %856 = vrot.lane.b32.xlu1 %v4274_v24, %s3692_s23 }
 0x21b   : > { %v878_v27 = vsel %vm410_vm0, %v4299_v53, %v4380_v25 }
 0x21c   : > { %854 = vrot.lane.b32.xlu0 %v4299_v53, %s3692_s23 }
 0x220   : > { %838 = vrot.lane.b32.xlu2 %v4291_v38, %s3691_s22 }
 0x222   : > { %v4388_v34 = vpop.permute.xlu2 %740  ;;  %862 = vrot.lane.b32.xlu1 %v4291_v38, %s3692_s23 }
 0x223   : > { %v881_v2 = vsel %vm410_vm0, %v4312_v50, %v4388_v34 }
 0x224   : > { %860 = vrot.lane.b32.xlu0 %v4312_v50, %s3692_s23  ;;  %v4394_v4 = vpop.permute.xlu1 %738 }
 0x225   : > { %v880_v33 = vsel %vm410_vm0, %v4271_v9, %v4394_v4 }
 0x226   : > { %v4396_v12 = vpop.permute.xlu0 %736 }
 0x227   : > { %v879_v55 = vsel %vm410_vm0, %v4274_v24, %v4396_v12 }
 0x228   : > { %844 = vrot.lane.b32.xlu2 %v4304_v19, %s3691_s22 }
 0x22a   : > { %868 = vrot.lane.b32.xlu1 %v4304_v19, %s3692_s23  ;;  %v4404_v20 = vpop.permute.xlu2 %746 }
 0x22b   : > { %v884_v0 = vsel %vm410_vm0, %v4322_v61, %v4404_v20 }
 0x22c   : > { %866 = vrot.lane.b32.xlu0 %v4322_v61, %s3692_s23  ;;  %v4413_v21 = vpop.permute.xlu1 %744 }
 0x22d   : > { %v883_v53 = vsel %vm410_vm0, %v4289_v36, %v4413_v21 }
 0x22e   : > { %v4418_v40 = vpop.permute.xlu0 %742 }
 0x22f   : > { %v882_v24 = vsel %vm410_vm0, %v4291_v38, %v4418_v40 }
 0x230   : > { %858 = vrot.lane.b32.xlu2 %v4271_v9, %s3692_s23 }
 0x232   : > { %1121 = vrot.lane.b32.xlu1 %v4421_v46, %s3687_s16  ;;  %v4432_v26 = vpop.permute.xlu2 %760 }
 0x233   : > { %v887_v62 = vsel %vm419_vm1, %v879_v55, %v4432_v26 }
 0x234   : > { %1119 = vrot.lane.b32.xlu0 %v4424_v37, %s3687_s16  ;;  %v4441_v28 = vpop.permute.xlu1 %758 }
 0x235   : > { %v886_v50 = vsel %vm419_vm1, %v878_v27, %v4441_v28 }
 0x236   : > { %v4446_v10 = vpop.permute.xlu0 %748 }
 0x237   : > { %v885_v61 = vsel %vm410_vm0, %v4304_v19, %v4446_v10 }
 0x238   : > { %864 = vrot.lane.b32.xlu2 %v4289_v36, %s3692_s23 }
 0x23a   : > { %1127 = vrot.lane.b32.xlu1 %v4450_v44, %s3687_s16  ;;  %v4464_v56 = vpop.permute.xlu2 %766 }
 0x23b   : > { %v890_v34 = vsel %vm419_vm1, %v882_v24, %v4464_v56 }
 0x23c   : > { %1125 = vrot.lane.b32.xlu0 %v4453_v3, %s3687_s16  ;;  %v4469_v41 = vpop.permute.xlu1 %764 }
 0x23d   : > { %v889_v38 = vsel %vm419_vm1, %v881_v2, %v4469_v41 }
 0x23e   : > { %v4477_v43 = vpop.permute.xlu0 %762 }
 0x23f   : > { %v888_v12 = vsel %vm419_vm1, %v880_v33, %v4477_v43 }
 0x240   : > { %1117 = vrot.lane.b32.xlu2 %v4472_v42, %s3687_s16 }
 0x242   : > { %1149 = vrot.lane.b32.xlu1 %v4472_v42, %s3688_s19  ;;  %v4491_v48 = vpop.permute.xlu2 %772 }
 0x243   : > { %v893_v19 = vsel %vm419_vm1, %v885_v61, %v4491_v48 }
 0x244   : > { %1131 = vrot.lane.b32.xlu0 %v4481_v30, %s3687_s16  ;;  %v771_v1 = vpop.permute.xlu1 %770 }
 0x245   : > { %v892_v26 = vsel %vm419_vm1, %v884_v0, %v771_v1 }
 0x246   : > { %v4498_v58 = vpop.permute.xlu0 %768 }
 0x247   : > { %v891_v10 = vsel %vm419_vm1, %v883_v53, %v4498_v58 }
 0x248   : > { %1123 = vrot.lane.b32.xlu2 %v4496_v57, %s3687_s16 }
 0x24a   : > { %1155 = vrot.lane.b32.xlu1 %v4496_v57, %s3688_s19  ;;  %v787_v63 = vpop.permute.xlu2 %786 }
 0x24b   : > { %v896_v33 = vsel %vm428_vm2, %v888_v12, %v787_v63 }
 0x24c   : > { %1153 = vrot.lane.b32.xlu0 %v4421_v46, %s3688_s19  ;;  %v785_v15 = vpop.permute.xlu1 %784 }
 0x24d   : > { %v895_v9 = vsel %vm428_vm2, %v887_v62, %v785_v15 }
 0x24e   : > { %v783_v47 = vpop.permute.xlu0 %782 }
 0x24f   : > { %v894_v4 = vsel %vm428_vm2, %v886_v50, %v783_v47 }
 0x250   : > { %1129 = vrot.lane.b32.xlu2 %v4512_v16, %s3687_s16 }
 0x252   : > { %1161 = vrot.lane.b32.xlu1 %v4512_v16, %s3688_s19  ;;  %v793_v22 = vpop.permute.xlu2 %792 }
 0x253   : > { %v899_v2 = vsel %vm428_vm2, %v891_v10, %v793_v22 }
 0x254   : > { %1159 = vrot.lane.b32.xlu0 %v4450_v44, %s3688_s19  ;;  %v791_v29 = vpop.permute.xlu1 %790 }
 0x255   : > { %v898_v0 = vsel %vm428_vm2, %v890_v34, %v791_v29 }
 0x256   : > { %v789_v35 = vpop.permute.xlu0 %788 }
 0x257   : > { %v897_v1 = vsel %vm428_vm2, %v889_v38, %v789_v35 }
 0x258   : > { %1151 = vrot.lane.b32.xlu2 %v4424_v37, %s3688_s19 }
 0x25a   : > { %v807_v14 = vpop.permute.xlu2 %806 }
 0x25b   : > { %v902_v20 = vsel %vm437_vm3, %v894_v4, %v807_v14 }
 0x25c   : > { %v797_v49 = vpop.permute.xlu1 %796 }
 0x25d   : > { %v901_v14 = vsel %vm428_vm2, %v893_v19, %v797_v49 }
 0x25e   : > { %v795_v11 = vpop.permute.xlu0 %794 }
 0x25f   : > { %v900_v22 = vsel %vm428_vm2, %v892_v26, %v795_v11 }
 0x260   : > { %1157 = vrot.lane.b32.xlu2 %v4453_v3, %s3688_s19 }
 0x262   : > { %v4524_v51 = vpop.permute.xlu2 %812 }
 0x264   : > { %v811_v17 = vpop.permute.xlu1 %810 }
 0x265   : > { %v904_v15 = vsel %vm437_vm3, %v896_v33, %v811_v17 }
 0x266   : > { %v809_v60 = vpop.permute.xlu0 %808 }
 0x267   : > { %v903_v36 = vsel %vm437_vm3, %v895_v9, %v809_v60 }
 0x268   : > { %1163 = vrot.lane.b32.xlu2 %v4481_v30, %s3688_s19 }
 0x26a   : > { %v4528_v31 = vpop.permute.xlu2 %818 }
 0x26c   : > { %v817_v39 = vpop.permute.xlu1 %816 }
 0x26d   : > { %v907_v58 = vsel %vm437_vm3, %v899_v2, %v817_v39  ;;  %v905_v39 = vsel %vm437_vm3, %v897_v1, %v4524_v51 }
 0x26e   : > { %v815_v52 = vpop.permute.xlu0 %814 }
 0x26f   : > { %v906_v35 = vsel %vm437_vm3, %v898_v0, %v815_v52 }
 0x272   : > { %v833_v5 = vpop.permute.xlu2 %832 }
 0x273   : > { %v911_v21 = vsel %vm446_vm4, %v903_v36, %v833_v5 }
 0x274   : > { %v831_v6 = vpop.permute.xlu1 %830 }
 0x275   : > { %v910_v27 = vsel %vm446_vm4, %v902_v20, %v831_v6 }
 0x276   : > { %v821_v32 = vpop.permute.xlu0 %820 }
 0x27a   : > { %v839_v8 = vpop.permute.xlu2 %838 }
 0x27b   : > { %v914_v11 = vsel %vm446_vm4, %v906_v35, %v839_v8  ;;  %v908_v35 = vsel %vm437_vm3, %v900_v22, %v4528_v31 }
 0x27c   : > { %v837_v7 = vpop.permute.xlu1 %836 }
 0x27d   : > { %v913_v9 = vsel %vm446_vm4, %v905_v39, %v837_v7 }
 0x27e   : > { %v835_v45 = vpop.permute.xlu0 %834 }
 0x27f   : > { %v912_v63 = vsel %vm446_vm4, %v904_v15, %v835_v45  ;;  %v909_v45 = vsel %vm437_vm3, %v901_v14, %v821_v32 }
 0x282   : > { %v4530_v59 = vpop.permute.xlu2 %844 }
 0x283   : > { %v917_v1 = vsel %vm446_vm4, %v909_v45, %v4530_v59 }
 0x284   : > { %v4532_v54 = vpop.permute.xlu1 %842 }
 0x286   : > { %v841_v18 = vpop.permute.xlu0 %840 }
 0x287   : > { %v915_v5 = vsel %vm446_vm4, %v907_v58, %v841_v18 }
 0x28a   : > { %v859_v25 = vpop.permute.xlu2 %858 }
 0x28b   : > { %v920_v6 = vsel %vm455_vm5, %v912_v63, %v859_v25 }
 0x28c   : > { %v857_v40 = vpop.permute.xlu1 %856  ;;  %v937_v25 = vrot.slane %v920_v6, 1  ;;  %v965_v4 = vrot.slane %v920_v6, 2 }
 0x28d   : > { %v919_v28 = vsel %vm455_vm5, %v911_v21, %v857_v40 }
 0x28e   : > { %v855_v62 = vpop.permute.xlu0 %854  ;;  %v935_v56 = vrot.slane %v919_v28, 1  ;;  %v963_v43 = vrot.slane %v919_v28, 2 }
 0x28f   : > { %v918_v41 = vsel %vm455_vm5, %v910_v27, %v855_v62 }
 0x290   : > { %v934_v55 = vrot.slane %v918_v41, 1  ;;  %v962_v48 = vrot.slane %v918_v41, 2  ;;  %v955_v47 = vmax.f32 %v919_v28, %v935_v56 }
 0x292   : > { %v936_v60 = vsel %vm472_vm6, %v934_v55, %v935_v56  ;;  %v865_v53 = vpop.permute.xlu2 %864  ;;  %v983_v17 = vmax.f32 %v955_v47, %v963_v43  ;;  %v964_v24 = vsel %vm501_vm7, %v962_v48, %v963_v43 }
 0x293   : > { %v954_v29 = vmax.f32 %v918_v41, %v936_v60  ;;  %v923_v49 = vsel %vm455_vm5, %v915_v5, %v865_v53 }
 0x294   : > { %v863_v18 = vpop.permute.xlu1 %862  ;;  %v941_v61 = vrot.slane %v923_v49, 1  ;;  %v1022_v20 = vrot.slane %v983_v17, 4  ;;  %v969_v27 = vrot.slane %v923_v49, 2  ;;  %v1030_v10 = vrot.slane %v983_v17, 5 }
 0x295   : > { %v982_v50 = vmax.f32 %v954_v29, %v964_v24  ;;  %v922_v52 = vsel %vm455_vm5, %v914_v11, %v863_v18  ;;  %v1038_v43 = vrot.slane %v983_v17, 6 }
 0x296   : > { %v861_v34 = vpop.permute.xlu0 %860  ;;  %v940_v12 = vrot.slane %v922_v52, 1  ;;  %v959_v21 = vmax.f32 %v923_v49, %v941_v61  ;;  %v968_v51 = vrot.slane %v922_v52, 2 }
 0x297   : > { %v994_v36 = vrot.slane %v982_v50, 1  ;;  %v1002_v38 = vrot.slane %v982_v50, 2  ;;  %v921_v32 = vsel %vm455_vm5, %v913_v9, %v861_v34  ;;  %v1010_v40 = vrot.slane %v982_v50, 3 }
 0x298   : > { %v942_v19 = vsel %vm472_vm6, %v940_v12, %v941_v61  ;;  %v938_v7 = vrot.slane %v921_v32, 1  ;;  %v966_v62 = vrot.slane %v921_v32, 2  ;;  %v987_v48 = vmax.f32 %v959_v21, %v969_v27 }
 0x299   : > { %v1046_v8 = vsel %vm586_vm8, %v982_v50, %v994_v36  ;;  %v958_v28 = vmax.f32 %v922_v52, %v942_v19  ;;  %v970_v0 = vsel %vm501_vm7, %v968_v51, %v969_v27 }
 0x29a   : > { %v1050_v26 = vsel %vm591_vm9, %v1046_v8, %v1002_v38  ;;  %v939_v56 = vsel %vm472_vm6, %v937_v25, %v938_v7  ;;  %v957_v41 = vmax.f32 %v921_v32, %v938_v7  ;;  %v4608_v2 = vpop.permute.xlu2 %1117  ;;  %v967_v60 = vsel %vm501_vm7, %v965_v4, %v966_v62 }
 0x29b   : > { %v1054_v33 = vsel %vm596_vm10, %v1050_v26, %v1010_v40  ;;  %v986_v47 = vmax.f32 %v958_v28, %v970_v0  ;;  %v956_v14 = vmax.f32 %v920_v6, %v939_v56  ;;  %v916_v6 = vsel %vm446_vm4, %v908_v35, %v4532_v54 }
 0x29c   : > { %v1058_v55 = vsel %vm601_vm11, %v1054_v33, %v1022_v20  ;;  %v869_v58 = vpop.permute.xlu1 %868  ;;  %v985_v5 = vmax.f32 %v957_v41, %v966_v62  ;;  %v1024_v49 = vrot.slane %v987_v48, 4  ;;  %v1032_v39 = vrot.slane %v987_v48, 5 }
 0x29d   : > { %v1062_v15 = vsel %vm606_vm12, %v1058_v55, %v1030_v10  ;;  %v925_v29 = vsel %vm455_vm5, %v917_v1, %v869_v58  ;;  %v996_v17 = vrot.slane %v986_v47, 1  ;;  %v1004_v59 = vrot.slane %v986_v47, 2 }
 0x29e   : > { %v1066_v63 = vsel %vm501_vm7, %v1062_v15, %v1038_v43  ;;  %v867_v53 = vpop.permute.xlu0 %866  ;;  %v984_v24 = vmax.f32 %v956_v14, %v967_v60  ;;  %v1012_v45 = vrot.slane %v986_v47, 3  ;;  %v944_v9 = vrot.slane %v925_v29, 1 }
 0x29f   : > { %3463 = vst.msk [vmem:[%s4239_s26 + $0x8] sm:$0x7f] %vm615_vm13, %v1066_v63  ;;  %v1048_v11 = vsel %vm586_vm8, %v986_v47, %v996_v17  ;;  %v1040_v25 = vrot.slane %v987_v48, 6  ;;  %v1023_v31 = vrot.slane %v985_v5, 4  ;;  %v924_v22 = vsel %vm455_vm5, %v916_v6, %v867_v53 }
 0x2a0   : > { %v995_v50 = vrot.slane %v984_v24, 1  ;;  %v1003_v18 = vrot.slane %v984_v24, 2  ;;  %v1052_v61 = vsel %vm591_vm9, %v1048_v11, %v1004_v59  ;;  %v1011_v34 = vrot.slane %v984_v24, 3 }
 0x2a1   : > { %v1056_v52 = vsel %vm596_vm10, %v1052_v61, %v1012_v45  ;;  %v943_v54 = vrot.slane %v924_v22, 1  ;;  %v972_v20 = vrot.slane %v925_v29, 2  ;;  %v971_v21 = vrot.slane %v924_v22, 2 }
 0x2a2   : > { %v1047_v4 = vsel %vm586_vm8, %v984_v24, %v995_v50  ;;  %v1124_v36 = vpop.permute.xlu2 %1123  ;;  %v1060_v38 = vsel %vm601_vm11, %v1056_v52, %v1024_v49  ;;  %v1031_v32 = vrot.slane %v985_v5, 5  ;;  %v1039_v7 = vrot.slane %v985_v5, 6 }
 0x2a3   : > { %v1051_v12 = vsel %vm591_vm9, %v1047_v4, %v1003_v18  ;;  %v1064_v51 = vsel %vm606_vm12, %v1060_v38, %v1032_v39  ;;  %v945_v8 = vsel %vm472_vm6, %v943_v54, %v944_v9  ;;  %v961_v27 = vmax.f32 %v925_v29, %v944_v9 }
 0x2a4   : > { %v1055_v40 = vsel %vm596_vm10, %v1051_v12, %v1011_v34  ;;  %v1122_v19 = vpop.permute.xlu1 %1121  ;;  %v1068_v62 = vsel %vm501_vm7, %v1064_v51, %v1040_v25  ;;  %v960_v33 = vmax.f32 %v924_v22, %v945_v8  ;;  %v973_v41 = vsel %vm501_vm7, %v971_v21, %v972_v20  ;;  %v3487_v51 = vld [vmem:[%s3772_s18 + $0x70] sm:$0xff] }
 0x2a5   : > { %v1059_v26 = vsel %vm601_vm11, %v1055_v40, %v1023_v31  ;;  %3465 = vst.msk [vmem:[%s4239_s26 + $0x78] sm:$0x7f] %vm615_vm13, %v1068_v62  ;;  %v989_v55 = vmax.f32 %v961_v27, %v972_v20  ;;  %v1141_v49 = vmax.f32 %v4472_v42, %v4608_v2  ;;  %v1144_v9 = vmax.f32 %v4496_v57, %v1124_v36  ;;  %v3488_v20 = vld [vmem:[%s3772_s18 + $0x78] sm:$0xff]  ;;  %v4780_v40 = vld [vmem:[%s3772_s18 + $0x88] sm:$0xff]  ;;  %v3491_v27 = vld [vmem:[%s3772_s18 + $0x270] sm:$0xff] }
 0x2a6   : > { %v1120_v28 = vpop.permute.xlu0 %1119  ;;  %v1063_v10 = vsel %vm606_vm12, %v1059_v26, %v1031_v32  ;;  %v988_v43 = vmax.f32 %v960_v33, %v973_v41  ;;  %v1143_v42 = vmax.f32 %v4421_v46, %v1122_v19  ;;  %v1549_v32 = vmax.f32 %v4416_v23, %v3488_v20  ;;  %6464 = vst [vmem:[#allocation7_spill] sm:$0xff] %v4780_v40  ;;  %v3490_v62 = vld [vmem:[%s3772_s18 + $0x178] sm:$0xff]  ;;  %v6465_v33 = vld [vmem:[#allocation10_spill] sm:$0xff]  ;;  %v4809_v41 = vld [vmem:[%s3772_s18 + $0x280] sm:$0xff] }
 0x2a7   : > { %v1067_v56 = vsel %vm501_vm7, %v1063_v10, %v1039_v7  ;;  %v1025_v58 = vrot.slane %v989_v55, 4  ;;  %v1033_v5 = vrot.slane %v989_v55, 5  ;;  %v1041_v53 = vrot.slane %v989_v55, 6  ;;  %v4790_v7 = vld [vmem:[%s3772_s18 + $0x80] sm:$0xff]  ;;  %v3489_v10 = vld [vmem:[%s3772_s18 + $0x170] sm:$0xff]  ;;  %6466 = vst [vmem:[#allocation10_spill] sm:$0xff] %v4809_v41 }
 0x2a8   : > { %3464 = vst.msk [vmem:[%s4239_s26 + $0x40] sm:$0x7f] %vm615_vm13, %v1067_v56  ;;  %v997_v48 = vrot.slane %v988_v43, 1  ;;  %v1005_v0 = vrot.slane %v988_v43, 2  ;;  %v1013_v15 = vrot.slane %v988_v43, 3  ;;  %v1142_v17 = vmax.f32 %v4424_v37, %v1120_v28 }
 0x2a9   : > { %v1548_v8 = vmax.f32 %v4460_v13, %v3487_v51  ;;  %v4795_v26 = vmax.f32 %v1549_v32, %v4780_v40  ;;  %v1552_v56 = vmax.f32 %v6465_v33, %v3491_v27 }
 0x2aa   : > { %v1130_v1 = vpop.permute.xlu2 %1129  ;;  %v1049_v47 = vsel %vm586_vm8, %v988_v43, %v997_v48  ;;  %v6467_v43 = vld [vmem:[#allocation11_spill] sm:$0xff] }
 0x2ab   : > { %v1053_v63 = vsel %vm591_vm9, %v1049_v47, %v1005_v0  ;;  %v1147_v46 = vmax.f32 %v4512_v16, %v1130_v1  ;;  %v4801_v13 = vmax.f32 %v1548_v8, %v4790_v7  ;;  %v1551_v55 = vmax.f32 %v6467_v43, %v3490_v62  ;;  %v6468_v0 = vld [vmem:[#allocation8_spill] sm:$0xff] }
 0x2ac   : > { %v1128_v14 = vpop.permute.xlu1 %1127  ;;  %v1057_v29 = vsel %vm596_vm10, %v1053_v63, %v1013_v15  ;;  %v1550_v1 = vmax.f32 %v6468_v0, %v3489_v10  ;;  %v4820_v15 = vld [vmem:[%s3772_s18 + $0x188] sm:$0xff]  ;;  %v3494_v63 = vld [vmem:[%s3772_s18 + $0x378] sm:$0xff] }
 0x2ad   : > { %v1061_v35 = vsel %vm601_vm11, %v1057_v29, %v1025_v58  ;;  %v1146_v34 = vmax.f32 %v4450_v44, %v1128_v14  ;;  %6469 = vst [vmem:[#allocation11_spill] sm:$0xff] %v4820_v15  ;;  %v4825_v14 = vmax.f32 %v1552_v56, %v4809_v41  ;;  %v4828_v58 = vld [vmem:[%s3772_s18 + $0x180] sm:$0xff]  ;;  %v3493_v29 = vld [vmem:[%s3772_s18 + $0x370] sm:$0xff] }
 0x2ae   : > { %v1126_v60 = vpop.permute.xlu0 %1125  ;;  %v1065_v59 = vsel %vm606_vm12, %v1061_v35, %v1033_v5  ;;  %6470 = vst [vmem:[#allocation8_spill] sm:$0xff] %v4828_v58  ;;  %v4834_v5 = vmax.f32 %v1551_v55, %v4820_v15  ;;  %v3492_v35 = vld [vmem:[%s3772_s18 + $0x278] sm:$0xff] }
 0x2af   : > { %v1069_v24 = vsel %vm501_vm7, %v1065_v59, %v1041_v53  ;;  %v1145_v37 = vmax.f32 %v4453_v3, %v1126_v60  ;;  %v4838_v53 = vmax.f32 %v1550_v1, %v4828_v58 }
 0x2b0   : > { %3466 = vst.msk [vmem:[%s4239_s26 + $0xb0] sm:$0x7f] %vm615_vm13, %v1069_v24  ;;  %v4845_v24 = vld [vmem:[%s3772_s18 + $0x388] sm:$0xff] }
 0x2b2   : > { %v1152_v6 = vpop.permute.xlu2 %1151 }
 0x2b3   : > { %v4654_v39 = vmax.f32 %v1142_v17, %v1152_v6  ;;  %v6471_v17 = vld [vmem:[#allocation5_spill] sm:$0xff]  ;;  %v6473_v6 = vld [vmem:[#allocation6_spill] sm:$0xff] }
 0x2b4   : > { %v1150_v45 = vpop.permute.xlu1 %1149  ;;  %v1555_v59 = vmax.f32 %v6471_v17, %v3494_v63  ;;  %6472 = vst [vmem:[#allocation5_spill] sm:$0xff] %v4845_v24 }
 0x2b5   : > { %v4656_v11 = vmax.f32 %v1141_v49, %v1150_v45  ;;  %1191 = vrot.lane.b32.xlu1 %v4654_v39, %s3687_s16  ;;  %v1554_v49 = vmax.f32 %v6473_v6, %v3493_v29 }
 0x2b6   : > { %v1132_v50 = vpop.permute.xlu0 %1131 }
 0x2b7   : > { %1189 = vrot.lane.b32.xlu0 %v4656_v11, %s3687_s16  ;;  %v1148_v3 = vmax.f32 %v4481_v30, %v1132_v50  ;;  %v6474_v50 = vld [vmem:[#allocation9_spill] sm:$0xff] }
 0x2ba   : > { %v1158_v18 = vpop.permute.xlu2 %1157 }
 0x2bb   : > { %v4664_v25 = vmax.f32 %v1145_v37, %v1158_v18  ;;  %v1553_v37 = vmax.f32 %v6474_v50, %v3492_v35  ;;  %v4856_v18 = vld [vmem:[%s3772_s18 + $0x380] sm:$0xff] }
 0x2bc   : > { %v1156_v2 = vpop.permute.xlu1 %1155  ;;  %6475 = vst [vmem:[#allocation6_spill] sm:$0xff] %v4856_v18 }
 0x2bd   : > { %v4667_v61 = vmax.f32 %v1144_v9, %v1156_v2  ;;  %1197 = vrot.lane.b32.xlu1 %v4664_v25, %s3687_s16  ;;  %v4862_v2 = vld [vmem:[%s3772_s18 + $0x288] sm:$0xff] }
 0x2be   : > { %v1154_v31 = vpop.permute.xlu0 %1153  ;;  %6476 = vst [vmem:[#allocation9_spill] sm:$0xff] %v4862_v2 }
 0x2bf   : > { %v4671_v22 = vmax.f32 %v1143_v42, %v1154_v31  ;;  %1195 = vrot.lane.b32.xlu0 %v4667_v61, %s3687_s16  ;;  %v4859_v42 = vmax.f32 %v1555_v59, %v4845_v24 }
 0x2c1   : > { %1193 = vrot.lane.b32.xlu2 %v4671_v22, %s3687_s16 }
 0x2c2   : > { %v1164_v57 = vpop.permute.xlu2 %1163 }
 0x2c3   : > { %v4679_v52 = vmax.f32 %v1148_v3, %v1164_v57  ;;  %v4865_v3 = vmax.f32 %v1554_v49, %v4856_v18  ;;  %v4868_v57 = vmax.f32 %v1553_v37, %v4862_v2 }
 0x2c4   : > { %v1162_v4 = vpop.permute.xlu1 %1161 }
 0x2c5   : > { %v4682_v54 = vmax.f32 %v1147_v46, %v1162_v4  ;;  %1203 = vrot.lane.b32.xlu1 %v4679_v52, %s3687_s16 }
 0x2c6   : > { %v1160_v36 = vpop.permute.xlu0 %1159 }
 0x2c7   : > { %v4686_v30 = vmax.f32 %v1146_v34, %v1160_v36  ;;  %1201 = vrot.lane.b32.xlu0 %v4682_v54, %s3687_s16 }
 0x2c9   : > { %1199 = vrot.lane.b32.xlu2 %v4686_v30, %s3687_s16 }
 0x2cd   : > { %1217 = vrot.lane.b32.xlu1 %v4671_v22, %s3688_s19 }
 0x2cf   : > { %1215 = vrot.lane.b32.xlu0 %v4654_v39, %s3688_s19 }
 0x2d1   : > { %1213 = vrot.lane.b32.xlu2 %v4656_v11, %s3688_s19 }
 0x2d5   : > { %1223 = vrot.lane.b32.xlu1 %v4686_v30, %s3688_s19 }
 0x2d7   : > { %1221 = vrot.lane.b32.xlu0 %v4664_v25, %s3688_s19 }
 0x2d9   : > { %1219 = vrot.lane.b32.xlu2 %v4667_v61, %s3688_s19 }
 0x2dd   : > { %1237 = vrot.lane.b32.xlu1 %v4656_v11, %s3689_s20 }
 0x2df   : > { %1227 = vrot.lane.b32.xlu0 %v4679_v52, %s3688_s19 }
 0x2e1   : > { %1225 = vrot.lane.b32.xlu2 %v4682_v54, %s3688_s19 }
 0x2e5   : > { %1243 = vrot.lane.b32.xlu1 %v4667_v61, %s3689_s20 }
 0x2e7   : > { %1241 = vrot.lane.b32.xlu0 %v4671_v22, %s3689_s20 }
 0x2e9   : > { %1239 = vrot.lane.b32.xlu2 %v4654_v39, %s3689_s20 }
 0x2ed   : > { %1249 = vrot.lane.b32.xlu1 %v4682_v54, %s3689_s20 }
 0x2ef   : > { %1247 = vrot.lane.b32.xlu0 %v4686_v30, %s3689_s20 }
 0x2f1   : > { %1245 = vrot.lane.b32.xlu2 %v4664_v25, %s3689_s20 }
 0x2f5   : > { %1263 = vrot.lane.b32.xlu1 %v4654_v39, %s3690_s21 }
 0x2f7   : > { %1261 = vrot.lane.b32.xlu0 %v4656_v11, %s3690_s21 }
 0x2f9   : > { %1251 = vrot.lane.b32.xlu2 %v4679_v52, %s3689_s20 }
 0x2fd   : > { %1269 = vrot.lane.b32.xlu1 %v4664_v25, %s3690_s21 }
 0x2ff   : > { %1267 = vrot.lane.b32.xlu0 %v4667_v61, %s3690_s21 }
 0x301   : > { %1265 = vrot.lane.b32.xlu2 %v4671_v22, %s3690_s21 }
 0x305   : > { %1275 = vrot.lane.b32.xlu1 %v4679_v52, %s3690_s21 }
 0x307   : > { %1273 = vrot.lane.b32.xlu0 %v4682_v54, %s3690_s21 }
 0x309   : > { %1271 = vrot.lane.b32.xlu2 %v4686_v30, %s3690_s21 }
 0x30d   : > { %1289 = vrot.lane.b32.xlu1 %v4671_v22, %s3691_s22 }
 0x30f   : > { %1287 = vrot.lane.b32.xlu0 %v4654_v39, %s3691_s22 }
 0x311   : > { %1285 = vrot.lane.b32.xlu2 %v4656_v11, %s3691_s22 }
 0x315   : > { %1295 = vrot.lane.b32.xlu1 %v4686_v30, %s3691_s22 }
 0x317   : > { %1293 = vrot.lane.b32.xlu0 %v4664_v25, %s3691_s22 }
 0x319   : > { %1291 = vrot.lane.b32.xlu2 %v4667_v61, %s3691_s22 }
 0x31b   : > { %v4752_v44 = vpop.permute.xlu2 %1193 }
 0x31d   : > { %1309 = vrot.lane.b32.xlu1 %v4656_v11, %s3692_s23 }
 0x31f   : > { %1299 = vrot.lane.b32.xlu0 %v4679_v52, %s3691_s22 }
 0x321   : > { %1297 = vrot.lane.b32.xlu2 %v4682_v54, %s3691_s22 }
 0x323   : > { %v4760_v16 = vpop.permute.xlu2 %1199 }
 0x325   : > { %1315 = vrot.lane.b32.xlu1 %v4667_v61, %s3692_s23 }
 0x327   : > { %v4764_v38 = vpop.permute.xlu1 %1191  ;;  %1313 = vrot.lane.b32.xlu0 %v4671_v22, %s3692_s23 }
 0x328   : > { %v1334_v49 = vsel %vm410_vm0, %v4654_v39, %v4764_v38 }
 0x329   : > { %1311 = vrot.lane.b32.xlu2 %v4654_v39, %s3692_s23  ;;  %v4770_v12 = vpop.permute.xlu0 %1189 }
 0x32a   : > { %v1333_v41 = vsel %vm410_vm0, %v4656_v11, %v4770_v12 }
 0x32b   : > { %v4773_v21 = vpop.permute.xlu2 %1213 }
 0x32c   : > { %v1341_v15 = vsel %vm419_vm1, %v1333_v41, %v4773_v21 }
 0x32d   : > { %1321 = vrot.lane.b32.xlu1 %v4682_v54, %s3692_s23 }
 0x32f   : > { %v4783_v19 = vpop.permute.xlu1 %1197  ;;  %1319 = vrot.lane.b32.xlu0 %v4686_v30, %s3692_s23 }
 0x331   : > { %1317 = vrot.lane.b32.xlu2 %v4664_v25, %s3692_s23  ;;  %v4792_v23 = vpop.permute.xlu0 %1195 }
 0x332   : > { %v1336_v11 = vsel %vm410_vm0, %v4667_v61, %v4792_v23  ;;  %v1337_v61 = vsel %vm410_vm0, %v4664_v25, %v4783_v19 }
 0x333   : > { %v4798_v28 = vpop.permute.xlu2 %1219 }
 0x335   : > { %1574 = vrot.lane.b32.xlu1 %v4795_v26, %s3687_s16 }
 0x337   : > { %v4812_v48 = vpop.permute.xlu1 %1203  ;;  %1572 = vrot.lane.b32.xlu0 %v4801_v13, %s3687_s16 }
 0x338   : > { %v1340_v21 = vsel %vm410_vm0, %v4679_v52, %v4812_v48 }
 0x339   : > { %1323 = vrot.lane.b32.xlu2 %v4679_v52, %s3692_s23  ;;  %v4822_v47 = vpop.permute.xlu0 %1201  ;;  %v1344_v52 = vsel %vm419_vm1, %v1336_v11, %v4798_v28  ;;  %v1338_v28 = vsel %vm410_vm0, %v4686_v30, %v4760_v16 }
 0x33a   : > { %v1339_v23 = vsel %vm410_vm0, %v4682_v54, %v4822_v47 }
 0x33b   : > { %v4831_v60 = vpop.permute.xlu2 %1225 }
 0x33d   : > { %1580 = vrot.lane.b32.xlu1 %v4825_v14, %s3687_s16 }
 0x33f   : > { %v4848_v45 = vpop.permute.xlu1 %1217  ;;  %1578 = vrot.lane.b32.xlu0 %v4834_v5, %s3687_s16 }
 0x341   : > { %1576 = vrot.lane.b32.xlu2 %v4838_v53, %s3687_s16  ;;  %v1216_v9 = vpop.permute.xlu0 %1215 }
 0x342   : > { %v1342_v37 = vsel %vm419_vm1, %v1334_v49, %v1216_v9 }
 0x343   : > { %v1240_v31 = vpop.permute.xlu2 %1239 }
 0x344   : > { %v1350_v24 = vsel %vm428_vm2, %v1342_v37, %v1240_v31 }
 0x345   : > { %1586 = vrot.lane.b32.xlu1 %v4859_v42, %s3687_s16 }
 0x347   : > { %1584 = vrot.lane.b32.xlu0 %v4865_v3, %s3687_s16  ;;  %v4874_v46 = vpop.permute.xlu1 %1223 }
 0x349   : > { %1582 = vrot.lane.b32.xlu2 %v4868_v57, %s3687_s16  ;;  %v1222_v34 = vpop.permute.xlu0 %1221 }
 0x34b   : > { %v4878_v4 = vpop.permute.xlu2 %1245 }
 0x34d   : > { %1608 = vrot.lane.b32.xlu1 %v4838_v53, %s3688_s19 }
 0x34f   : > { %1606 = vrot.lane.b32.xlu0 %v4795_v26, %s3688_s19  ;;  %v1238_v36 = vpop.permute.xlu1 %1237 }
 0x350   : > { %v1349_v38 = vsel %vm428_vm2, %v1341_v15, %v1238_v36  ;;  %v1335_v15 = vsel %vm410_vm0, %v4671_v22, %v4752_v44  ;;  %v1345_v44 = vsel %vm419_vm1, %v1337_v61, %v1222_v34 }
 0x351   : > { %1604 = vrot.lane.b32.xlu2 %v4801_v13, %s3688_s19  ;;  %v1228_v20 = vpop.permute.xlu0 %1227  ;;  %v1343_v22 = vsel %vm419_vm1, %v1335_v15, %v4848_v45  ;;  %v1353_v30 = vsel %vm428_vm2, %v1345_v44, %v4878_v4 }
 0x353   : > { %v1252_v51 = vpop.permute.xlu2 %1251 }
 0x355   : > { %1614 = vrot.lane.b32.xlu1 %v4868_v57, %s3688_s19 }
 0x357   : > { %1612 = vrot.lane.b32.xlu0 %v4825_v14, %s3688_s19  ;;  %v1244_v32 = vpop.permute.xlu1 %1243 }
 0x359   : > { %1610 = vrot.lane.b32.xlu2 %v4834_v5, %s3688_s19  ;;  %v1242_v8 = vpop.permute.xlu0 %1241 }
 0x35a   : > { %v1351_v25 = vsel %vm428_vm2, %v1343_v22, %v1242_v8 }
 0x35b   : > { %v4892_v27 = vpop.permute.xlu2 %1265 }
 0x35c   : > { %v1359_v16 = vsel %vm437_vm3, %v1351_v25, %v4892_v27 }
 0x35f   : > { %1618 = vrot.lane.b32.xlu0 %v4859_v42, %s3688_s19  ;;  %v4896_v62 = vpop.permute.xlu1 %1249 }
 0x361   : > { %1616 = vrot.lane.b32.xlu2 %v4865_v3, %s3688_s19  ;;  %v4900_v10 = vpop.permute.xlu0 %1247 }
 0x363   : > { %v4902_v33 = vpop.permute.xlu2 %1271 }
 0x367   : > { %v1264_v56 = vpop.permute.xlu1 %1263 }
 0x368   : > { %v1358_v2 = vsel %vm437_vm3, %v1350_v24, %v1264_v56 }
 0x369   : > { %v1262_v43 = vpop.permute.xlu0 %1261 }
 0x36a   : > { %v1357_v31 = vsel %vm437_vm3, %v1349_v38, %v1262_v43 }
 0x36b   : > { %v1286_v55 = vpop.permute.xlu2 %1285 }
 0x36c   : > { %v1365_v24 = vsel %vm446_vm4, %v1357_v31, %v1286_v55 }
 0x36f   : > { %v1270_v0 = vpop.permute.xlu1 %1269 }
 0x371   : > { %v1268_v1 = vpop.permute.xlu0 %1267 }
 0x373   : > { %v1292_v63 = vpop.permute.xlu2 %1291 }
 0x377   : > { %v1276_v29 = vpop.permute.xlu1 %1275 }
 0x379   : > { %v1274_v35 = vpop.permute.xlu0 %1273 }
 0x37b   : > { %v4904_v17 = vpop.permute.xlu2 %1297 }
 0x37f   : > { %v1290_v59 = vpop.permute.xlu1 %1289 }
 0x381   : > { %v1288_v6 = vpop.permute.xlu0 %1287 }
 0x382   : > { %v1366_v58 = vsel %vm446_vm4, %v1358_v2, %v1288_v6  ;;  %v1352_v6 = vsel %vm428_vm2, %v1344_v52, %v1244_v32 }
 0x383   : > { %v1312_v50 = vpop.permute.xlu2 %1311  ;;  %v1360_v47 = vsel %vm437_vm3, %v1352_v6, %v1268_v1 }
 0x384   : > { %v1374_v9 = vsel %vm455_vm5, %v1366_v58, %v1312_v50  ;;  %v1348_v58 = vsel %vm419_vm1, %v1340_v21, %v1228_v20  ;;  %v1347_v50 = vsel %vm419_vm1, %v1339_v23, %v4831_v60  ;;  %v1368_v31 = vsel %vm446_vm4, %v1360_v47, %v1292_v63 }
 0x385   : > { %v1390_v49 = vrot.slane %v1374_v9, 1  ;;  %v1418_v20 = vrot.slane %v1374_v9, 2  ;;  %v1356_v19 = vsel %vm428_vm2, %v1348_v58, %v1252_v51  ;;  %v1346_v51 = vsel %vm419_vm1, %v1338_v28, %v4874_v46 }
 0x386   : > { %v1364_v45 = vsel %vm437_vm3, %v1356_v19, %v1276_v29  ;;  %v1355_v38 = vsel %vm428_vm2, %v1347_v50, %v4896_v62  ;;  %v1361_v29 = vsel %vm437_vm3, %v1353_v30, %v1270_v0  ;;  %v1367_v46 = vsel %vm446_vm4, %v1359_v16, %v1290_v59 }
 0x387   : > { %v4915_v40 = vpop.permute.xlu1 %1295  ;;  %v1410_v48 = vmax.f32 %v1374_v9, %v1390_v49 }
 0x389   : > { %v1294_v18 = vpop.permute.xlu0 %1293  ;;  %v1438_v37 = vmax.f32 %v1410_v48, %v1418_v20 }
 0x38b   : > { %v4920_v39 = vpop.permute.xlu2 %1317  ;;  %v1477_v4 = vrot.slane %v1438_v37, 4 }
 0x38f   : > { %v1310_v12 = vpop.permute.xlu1 %1309 }
 0x390   : > { %v1373_v41 = vsel %vm455_vm5, %v1365_v24, %v1310_v12  ;;  %v1369_v24 = vsel %vm446_vm4, %v1361_v29, %v1294_v18  ;;  %v1354_v18 = vsel %vm428_vm2, %v1346_v51, %v4900_v10 }
 0x391   : > { %v1389_v2 = vrot.slane %v1373_v41, 1  ;;  %v1417_v36 = vrot.slane %v1373_v41, 2  ;;  %v1300_v56 = vpop.permute.xlu0 %1299  ;;  %v1377_v61 = vsel %vm455_vm5, %v1369_v24, %v4920_v39  ;;  %v1362_v10 = vsel %vm437_vm3, %v1354_v18, %v4902_v33 }
 0x392   : > { %v1372_v8 = vsel %vm446_vm4, %v1364_v45, %v1300_v56  ;;  %v1493_v56 = vrot.slane %v1438_v37, 6  ;;  %v1395_v28 = vrot.slane %v1377_v61, 1 }
 0x393   : > { %v1324_v43 = vpop.permute.xlu2 %1323  ;;  %v1391_v55 = vsel %vm472_vm6, %v1389_v2, %v1390_v49  ;;  %v1419_v34 = vsel %vm501_vm7, %v1417_v36, %v1418_v20  ;;  %v1363_v49 = vsel %vm437_vm3, %v1355_v38, %v1274_v35 }
 0x394   : > { %v1409_v54 = vmax.f32 %v1373_v41, %v1391_v55  ;;  %v1380_v11 = vsel %vm455_vm5, %v1372_v8, %v1324_v43  ;;  %v1485_v41 = vrot.slane %v1438_v37, 5  ;;  %v1371_v6 = vsel %vm446_vm4, %v1363_v49, %v4904_v17 }
 0x395   : > { %v1399_v58 = vrot.slane %v1380_v11, 1  ;;  %v1427_v47 = vrot.slane %v1380_v11, 2  ;;  %v1423_v8 = vrot.slane %v1377_v61, 2 }
 0x396   : > { %v1437_v32 = vmax.f32 %v1409_v54, %v1419_v34  ;;  %v1370_v54 = vsel %vm446_vm4, %v1362_v10, %v4915_v40 }
 0x397   : > { %v1316_v1 = vpop.permute.xlu1 %1315  ;;  %v1416_v39 = vmax.f32 %v1380_v11, %v1399_v58 }
 0x398   : > { %v1449_v60 = vrot.slane %v1437_v32, 1  ;;  %v1457_v9 = vrot.slane %v1437_v32, 2  ;;  %v1376_v62 = vsel %vm455_vm5, %v1368_v31, %v1316_v1  ;;  %v1465_v27 = vrot.slane %v1437_v32, 3 }
 0x399   : > { %v1314_v12 = vpop.permute.xlu0 %1313  ;;  %v1393_v15 = vrot.slane %v1376_v62, 1  ;;  %v1421_v43 = vrot.slane %v1376_v62, 2  ;;  %v1444_v16 = vmax.f32 %v1416_v39, %v1427_v47 }
 0x39a   : > { %v1501_v21 = vsel %vm586_vm8, %v1437_v32, %v1449_v60  ;;  %v1375_v35 = vsel %vm455_vm5, %v1367_v46, %v1314_v12 }
 0x39b   : > { %v4977_v0 = vpop.permute.xlu2 %1576  ;;  %v1505_v63 = vsel %vm591_vm9, %v1501_v21, %v1457_v9  ;;  %v1392_v2 = vrot.slane %v1375_v35, 1  ;;  %v1420_v36 = vrot.slane %v1375_v35, 2  ;;  %v1412_v48 = vmax.f32 %v1376_v62, %v1393_v15 }
 0x39c   : > { %v1509_v59 = vsel %vm596_vm10, %v1505_v63, %v1465_v27  ;;  %v1488_v10 = vrot.slane %v1444_v16, 5 }
 0x39d   : > { %v1513_v23 = vsel %vm601_vm11, %v1509_v59, %v1477_v4  ;;  %v1394_v22 = vsel %vm472_vm6, %v1392_v2, %v1393_v15  ;;  %v1422_v25 = vsel %vm501_vm7, %v1420_v36, %v1421_v43  ;;  %v1440_v50 = vmax.f32 %v1412_v48, %v1421_v43 }
 0x39e   : > { %v1517_v52 = vsel %vm606_vm12, %v1513_v23, %v1485_v41  ;;  %v1411_v20 = vmax.f32 %v1375_v35, %v1394_v22  ;;  %v1480_v48 = vrot.slane %v1444_v16, 4 }
 0x39f   : > { %v1521_v44 = vsel %vm501_vm7, %v1517_v52, %v1493_v56  ;;  %v1322_v55 = vpop.permute.xlu1 %1321  ;;  %v1478_v46 = vrot.slane %v1440_v50, 4  ;;  %v1486_v4 = vrot.slane %v1440_v50, 5  ;;  %v1494_v63 = vrot.slane %v1440_v50, 6 }
 0x3a0   : > { %3483 = vst.msk [vmem:[%s4239_s26 + $0x10] sm:$0x7f] %vm615_vm13, %v1521_v44  ;;  %v1379_v19 = vsel %vm455_vm5, %v1371_v6, %v1322_v55  ;;  %v1439_v45 = vmax.f32 %v1411_v20, %v1422_v25 }
 0x3a1   : > { %v1320_v34 = vpop.permute.xlu0 %1319  ;;  %v1398_v37 = vrot.slane %v1379_v19, 1  ;;  %v1426_v17 = vrot.slane %v1379_v19, 2 }
 0x3a2   : > { %v1378_v32 = vsel %vm455_vm5, %v1370_v54, %v1320_v34  ;;  %v1450_v51 = vrot.slane %v1439_v45, 1  ;;  %v1458_v38 = vrot.slane %v1439_v45, 2  ;;  %v1466_v1 = vrot.slane %v1439_v45, 3 }
 0x3a3   : > { %v5001_v33 = vpop.permute.xlu2 %1582  ;;  %v1396_v30 = vrot.slane %v1378_v32, 1  ;;  %v1400_v29 = vsel %vm472_vm6, %v1398_v37, %v1399_v58  ;;  %v1424_v40 = vrot.slane %v1378_v32, 2  ;;  %v1428_v62 = vsel %vm501_vm7, %v1426_v17, %v1427_v47 }
 0x3a4   : > { %v1502_v60 = vsel %vm586_vm8, %v1439_v45, %v1450_v51  ;;  %v1415_v9 = vmax.f32 %v1379_v19, %v1400_v29  ;;  %v1496_v17 = vrot.slane %v1444_v16, 6 }
 0x3a5   : > { %v1397_v31 = vsel %vm472_vm6, %v1395_v28, %v1396_v30  ;;  %v1414_v49 = vmax.f32 %v1378_v32, %v1396_v30  ;;  %v1506_v11 = vsel %vm591_vm9, %v1502_v60, %v1458_v38  ;;  %v1425_v21 = vsel %vm501_vm7, %v1423_v8, %v1424_v40 }
 0x3a6   : > { %v1413_v12 = vmax.f32 %v1377_v61, %v1397_v31  ;;  %v1510_v24 = vsel %vm596_vm10, %v1506_v11, %v1466_v1  ;;  %v1443_v27 = vmax.f32 %v1415_v9, %v1428_v62 }
 0x3a7   : > { %v1575_v41 = vpop.permute.xlu1 %1574  ;;  %v1514_v15 = vsel %vm601_vm11, %v1510_v24, %v1478_v46  ;;  %v1442_v36 = vmax.f32 %v1414_v49, %v1424_v40  ;;  %v1598_v49 = vmax.f32 %v4838_v53, %v4977_v0  ;;  %v1601_v53 = vmax.f32 %v4868_v57, %v5001_v33 }
 0x3a8   : > { %v1441_v35 = vmax.f32 %v1413_v12, %v1425_v21  ;;  %v1518_v59 = vsel %vm606_vm12, %v1514_v15, %v1486_v4  ;;  %v1452_v58 = vrot.slane %v1443_v27, 1  ;;  %v1460_v2 = vrot.slane %v1443_v27, 2  ;;  %v3507_v21 = vld [vmem:[%s3772_s18 + $0x90] sm:$0xff]  ;;  %v5150_v15 = vld [vmem:[%s3772_s18 + $0xa0] sm:$0xff] }
 0x3a9   : > { %v1573_v18 = vpop.permute.xlu0 %1572  ;;  %v1522_v56 = vsel %vm501_vm7, %v1518_v59, %v1494_v63  ;;  %v1468_v43 = vrot.slane %v1443_v27, 3  ;;  %v1479_v25 = vrot.slane %v1442_v36, 4  ;;  %v1487_v28 = vrot.slane %v1442_v36, 5  ;;  %6477 = vst [vmem:[#allocation12_spill] sm:$0xff] %v5150_v15 }
 0x3aa   : > { %v1451_v61 = vrot.slane %v1441_v35, 1  ;;  %v1459_v23 = vrot.slane %v1441_v35, 2  ;;  %3484 = vst.msk [vmem:[%s4239_s26 + $0x48] sm:$0x7f] %vm615_vm13, %v1522_v56  ;;  %v1504_v22 = vsel %vm586_vm8, %v1443_v27, %v1452_v58  ;;  %v1467_v20 = vrot.slane %v1441_v35, 3  ;;  %v3510_v58 = vld [vmem:[%s3772_s18 + $0x198] sm:$0xff] }
 0x3ab   : > { %v1605_v52 = vpop.permute.xlu2 %1604  ;;  %v1508_v44 = vsel %vm591_vm9, %v1504_v22, %v1460_v2  ;;  %v1596_v6 = vmax.f32 %v4801_v13, %v1573_v18  ;;  %v1495_v50 = vrot.slane %v1442_v36, 6  ;;  %v2003_v63 = vmax.f32 %v4790_v7, %v3507_v21  ;;  %v6478_v7 = vld [vmem:[#allocation11_spill] sm:$0xff]  ;;  %v5168_v18 = vld [vmem:[%s3772_s18 + $0x1a8] sm:$0xff] }
 0x3ac   : > { %v1503_v55 = vsel %vm586_vm8, %v1441_v35, %v1451_v61  ;;  %v1512_v39 = vsel %vm596_vm10, %v1508_v44, %v1468_v43  ;;  %v2006_v36 = vmax.f32 %v6478_v7, %v3510_v58  ;;  %6479 = vst [vmem:[#allocation11_spill] sm:$0xff] %v5168_v18  ;;  %v3509_v43 = vld [vmem:[%s3772_s18 + $0x190] sm:$0xff]  ;;  %v6480_v22 = vld [vmem:[#allocation6_spill] sm:$0xff] }
 0x3ad   : > { %v1507_v19 = vsel %vm591_vm9, %v1503_v55, %v1459_v23  ;;  %v1516_v54 = vsel %vm601_vm11, %v1512_v39, %v1480_v48  ;;  %v5023_v45 = vmax.f32 %v1596_v6, %v1605_v52  ;;  %v5159_v59 = vmax.f32 %v2003_v63, %v5150_v15  ;;  %v3513_v52 = vld [vmem:[%s3772_s18 + $0x390] sm:$0xff]  ;;  %v3508_v55 = vld [vmem:[%s3772_s18 + $0x98] sm:$0xff] }
 0x3ae   : > { %v1511_v47 = vsel %vm596_vm10, %v1507_v19, %v1467_v20  ;;  %v1520_v34 = vsel %vm606_vm12, %v1516_v54, %v1488_v10  ;;  %v5179_v23 = vmax.f32 %v2006_v36, %v5168_v18  ;;  %v2009_v44 = vmax.f32 %v6480_v22, %v3513_v52  ;;  %v5189_v20 = vld [vmem:[%s3772_s18 + $0x3a0] sm:$0xff]  ;;  %v6482_v10 = vld [vmem:[#allocation8_spill] sm:$0xff] }
 0x3af   : > { %v1515_v13 = vsel %vm601_vm11, %v1511_v47, %v1479_v25  ;;  %v1581_v37 = vpop.permute.xlu1 %1580  ;;  %1644 = vrot.lane.b32.xlu1 %v5023_v45, %s3687_s16  ;;  %v1524_v38 = vsel %vm501_vm7, %v1520_v34, %v1496_v17  ;;  %6481 = vst [vmem:[#allocation6_spill] sm:$0xff] %v5189_v20  ;;  %v2005_v39 = vmax.f32 %v6482_v10, %v3509_v43  ;;  %v5198_v25 = vld [vmem:[%s3772_s18 + $0x1a0] sm:$0xff]  ;;  %v5209_v34 = vld [vmem:[%s3772_s18 + $0xa8] sm:$0xff] }
 0x3b0   : > { %v1519_v32 = vsel %vm606_vm12, %v1515_v13, %v1487_v28  ;;  %3486 = vst.msk [vmem:[%s4239_s26 + $0xb8] sm:$0x7f] %vm615_vm13, %v1524_v38  ;;  %v5205_v54 = vmax.f32 %v2009_v44, %v5189_v20  ;;  %v6483_v28 = vld [vmem:[#allocation7_spill] sm:$0xff] }
 0x3b1   : > { %v1523_v8 = vsel %vm501_vm7, %v1519_v32, %v1495_v50  ;;  %v1579_v51 = vpop.permute.xlu0 %1578  ;;  %v2004_v47 = vmax.f32 %v6483_v28, %v3508_v55  ;;  %6484 = vst [vmem:[#allocation8_spill] sm:$0xff] %v5209_v34  ;;  %v5214_v13 = vmax.f32 %v2005_v39, %v5198_v25  ;;  %v3511_v32 = vld [vmem:[%s3772_s18 + $0x290] sm:$0xff] }
 0x3b2   : > { %3485 = vst.msk [vmem:[%s4239_s26 + $0x80] sm:$0x7f] %vm615_vm13, %v1523_v8  ;;  %v1599_v30 = vmax.f32 %v4834_v5, %v1579_v51  ;;  %v1597_v5 = vmax.f32 %v4795_v26, %v1575_v41  ;;  %v1600_v26 = vmax.f32 %v4825_v14, %v1581_v37  ;;  %v3512_v37 = vld [vmem:[%s3772_s18 + $0x298] sm:$0xff]  ;;  %v6485_v51 = vld [vmem:[#allocation9_spill] sm:$0xff] }
 0x3b3   : > { %v1611_v1 = vpop.permute.xlu2 %1610  ;;  %v5220_v17 = vmax.f32 %v2004_v47, %v5209_v34  ;;  %v2008_v38 = vmax.f32 %v6485_v51, %v3512_v37 }
 0x3b4   : > { %v5037_v29 = vmax.f32 %v1599_v30, %v1611_v1  ;;  %v5229_v30 = vld [vmem:[%s3772_s18 + $0x2a8] sm:$0xff] }
 0x3b5   : > { %6486 = vst [vmem:[#allocation7_spill] sm:$0xff] %v5229_v30 }
 0x3b7   : > { %v1587_v16 = vpop.permute.xlu1 %1586  ;;  %1650 = vrot.lane.b32.xlu1 %v5037_v29, %s3687_s16 }
 0x3b8   : > { %v1603_v27 = vmax.f32 %v4859_v42, %v1587_v16  ;;  %v6487_v16 = vld [vmem:[#allocation10_spill] sm:$0xff] }
 0x3b9   : > { %v1585_v40 = vpop.permute.xlu0 %1584 }
 0x3ba   : > { %v1602_v60 = vmax.f32 %v4865_v3, %v1585_v40  ;;  %v2007_v40 = vmax.f32 %v6487_v16, %v3511_v32 }
 0x3bb   : > { %v1617_v9 = vpop.permute.xlu2 %1616 }
 0x3bc   : > { %v5042_v31 = vmax.f32 %v1602_v60, %v1617_v9  ;;  %v5235_v60 = vld [vmem:[%s3772_s18 + $0x2a0] sm:$0xff] }
 0x3bd   : > { %6488 = vst [vmem:[#allocation9_spill] sm:$0xff] %v5235_v60 }
 0x3bf   : > { %v1609_v46 = vpop.permute.xlu1 %1608  ;;  %1656 = vrot.lane.b32.xlu1 %v5042_v31, %s3687_s16 }
 0x3c0   : > { %v5049_v11 = vmax.f32 %v1598_v49, %v1609_v46  ;;  %v5240_v49 = vmax.f32 %v2008_v38, %v5229_v30  ;;  %v5245_v46 = vmax.f32 %v2007_v40, %v5235_v60 }
 0x3c1   : > { %v1607_v62 = vpop.permute.xlu0 %1606 }
 0x3c2   : > { %v5051_v12 = vmax.f32 %v1597_v5, %v1607_v62  ;;  %1648 = vrot.lane.b32.xlu0 %v5049_v11, %s3687_s16  ;;  %v3514_v5 = vld [vmem:[%s3772_s18 + $0x398] sm:$0xff] }
 0x3c4   : > { %1646 = vrot.lane.b32.xlu2 %v5051_v12, %s3687_s16 }
 0x3c7   : > { %v1615_v3 = vpop.permute.xlu1 %1614  ;;  %1670 = vrot.lane.b32.xlu1 %v5051_v12, %s3688_s19 }
 0x3c8   : > { %v5062_v0 = vmax.f32 %v1601_v53, %v1615_v3  ;;  %v6489_v3 = vld [vmem:[#allocation5_spill] sm:$0xff] }
 0x3c9   : > { %v1613_v4 = vpop.permute.xlu0 %1612 }
 0x3ca   : > { %v5064_v24 = vmax.f32 %v1600_v26, %v1613_v4  ;;  %1654 = vrot.lane.b32.xlu0 %v5062_v0, %s3687_s16  ;;  %v2010_v26 = vmax.f32 %v6489_v3, %v3514_v5  ;;  %v5256_v4 = vld [vmem:[%s3772_s18 + $0x3a8] sm:$0xff] }
 0x3cb   : > { %6490 = vst [vmem:[#allocation10_spill] sm:$0xff] %v5256_v4 }
 0x3cc   : > { %1652 = vrot.lane.b32.xlu2 %v5064_v24, %s3687_s16 }
 0x3cf   : > { %1676 = vrot.lane.b32.xlu1 %v5064_v24, %s3688_s19 }
 0x3d1   : > { %v1619_v14 = vpop.permute.xlu0 %1618 }
 0x3d2   : > { %v5073_v57 = vmax.f32 %v1603_v27, %v1619_v14  ;;  %1668 = vrot.lane.b32.xlu0 %v5023_v45, %s3688_s19  ;;  %v5261_v14 = vmax.f32 %v2010_v26, %v5256_v4 }
 0x3d4   : > { %1658 = vrot.lane.b32.xlu2 %v5073_v57, %s3687_s16 }
 0x3d7   : > { %1682 = vrot.lane.b32.xlu1 %v5073_v57, %s3688_s19 }
 0x3da   : > { %1674 = vrot.lane.b32.xlu0 %v5037_v29, %s3688_s19 }
 0x3dc   : > { %1672 = vrot.lane.b32.xlu2 %v5049_v11, %s3688_s19 }
 0x3df   : > { %1696 = vrot.lane.b32.xlu1 %v5049_v11, %s3689_s20 }
 0x3e2   : > { %1680 = vrot.lane.b32.xlu0 %v5042_v31, %s3688_s19 }
 0x3e4   : > { %1678 = vrot.lane.b32.xlu2 %v5062_v0, %s3688_s19 }
 0x3e7   : > { %1702 = vrot.lane.b32.xlu1 %v5062_v0, %s3689_s20 }
 0x3ea   : > { %1694 = vrot.lane.b32.xlu0 %v5051_v12, %s3689_s20 }
 0x3ec   : > { %1692 = vrot.lane.b32.xlu2 %v5023_v45, %s3689_s20 }
 0x3ef   : > { %1716 = vrot.lane.b32.xlu1 %v5023_v45, %s3690_s21 }
 0x3f2   : > { %1700 = vrot.lane.b32.xlu0 %v5064_v24, %s3689_s20 }
 0x3f4   : > { %1698 = vrot.lane.b32.xlu2 %v5037_v29, %s3689_s20 }
 0x3f7   : > { %1722 = vrot.lane.b32.xlu1 %v5037_v29, %s3690_s21 }
 0x3fa   : > { %1706 = vrot.lane.b32.xlu0 %v5073_v57, %s3689_s20 }
 0x3fc   : > { %1704 = vrot.lane.b32.xlu2 %v5042_v31, %s3689_s20 }
 0x3ff   : > { %1728 = vrot.lane.b32.xlu1 %v5042_v31, %s3690_s21 }
 0x402   : > { %1720 = vrot.lane.b32.xlu0 %v5049_v11, %s3690_s21 }
 0x404   : > { %1718 = vrot.lane.b32.xlu2 %v5051_v12, %s3690_s21 }
 0x407   : > { %1742 = vrot.lane.b32.xlu1 %v5051_v12, %s3691_s22 }
 0x40a   : > { %1726 = vrot.lane.b32.xlu0 %v5062_v0, %s3690_s21 }
 0x40c   : > { %1724 = vrot.lane.b32.xlu2 %v5064_v24, %s3690_s21 }
 0x40f   : > { %1748 = vrot.lane.b32.xlu1 %v5064_v24, %s3691_s22 }
 0x412   : > { %1740 = vrot.lane.b32.xlu0 %v5023_v45, %s3691_s22 }
 0x414   : > { %1730 = vrot.lane.b32.xlu2 %v5073_v57, %s3690_s21 }
 0x417   : > { %1754 = vrot.lane.b32.xlu1 %v5073_v57, %s3691_s22 }
 0x41a   : > { %1746 = vrot.lane.b32.xlu0 %v5037_v29, %s3691_s22 }
 0x41c   : > { %1744 = vrot.lane.b32.xlu2 %v5049_v11, %s3691_s22 }
 0x41e   : > { %v5133_v42 = vpop.permute.xlu2 %1646 }
 0x41f   : > { %1768 = vrot.lane.b32.xlu1 %v5049_v11, %s3692_s23 }
 0x421   : > { %v5137_v33 = vpop.permute.xlu1 %1644 }
 0x422   : > { %1752 = vrot.lane.b32.xlu0 %v5042_v31, %s3691_s22 }
 0x424   : > { %1750 = vrot.lane.b32.xlu2 %v5062_v0, %s3691_s22 }
 0x426   : > { %v5144_v41 = vpop.permute.xlu2 %1652 }
 0x427   : > { %1774 = vrot.lane.b32.xlu1 %v5062_v0, %s3692_s23 }
 0x429   : > { %v5152_v35 = vpop.permute.xlu1 %1650 }
 0x42a   : > { %1766 = vrot.lane.b32.xlu0 %v5051_v12, %s3692_s23  ;;  %v1791_v3 = vsel %vm410_vm0, %v5037_v29, %v5152_v35 }
 0x42c   : > { %1764 = vrot.lane.b32.xlu2 %v5023_v45, %s3692_s23 }
 0x42e   : > { %v5162_v2 = vpop.permute.xlu2 %1658 }
 0x42f   : > { %2027 = vrot.lane.b32.xlu1 %v5159_v59, %s3687_s16 }
 0x431   : > { %v5170_v56 = vpop.permute.xlu1 %1656 }
 0x432   : > { %1772 = vrot.lane.b32.xlu0 %v5064_v24, %s3692_s23 }
 0x434   : > { %1770 = vrot.lane.b32.xlu2 %v5037_v29, %s3692_s23  ;;  %v5176_v61 = vpop.permute.xlu0 %1648 }
 0x435   : > { %v1790_v20 = vsel %vm410_vm0, %v5049_v11, %v5176_v61  ;;  %v1788_v11 = vsel %vm410_vm0, %v5023_v45, %v5137_v33 }
 0x436   : > { %v5182_v48 = vpop.permute.xlu2 %1672 }
 0x437   : > { %2033 = vrot.lane.b32.xlu1 %v5179_v23, %s3687_s16  ;;  %v1798_v60 = vsel %vm419_vm1, %v1790_v20, %v5182_v48 }
 0x439   : > { %v5192_v6 = vpop.permute.xlu1 %1670 }
 0x43a   : > { %1778 = vrot.lane.b32.xlu0 %v5073_v57, %s3692_s23 }
 0x43c   : > { %1776 = vrot.lane.b32.xlu2 %v5042_v31, %s3692_s23  ;;  %v5202_v19 = vpop.permute.xlu0 %1654 }
 0x43e   : > { %v5211_v50 = vpop.permute.xlu2 %1678 }
 0x43f   : > { %2039 = vrot.lane.b32.xlu1 %v5205_v54, %s3687_s16 }
 0x441   : > { %v5223_v8 = vpop.permute.xlu1 %1676 }
 0x442   : > { %2031 = vrot.lane.b32.xlu0 %v5214_v13, %s3687_s16 }
 0x444   : > { %2029 = vrot.lane.b32.xlu2 %v5220_v17, %s3687_s16  ;;  %v1669_v1 = vpop.permute.xlu0 %1668 }
 0x445   : > { %v1796_v48 = vsel %vm419_vm1, %v1788_v11, %v1669_v1 }
 0x446   : > { %v5237_v9 = vpop.permute.xlu2 %1692 }
 0x447   : > { %2061 = vrot.lane.b32.xlu1 %v5220_v17, %s3688_s19 }
 0x449   : > { %v5248_v62 = vpop.permute.xlu1 %1682 }
 0x44a   : > { %2037 = vrot.lane.b32.xlu0 %v5240_v49, %s3687_s16 }
 0x44c   : > { %2035 = vrot.lane.b32.xlu2 %v5245_v46, %s3687_s16  ;;  %v1675_v53 = vpop.permute.xlu0 %1674 }
 0x44d   : > { %v1799_v26 = vsel %vm419_vm1, %v1791_v3, %v1675_v53 }
 0x44e   : > { %v1699_v27 = vpop.permute.xlu2 %1698 }
 0x44f   : > { %2067 = vrot.lane.b32.xlu1 %v5245_v46, %s3688_s19  ;;  %v1807_v4 = vsel %vm428_vm2, %v1799_v26, %v1699_v27 }
 0x451   : > { %v1697_v21 = vpop.permute.xlu1 %1696 }
 0x452   : > { %2059 = vrot.lane.b32.xlu0 %v5159_v59, %s3688_s19  ;;  %v1806_v34 = vsel %vm428_vm2, %v1798_v60, %v1697_v21 }
 0x454   : > { %2041 = vrot.lane.b32.xlu2 %v5261_v14, %s3687_s16  ;;  %v5267_v63 = vpop.permute.xlu0 %1680 }
 0x456   : > { %v5269_v58 = vpop.permute.xlu2 %1704 }
 0x457   : > { %2073 = vrot.lane.b32.xlu1 %v5261_v14, %s3688_s19 }
 0x459   : > { %v5273_v7 = vpop.permute.xlu1 %1702 }
 0x45a   : > { %2065 = vrot.lane.b32.xlu0 %v5179_v23, %s3688_s19 }
 0x45c   : > { %2063 = vrot.lane.b32.xlu2 %v5214_v13, %s3688_s19  ;;  %v1695_v36 = vpop.permute.xlu0 %1694 }
 0x45e   : > { %v1719_v52 = vpop.permute.xlu2 %1718 }
 0x461   : > { %v1717_v43 = vpop.permute.xlu1 %1716 }
 0x462   : > { %2071 = vrot.lane.b32.xlu0 %v5205_v54, %s3688_s19 }
 0x464   : > { %2069 = vrot.lane.b32.xlu2 %v5240_v49, %s3688_s19  ;;  %v5283_v22 = vpop.permute.xlu0 %1700 }
 0x466   : > { %v5285_v44 = vpop.permute.xlu2 %1724 }
 0x469   : > { %v1723_v55 = vpop.permute.xlu1 %1722 }
 0x46a   : > { %v1815_v30 = vsel %vm437_vm3, %v1807_v4, %v1723_v55 }
 0x46c   : > { %v5287_v10 = vpop.permute.xlu0 %1706 }
 0x46e   : > { %v5289_v39 = vpop.permute.xlu2 %1730 }
 0x471   : > { %v5291_v28 = vpop.permute.xlu1 %1728 }
 0x474   : > { %v1721_v47 = vpop.permute.xlu0 %1720 }
 0x475   : > { %v1814_v53 = vsel %vm437_vm3, %v1806_v34, %v1721_v47  ;;  %v1789_v34 = vsel %vm410_vm0, %v5051_v12, %v5133_v42  ;;  %v1793_v42 = vsel %vm410_vm0, %v5062_v0, %v5202_v19  ;;  %v1794_v0 = vsel %vm410_vm0, %v5042_v31, %v5170_v56 }
 0x476   : > { %v1745_v37 = vpop.permute.xlu2 %1744  ;;  %v1797_v1 = vsel %vm419_vm1, %v1789_v34, %v5192_v6  ;;  %v1802_v56 = vsel %vm419_vm1, %v1794_v0, %v5267_v63 }
 0x477   : > { %v1822_v61 = vsel %vm446_vm4, %v1814_v53, %v1745_v37  ;;  %v1805_v26 = vsel %vm428_vm2, %v1797_v1, %v1695_v36  ;;  %v1792_v53 = vsel %vm410_vm0, %v5064_v24, %v5144_v41  ;;  %v1801_v36 = vsel %vm419_vm1, %v1793_v42, %v5211_v50 }
 0x478   : > { %v1813_v6 = vsel %vm437_vm3, %v1805_v26, %v1719_v52  ;;  %v1809_v24 = vsel %vm428_vm2, %v1801_v36, %v5273_v7  ;;  %v1800_v31 = vsel %vm419_vm1, %v1792_v53, %v5223_v8  ;;  %v1810_v1 = vsel %vm428_vm2, %v1802_v56, %v5269_v58 }
 0x479   : > { %v1743_v32 = vpop.permute.xlu1 %1742  ;;  %v1808_v34 = vsel %vm428_vm2, %v1800_v31, %v5283_v22 }
 0x47c   : > { %v1727_v51 = vpop.permute.xlu0 %1726 }
 0x47d   : > { %v1817_v52 = vsel %vm437_vm3, %v1809_v24, %v1727_v51 }
 0x47e   : > { %v5293_v38 = vpop.permute.xlu2 %1750 }
 0x481   : > { %v5295_v16 = vpop.permute.xlu1 %1748 }
 0x484   : > { %v1741_v40 = vpop.permute.xlu0 %1740 }
 0x486   : > { %v1765_v5 = vpop.permute.xlu2 %1764 }
 0x489   : > { %v5304_v18 = vpop.permute.xlu1 %1754 }
 0x48c   : > { %v1747_v15 = vpop.permute.xlu0 %1746 }
 0x48d   : > { %v1823_v29 = vsel %vm446_vm4, %v1815_v30, %v1747_v15  ;;  %v1804_v30 = vsel %vm428_vm2, %v1796_v48, %v5237_v9 }
 0x48e   : > { %v1771_v35 = vpop.permute.xlu2 %1770  ;;  %v1812_v47 = vsel %vm437_vm3, %v1804_v30, %v1717_v43  ;;  %v1825_v30 = vsel %vm446_vm4, %v1817_v52, %v5293_v38 }
 0x48f   : > { %v1831_v3 = vsel %vm455_vm5, %v1823_v29, %v1771_v35  ;;  %v1820_v29 = vsel %vm446_vm4, %v1812_v47, %v1741_v40  ;;  %v1821_v40 = vsel %vm446_vm4, %v1813_v6, %v1743_v32 }
 0x490   : > { %v1848_v4 = vrot.slane %v1831_v3, 1  ;;  %v1876_v45 = vrot.slane %v1831_v3, 2  ;;  %v1828_v43 = vsel %vm455_vm5, %v1820_v29, %v1765_v5 }
 0x491   : > { %v1769_v27 = vpop.permute.xlu1 %1768  ;;  %v1844_v5 = vrot.slane %v1828_v43, 1  ;;  %v1872_v7 = vrot.slane %v1828_v43, 2 }
 0x492   : > { %v1830_v20 = vsel %vm455_vm5, %v1822_v61, %v1769_v27  ;;  %v1867_v61 = vmax.f32 %v1831_v3, %v1848_v4  ;;  %v1795_v3 = vsel %vm410_vm0, %v5073_v57, %v5162_v2 }
 0x493   : > { %v1847_v60 = vrot.slane %v1830_v20, 1  ;;  %v1875_v21 = vrot.slane %v1830_v20, 2  ;;  %v1803_v8 = vsel %vm419_vm1, %v1795_v3, %v5248_v62  ;;  %v1818_v62 = vsel %vm437_vm3, %v1810_v1, %v5291_v28 }
 0x494   : > { %v5320_v15 = vpop.permute.xlu0 %1752  ;;  %v1811_v22 = vsel %vm428_vm2, %v1803_v8, %v5287_v10 }
 0x495   : > { %v1849_v33 = vsel %vm472_vm6, %v1847_v60, %v1848_v4  ;;  %v1877_v12 = vsel %vm501_vm7, %v1875_v21, %v1876_v45  ;;  %v1895_v4 = vmax.f32 %v1867_v61, %v1876_v45  ;;  %v1819_v10 = vsel %vm437_vm3, %v1811_v22, %v5289_v39 }
 0x496   : > { %v5328_v55 = vpop.permute.xlu2 %1776  ;;  %v1866_v37 = vmax.f32 %v1830_v20, %v1849_v33 }
 0x497   : > { %v1933_v26 = vrot.slane %v1895_v4, 4 }
 0x498   : > { %v1894_v9 = vmax.f32 %v1866_v37, %v1877_v12  ;;  %v1816_v37 = vsel %vm437_vm3, %v1808_v34, %v5285_v44  ;;  %v1826_v44 = vsel %vm446_vm4, %v1818_v62, %v5320_v15 }
 0x499   : > { %v1775_v35 = vpop.permute.xlu1 %1774  ;;  %v1824_v42 = vsel %vm446_vm4, %v1816_v37, %v5295_v16  ;;  %v1834_v3 = vsel %vm455_vm5, %v1826_v44, %v5328_v55 }
 0x49a   : > { %v1905_v11 = vrot.slane %v1894_v9, 1  ;;  %v1913_v27 = vrot.slane %v1894_v9, 2  ;;  %v1921_v57 = vrot.slane %v1894_v9, 3  ;;  %v1833_v63 = vsel %vm455_vm5, %v1825_v30, %v1775_v35 }
 0x49b   : > { %v1879_v61 = vrot.slane %v1833_v63, 2 }
 0x49c   : > { %v1767_v48 = vpop.permute.xlu0 %1766  ;;  %v1957_v41 = vsel %vm586_vm8, %v1894_v9, %v1905_v11  ;;  %v1851_v9 = vrot.slane %v1833_v63, 1 }
 0x49d   : > { %v1829_v19 = vsel %vm455_vm5, %v1821_v40, %v1767_v48  ;;  %v1961_v60 = vsel %vm591_vm9, %v1957_v41, %v1913_v27  ;;  %v1941_v40 = vrot.slane %v1895_v4, 5 }
 0x49e   : > { %v1845_v50 = vrot.slane %v1829_v19, 1  ;;  %v1873_v20 = vrot.slane %v1829_v19, 2  ;;  %v5355_v32 = vpop.permute.xlu2 %2029  ;;  %v1965_v47 = vsel %vm596_vm10, %v1961_v60, %v1921_v57  ;;  %v1869_v39 = vmax.f32 %v1833_v63, %v1851_v9 }
 0x49f   : > { %v1969_v53 = vsel %vm601_vm11, %v1965_v47, %v1933_v26  ;;  %v1853_v57 = vrot.slane %v1834_v3, 1 }
 0x4a0   : > { %v1846_v51 = vsel %vm472_vm6, %v1844_v5, %v1845_v50  ;;  %v1865_v21 = vmax.f32 %v1829_v19, %v1845_v50  ;;  %v1874_v45 = vsel %vm501_vm7, %v1872_v7, %v1873_v20  ;;  %v1973_v41 = vsel %vm606_vm12, %v1969_v53, %v1941_v40 }
 0x4a1   : > { %v1864_v2 = vmax.f32 %v1828_v43, %v1846_v51  ;;  %v5374_v33 = vpop.permute.xlu1 %2027  ;;  %v1827_v7 = vsel %vm446_vm4, %v1819_v10, %v5304_v18  ;;  %v1897_v30 = vmax.f32 %v1869_v39, %v1879_v61 }
 0x4a2   : > { %v1893_v29 = vmax.f32 %v1865_v21, %v1873_v20  ;;  %v1949_v20 = vrot.slane %v1895_v4, 6 }
 0x4a3   : > { %v1892_v38 = vmax.f32 %v1864_v2, %v1874_v45  ;;  %v1881_v45 = vrot.slane %v1834_v3, 2  ;;  %v1934_v37 = vrot.slane %v1897_v30, 4 }
 0x4a4   : > { %v1773_v12 = vpop.permute.xlu0 %1772  ;;  %v1932_v27 = vrot.slane %v1893_v29, 4  ;;  %v1940_v0 = vrot.slane %v1893_v29, 5  ;;  %v1948_v19 = vrot.slane %v1893_v29, 6  ;;  %v1977_v34 = vsel %vm501_vm7, %v1973_v41, %v1949_v20 }
 0x4a5   : > { %v1904_v58 = vrot.slane %v1892_v38, 1  ;;  %v1912_v35 = vrot.slane %v1892_v38, 2  ;;  %v1832_v6 = vsel %vm455_vm5, %v1824_v42, %v1773_v12  ;;  %v1920_v43 = vrot.slane %v1892_v38, 3  ;;  %3504 = vst.msk [vmem:[%s4239_s26 + $0x50] sm:$0x7f] %vm615_vm13, %v1977_v34 }
 0x4a6   : > { %v5393_v28 = vpop.permute.xlu2 %2035  ;;  %v1850_v36 = vrot.slane %v1832_v6, 1  ;;  %v1878_v16 = vrot.slane %v1832_v6, 2  ;;  %v1942_v29 = vrot.slane %v1897_v30, 5 }
 0x4a7   : > { %v1956_v11 = vsel %vm586_vm8, %v1892_v38, %v1904_v58  ;;  %v1950_v58 = vrot.slane %v1897_v30, 6 }
 0x4a8   : > { %v1960_v48 = vsel %vm591_vm9, %v1956_v11, %v1912_v35  ;;  %v1852_v15 = vsel %vm472_vm6, %v1850_v36, %v1851_v9  ;;  %v1880_v56 = vsel %vm501_vm7, %v1878_v16, %v1879_v61 }
 0x4a9   : > { %v1964_v24 = vsel %vm596_vm10, %v1960_v48, %v1920_v43  ;;  %v1868_v5 = vmax.f32 %v1832_v6, %v1852_v15  ;;  %v5401_v50 = vpop.permute.xlu1 %2033 }
 0x4aa   : > { %v1968_v52 = vsel %vm601_vm11, %v1964_v24, %v1932_v27  ;;  %v2052_v24 = vmax.f32 %v5220_v17, %v5355_v32 }
 0x4ab   : > { %v1972_v31 = vsel %vm606_vm12, %v1968_v52, %v1940_v0  ;;  %v1896_v51 = vmax.f32 %v1868_v5, %v1880_v56 }
 0x4ac   : > { %v1976_v60 = vsel %vm501_vm7, %v1972_v31, %v1948_v19  ;;  %v1779_v21 = vpop.permute.xlu0 %1778 }
 0x4ad   : > { %3503 = vst.msk [vmem:[%s4239_s26 + $0x18] sm:$0x7f] %vm615_vm13, %v1976_v60  ;;  %v1835_v4 = vsel %vm455_vm5, %v1827_v7, %v1779_v21  ;;  %v1906_v55 = vrot.slane %v1896_v51, 1  ;;  %v1914_v2 = vrot.slane %v1896_v51, 2  ;;  %v1922_v1 = vrot.slane %v1896_v51, 3 }
 0x4ae   : > { %v1854_v8 = vrot.slane %v1835_v4, 1  ;;  %v2042_v63 = vpop.permute.xlu2 %2041  ;;  %v1882_v18 = vrot.slane %v1835_v4, 2  ;;  %v2055_v7 = vmax.f32 %v5245_v46, %v5393_v28 }
 0x4af   : > { %v1958_v22 = vsel %vm586_vm8, %v1896_v51, %v1906_v55  ;;  %v2051_v51 = vmax.f32 %v5159_v59, %v5374_v33  ;;  %v2058_v46 = vmax.f32 %v5261_v14, %v2042_v63  ;;  %v2054_v59 = vmax.f32 %v5179_v23, %v5401_v50 }
 0x4b0   : > { %v1855_v47 = vsel %vm472_vm6, %v1853_v57, %v1854_v8  ;;  %v1871_v38 = vmax.f32 %v1835_v4, %v1854_v8  ;;  %v1962_v62 = vsel %vm591_vm9, %v1958_v22, %v1914_v2  ;;  %v1883_v42 = vsel %vm501_vm7, %v1881_v45, %v1882_v18  ;;  %v3529_v8 = vld [vmem:[%s3772_s18 + $0x1b0] sm:$0xff] }
 0x4b1   : > { %v1870_v26 = vmax.f32 %v1834_v3, %v1855_v47  ;;  %v1966_v12 = vsel %vm596_vm10, %v1962_v62, %v1922_v1  ;;  %v2040_v9 = vpop.permute.xlu1 %2039  ;;  %v2460_v45 = vmax.f32 %v5198_v25, %v3529_v8  ;;  %v5566_v1 = vld [vmem:[%s3772_s18 + $0x1c0] sm:$0xff]  ;;  %v6492_v47 = vld [vmem:[#allocation8_spill] sm:$0xff]  ;;  %v5577_v62 = vld [vmem:[%s3772_s18 + $0xc8] sm:$0xff] }
 0x4b2   : > { %v1970_v35 = vsel %vm601_vm11, %v1966_v12, %v1934_v37  ;;  %v1899_v44 = vmax.f32 %v1871_v38, %v1882_v18  ;;  %v2057_v14 = vmax.f32 %v5205_v54, %v2040_v9  ;;  %v3528_v18 = vld [vmem:[%s3772_s18 + $0xb8] sm:$0xff]  ;;  %6491 = vst [vmem:[#allocation5_spill] sm:$0xff] %v5566_v1 }
 0x4b3   : > { %v1898_v10 = vmax.f32 %v1870_v26, %v1883_v42  ;;  %v1974_v53 = vsel %vm606_vm12, %v1970_v35, %v1942_v29  ;;  %v2459_v38 = vmax.f32 %v6492_v47, %v3528_v18  ;;  %v5574_v37 = vmax.f32 %v2460_v45, %v5566_v1  ;;  %v3532_v25 = vld [vmem:[%s3772_s18 + $0x2b8] sm:$0xff]  ;;  %v6493_v42 = vld [vmem:[#allocation7_spill] sm:$0xff]  ;;  %v5594_v35 = vld [vmem:[%s3772_s18 + $0x2c8] sm:$0xff] }
 0x4b4   : > { %v2032_v6 = vpop.permute.xlu0 %2031  ;;  %v1978_v43 = vsel %vm501_vm7, %v1974_v53, %v1950_v58  ;;  %v1935_v48 = vrot.slane %v1899_v44, 4  ;;  %v1943_v15 = vrot.slane %v1899_v44, 5  ;;  %v1951_v19 = vrot.slane %v1899_v44, 6  ;;  %v3531_v58 = vld [vmem:[%s3772_s18 + $0x2b0] sm:$0xff]  ;;  %6494 = vst [vmem:[#allocation8_spill] sm:$0xff] %v5594_v35  ;;  %v6495_v44 = vld [vmem:[#allocation9_spill] sm:$0xff] }
 0x4b5   : > { %v1907_v11 = vrot.slane %v1898_v10, 1  ;;  %v1915_v36 = vrot.slane %v1898_v10, 2  ;;  %3505 = vst.msk [vmem:[%s4239_s26 + $0x88] sm:$0x7f] %vm615_vm13, %v1978_v43  ;;  %v2053_v16 = vmax.f32 %v5214_v13, %v2032_v6  ;;  %v1923_v61 = vrot.slane %v1898_v10, 3  ;;  %v3527_v53 = vld [vmem:[%s3772_s18 + $0xb0] sm:$0xff] }
 0x4b6   : > { %v2064_v40 = vpop.permute.xlu2 %2063  ;;  %v5587_v12 = vmax.f32 %v2459_v38, %v5577_v62  ;;  %v2463_v9 = vmax.f32 %v6493_v42, %v3532_v25  ;;  %v2462_v6 = vmax.f32 %v6495_v44, %v3531_v58 }
 0x4b7   : > { %v1959_v27 = vsel %vm586_vm8, %v1898_v10, %v1907_v11  ;;  %v5429_v0 = vmax.f32 %v2053_v16, %v2064_v40  ;;  %v5606_v11 = vld [vmem:[%s3772_s18 + $0x2c0] sm:$0xff]  ;;  %v6497_v16 = vld [vmem:[#allocation12_spill] sm:$0xff] }
 0x4b8   : > { %v1963_v39 = vsel %vm591_vm9, %v1959_v27, %v1915_v36  ;;  %v5603_v43 = vmax.f32 %v2463_v9, %v5594_v35  ;;  %6496 = vst [vmem:[#allocation7_spill] sm:$0xff] %v5606_v11  ;;  %v2458_v40 = vmax.f32 %v6497_v16, %v3527_v53 }
 0x4b9   : > { %v1967_v41 = vsel %vm596_vm10, %v1963_v39, %v1923_v61  ;;  %v2062_v13 = vpop.permute.xlu1 %2061  ;;  %2103 = vrot.lane.b32.xlu1 %v5429_v0, %s3687_s16  ;;  %v5614_v61 = vld [vmem:[%s3772_s18 + $0xc0] sm:$0xff]  ;;  %v3534_v39 = vld [vmem:[%s3772_s18 + $0x3b8] sm:$0xff] }
 0x4ba   : > { %v1971_v52 = vsel %vm601_vm11, %v1967_v41, %v1935_v48  ;;  %v5438_v20 = vmax.f32 %v2052_v24, %v2062_v13  ;;  %6498 = vst [vmem:[#allocation9_spill] sm:$0xff] %v5614_v61  ;;  %v5619_v48 = vmax.f32 %v2462_v6, %v5606_v11  ;;  %v5625_v24 = vmax.f32 %v2458_v40, %v5614_v61  ;;  %v3530_v41 = vld [vmem:[%s3772_s18 + $0x1b8] sm:$0xff]  ;;  %v5634_v13 = vld [vmem:[%s3772_s18 + $0x3c8] sm:$0xff] }
 0x4bb   : > { %v1975_v5 = vsel %vm606_vm12, %v1971_v52, %v1943_v15  ;;  %6500 = vst [vmem:[#allocation12_spill] sm:$0xff] %v5634_v13 }
 0x4bc   : > { %v1979_v3 = vsel %vm501_vm7, %v1975_v5, %v1951_v19  ;;  %v2038_v31 = vpop.permute.xlu0 %2037  ;;  %2101 = vrot.lane.b32.xlu0 %v5438_v20, %s3687_s16  ;;  %v6499_v19 = vld [vmem:[#allocation10_spill] sm:$0xff] }
 0x4bd   : > { %3506 = vst.msk [vmem:[%s4239_s26 + $0xc0] sm:$0x7f] %vm615_vm13, %v1979_v3  ;;  %v2056_v17 = vmax.f32 %v5240_v49, %v2038_v31  ;;  %v2465_v52 = vmax.f32 %v6499_v19, %v3534_v39  ;;  %v6501_v3 = vld [vmem:[#allocation11_spill] sm:$0xff] }
 0x4be   : > { %v2070_v32 = vpop.permute.xlu2 %2069  ;;  %v2461_v31 = vmax.f32 %v6501_v3, %v3530_v41 }
 0x4bf   : > { %v5446_v56 = vmax.f32 %v2056_v17, %v2070_v32  ;;  %v5642_v17 = vld [vmem:[%s3772_s18 + $0x1c8] sm:$0xff] }
 0x4c0   : > { %6502 = vst [vmem:[#allocation10_spill] sm:$0xff] %v5642_v17 }
 0x4c1   : > { %v2068_v60 = vpop.permute.xlu1 %2067  ;;  %2109 = vrot.lane.b32.xlu1 %v5446_v56, %s3687_s16 }
 0x4c2   : > { %v5454_v21 = vmax.f32 %v2055_v7, %v2068_v60  ;;  %v5647_v7 = vmax.f32 %v2465_v52, %v5634_v13  ;;  %v5652_v60 = vmax.f32 %v2461_v31, %v5642_v17 }
 0x4c4   : > { %v2060_v34 = vpop.permute.xlu0 %2059  ;;  %2107 = vrot.lane.b32.xlu0 %v5454_v21, %s3687_s16 }
 0x4c5   : > { %v5458_v49 = vmax.f32 %v2051_v51, %v2060_v34  ;;  %v3533_v34 = vld [vmem:[%s3772_s18 + $0x3b0] sm:$0xff] }
 0x4c7   : > { %2099 = vrot.lane.b32.xlu2 %v5458_v49, %s3687_s16 }
 0x4c9   : > { %v2074_v28 = vpop.permute.xlu1 %2073  ;;  %2123 = vrot.lane.b32.xlu1 %v5458_v49, %s3688_s19 }
 0x4ca   : > { %v5467_v33 = vmax.f32 %v2058_v46, %v2074_v28  ;;  %v6503_v28 = vld [vmem:[#allocation6_spill] sm:$0xff] }
 0x4cc   : > { %v2066_v30 = vpop.permute.xlu0 %2065  ;;  %2113 = vrot.lane.b32.xlu0 %v5467_v33, %s3687_s16 }
 0x4cd   : > { %v5471_v4 = vmax.f32 %v2054_v59, %v2066_v30  ;;  %v2464_v59 = vmax.f32 %v6503_v28, %v3533_v34  ;;  %v5663_v30 = vld [vmem:[%s3772_s18 + $0x3c0] sm:$0xff] }
 0x4ce   : > { %6504 = vst [vmem:[#allocation11_spill] sm:$0xff] %v5663_v30 }
 0x4cf   : > { %2105 = vrot.lane.b32.xlu2 %v5471_v4, %s3687_s16 }
 0x4d1   : > { %2129 = vrot.lane.b32.xlu1 %v5471_v4, %s3688_s19 }
 0x4d4   : > { %v2072_v57 = vpop.permute.xlu0 %2071  ;;  %2127 = vrot.lane.b32.xlu0 %v5429_v0, %s3688_s19 }
 0x4d5   : > { %v5480_v23 = vmax.f32 %v2057_v14, %v2072_v57  ;;  %v5668_v57 = vmax.f32 %v2464_v59, %v5663_v30 }
 0x4d7   : > { %2111 = vrot.lane.b32.xlu2 %v5480_v23, %s3687_s16 }
 0x4d9   : > { %2135 = vrot.lane.b32.xlu1 %v5480_v23, %s3688_s19 }
 0x4dc   : > { %2133 = vrot.lane.b32.xlu0 %v5446_v56, %s3688_s19 }
 0x4df   : > { %2125 = vrot.lane.b32.xlu2 %v5438_v20, %s3688_s19 }
 0x4e1   : > { %2149 = vrot.lane.b32.xlu1 %v5438_v20, %s3689_s20 }
 0x4e4   : > { %2147 = vrot.lane.b32.xlu0 %v5458_v49, %s3689_s20 }
 0x4e7   : > { %2131 = vrot.lane.b32.xlu2 %v5454_v21, %s3688_s19 }
 0x4e9   : > { %2155 = vrot.lane.b32.xlu1 %v5454_v21, %s3689_s20 }
 0x4ec   : > { %2153 = vrot.lane.b32.xlu0 %v5471_v4, %s3689_s20 }
 0x4ef   : > { %2137 = vrot.lane.b32.xlu2 %v5467_v33, %s3688_s19 }
 0x4f1   : > { %2161 = vrot.lane.b32.xlu1 %v5467_v33, %s3689_s20 }
 0x4f4   : > { %2159 = vrot.lane.b32.xlu0 %v5480_v23, %s3689_s20 }
 0x4f7   : > { %2151 = vrot.lane.b32.xlu2 %v5429_v0, %s3689_s20 }
 0x4f9   : > { %2175 = vrot.lane.b32.xlu1 %v5429_v0, %s3690_s21 }
 0x4fc   : > { %2173 = vrot.lane.b32.xlu0 %v5438_v20, %s3690_s21 }
 0x4ff   : > { %2157 = vrot.lane.b32.xlu2 %v5446_v56, %s3689_s20 }
 0x501   : > { %2181 = vrot.lane.b32.xlu1 %v5446_v56, %s3690_s21 }
 0x504   : > { %2179 = vrot.lane.b32.xlu0 %v5454_v21, %s3690_s21 }
 0x507   : > { %2171 = vrot.lane.b32.xlu2 %v5458_v49, %s3690_s21 }
 0x509   : > { %2195 = vrot.lane.b32.xlu1 %v5458_v49, %s3691_s22 }
 0x50c   : > { %2185 = vrot.lane.b32.xlu0 %v5467_v33, %s3690_s21 }
 0x50f   : > { %2177 = vrot.lane.b32.xlu2 %v5471_v4, %s3690_s21 }
 0x511   : > { %2201 = vrot.lane.b32.xlu1 %v5471_v4, %s3691_s22 }
 0x514   : > { %2199 = vrot.lane.b32.xlu0 %v5429_v0, %s3691_s22 }
 0x517   : > { %2183 = vrot.lane.b32.xlu2 %v5480_v23, %s3690_s21 }
 0x519   : > { %2207 = vrot.lane.b32.xlu1 %v5480_v23, %s3691_s22 }
 0x51c   : > { %2205 = vrot.lane.b32.xlu0 %v5446_v56, %s3691_s22 }
 0x51f   : > { %2197 = vrot.lane.b32.xlu2 %v5438_v20, %s3691_s22 }
 0x521   : > { %v5538_v54 = vpop.permute.xlu2 %2099  ;;  %2221 = vrot.lane.b32.xlu1 %v5438_v20, %s3692_s23 }
 0x522   : > { %v2243_v1 = vsel %vm410_vm0, %v5458_v49, %v5538_v54 }
 0x524   : > { %2219 = vrot.lane.b32.xlu0 %v5458_v49, %s3692_s23 }
 0x527   : > { %2203 = vrot.lane.b32.xlu2 %v5454_v21, %s3691_s22 }
 0x529   : > { %v5546_v50 = vpop.permute.xlu2 %2105  ;;  %2227 = vrot.lane.b32.xlu1 %v5454_v21, %s3692_s23 }
 0x52a   : > { %v2246_v11 = vsel %vm410_vm0, %v5471_v4, %v5546_v50 }
 0x52b   : > { %v5550_v55 = vpop.permute.xlu1 %2103 }
 0x52c   : > { %2225 = vrot.lane.b32.xlu0 %v5471_v4, %s3692_s23  ;;  %v2245_v61 = vsel %vm410_vm0, %v5429_v0, %v5550_v55 }
 0x52e   : > { %v5554_v2 = vpop.permute.xlu0 %2101 }
 0x52f   : > { %2209 = vrot.lane.b32.xlu2 %v5467_v33, %s3691_s22  ;;  %v2244_v35 = vsel %vm410_vm0, %v5438_v20, %v5554_v2 }
 0x531   : > { %v5559_v63 = vpop.permute.xlu2 %2111  ;;  %2233 = vrot.lane.b32.xlu1 %v5467_v33, %s3692_s23 }
 0x532   : > { %v2249_v20 = vsel %vm410_vm0, %v5480_v23, %v5559_v63 }
 0x533   : > { %v5568_v22 = vpop.permute.xlu1 %2109 }
 0x534   : > { %2231 = vrot.lane.b32.xlu0 %v5480_v23, %s3692_s23  ;;  %v2248_v49 = vsel %vm410_vm0, %v5446_v56, %v5568_v22 }
 0x536   : > { %v5579_v26 = vpop.permute.xlu0 %2107 }
 0x537   : > { %2223 = vrot.lane.b32.xlu2 %v5429_v0, %s3692_s23  ;;  %v2247_v54 = vsel %vm410_vm0, %v5454_v21, %v5579_v26 }
 0x539   : > { %v5584_v29 = vpop.permute.xlu2 %2125  ;;  %2486 = vrot.lane.b32.xlu1 %v5574_v37, %s3687_s16 }
 0x53a   : > { %v2252_v30 = vsel %vm419_vm1, %v2244_v35, %v5584_v29 }
 0x53b   : > { %v5596_v10 = vpop.permute.xlu1 %2123 }
 0x53c   : > { %2484 = vrot.lane.b32.xlu0 %v5587_v12, %s3687_s16  ;;  %v2251_v4 = vsel %vm419_vm1, %v2243_v1, %v5596_v10 }
 0x53e   : > { %v5608_v36 = vpop.permute.xlu0 %2113 }
 0x53f   : > { %2229 = vrot.lane.b32.xlu2 %v5446_v56, %s3692_s23  ;;  %v2250_v23 = vsel %vm410_vm0, %v5467_v33, %v5608_v36 }
 0x541   : > { %v5616_v27 = vpop.permute.xlu2 %2131  ;;  %2492 = vrot.lane.b32.xlu1 %v5603_v43, %s3687_s16 }
 0x542   : > { %v2255_v55 = vsel %vm419_vm1, %v2247_v54, %v5616_v27 }
 0x543   : > { %v5627_v15 = vpop.permute.xlu1 %2129 }
 0x544   : > { %2490 = vrot.lane.b32.xlu0 %v5619_v48, %s3687_s16  ;;  %v2254_v21 = vsel %vm419_vm1, %v2246_v11, %v5627_v15 }
 0x546   : > { %v5636_v5 = vpop.permute.xlu0 %2127 }
 0x547   : > { %2482 = vrot.lane.b32.xlu2 %v5625_v24, %s3687_s16  ;;  %v2253_v1 = vsel %vm419_vm1, %v2245_v61, %v5636_v5 }
 0x549   : > { %v5644_v32 = vpop.permute.xlu2 %2137  ;;  %2514 = vrot.lane.b32.xlu1 %v5625_v24, %s3688_s19 }
 0x54a   : > { %v2258_v33 = vsel %vm419_vm1, %v2250_v23, %v5644_v32 }
 0x54b   : > { %v5654_v51 = vpop.permute.xlu1 %2135 }
 0x54c   : > { %2496 = vrot.lane.b32.xlu0 %v5647_v7, %s3687_s16  ;;  %v2257_v27 = vsel %vm419_vm1, %v2249_v20, %v5654_v51 }
 0x54e   : > { %v2134_v46 = vpop.permute.xlu0 %2133 }
 0x54f   : > { %2488 = vrot.lane.b32.xlu2 %v5652_v60, %s3687_s16  ;;  %v2256_v22 = vsel %vm419_vm1, %v2248_v49, %v2134_v46 }
 0x551   : > { %v2152_v14 = vpop.permute.xlu2 %2151  ;;  %2520 = vrot.lane.b32.xlu1 %v5652_v60, %s3688_s19 }
 0x552   : > { %v2261_v11 = vsel %vm428_vm2, %v2253_v1, %v2152_v14 }
 0x553   : > { %v2150_v8 = vpop.permute.xlu1 %2149 }
 0x554   : > { %2518 = vrot.lane.b32.xlu0 %v5574_v37, %s3688_s19  ;;  %v2260_v17 = vsel %vm428_vm2, %v2252_v30, %v2150_v8 }
 0x556   : > { %v2148_v45 = vpop.permute.xlu0 %2147 }
 0x557   : > { %2494 = vrot.lane.b32.xlu2 %v5668_v57, %s3687_s16  ;;  %v2259_v63 = vsel %vm428_vm2, %v2251_v4, %v2148_v45 }
 0x559   : > { %v2158_v18 = vpop.permute.xlu2 %2157  ;;  %2526 = vrot.lane.b32.xlu1 %v5668_v57, %s3688_s19 }
 0x55a   : > { %v2264_v29 = vsel %vm428_vm2, %v2256_v22, %v2158_v18 }
 0x55b   : > { %v2156_v47 = vpop.permute.xlu1 %2155 }
 0x55c   : > { %2524 = vrot.lane.b32.xlu0 %v5603_v43, %s3688_s19  ;;  %v2263_v5 = vsel %vm428_vm2, %v2255_v55, %v2156_v47 }
 0x55e   : > { %v2154_v38 = vpop.permute.xlu0 %2153 }
 0x55f   : > { %2516 = vrot.lane.b32.xlu2 %v5587_v12, %s3688_s19  ;;  %v2262_v8 = vsel %vm428_vm2, %v2254_v21, %v2154_v38 }
 0x561   : > { %v2172_v25 = vpop.permute.xlu2 %2171 }
 0x562   : > { %v2267_v26 = vsel %vm437_vm3, %v2259_v63, %v2172_v25 }
 0x563   : > { %v2162_v42 = vpop.permute.xlu1 %2161 }
 0x564   : > { %v2266_v45 = vsel %vm428_vm2, %v2258_v33, %v2162_v42 }
 0x566   : > { %v2160_v9 = vpop.permute.xlu0 %2159 }
 0x567   : > { %2522 = vrot.lane.b32.xlu2 %v5619_v48, %s3688_s19  ;;  %v2265_v18 = vsel %vm428_vm2, %v2257_v27, %v2160_v9 }
 0x569   : > { %v2178_v58 = vpop.permute.xlu2 %2177 }
 0x56a   : > { %v2270_v47 = vsel %vm437_vm3, %v2262_v8, %v2178_v58 }
 0x56b   : > { %v2176_v53 = vpop.permute.xlu1 %2175 }
 0x56e   : > { %v2174_v44 = vpop.permute.xlu0 %2173 }
 0x56f   : > { %2528 = vrot.lane.b32.xlu2 %v5647_v7, %s3688_s19  ;;  %v2268_v2 = vsel %vm437_vm3, %v2260_v17, %v2174_v44 }
 0x571   : > { %v5684_v6 = vpop.permute.xlu2 %2183 }
 0x572   : > { %v2273_v58 = vsel %vm437_vm3, %v2265_v18, %v5684_v6 }
 0x573   : > { %v2182_v16 = vpop.permute.xlu1 %2181 }
 0x574   : > { %v2272_v61 = vsel %vm437_vm3, %v2264_v29, %v2182_v16 }
 0x576   : > { %v2180_v40 = vpop.permute.xlu0 %2179 }
 0x577   : > { %v2271_v14 = vsel %vm437_vm3, %v2263_v5, %v2180_v40 }
 0x579   : > { %v2198_v39 = vpop.permute.xlu2 %2197 }
 0x57a   : > { %v2276_v50 = vsel %vm446_vm4, %v2268_v2, %v2198_v39  ;;  %v2269_v39 = vsel %vm437_vm3, %v2261_v11, %v2176_v53 }
 0x57b   : > { %v2196_v41 = vpop.permute.xlu1 %2195 }
 0x57c   : > { %v2275_v35 = vsel %vm446_vm4, %v2267_v26, %v2196_v41 }
 0x57e   : > { %v5686_v19 = vpop.permute.xlu0 %2185 }
 0x57f   : > { %v2274_v53 = vsel %vm437_vm3, %v2266_v45, %v5686_v19 }
 0x581   : > { %v2204_v52 = vpop.permute.xlu2 %2203 }
 0x582   : > { %v2279_v41 = vsel %vm446_vm4, %v2271_v14, %v2204_v52 }
 0x583   : > { %v5688_v3 = vpop.permute.xlu1 %2201 }
 0x584   : > { %v2278_v52 = vsel %vm446_vm4, %v2270_v47, %v5688_v3 }
 0x586   : > { %v2200_v31 = vpop.permute.xlu0 %2199 }
 0x587   : > { %v2277_v42 = vsel %vm446_vm4, %v2269_v39, %v2200_v31 }
 0x589   : > { %v5690_v34 = vpop.permute.xlu2 %2209 }
 0x58b   : > { %v5692_v28 = vpop.permute.xlu1 %2207 }
 0x58e   : > { %v2206_v59 = vpop.permute.xlu0 %2205 }
 0x58f   : > { %v2280_v17 = vsel %vm446_vm4, %v2272_v61, %v2206_v59 }
 0x591   : > { %v2224_v13 = vpop.permute.xlu2 %2223 }
 0x592   : > { %v2285_v40 = vsel %vm455_vm5, %v2277_v42, %v2224_v13  ;;  %v2282_v13 = vsel %vm446_vm4, %v2274_v53, %v5690_v34 }
 0x593   : > { %v2222_v0 = vpop.permute.xlu1 %2221 }
 0x594   : > { %v2284_v56 = vsel %vm455_vm5, %v2276_v50, %v2222_v0 }
 0x595   : > { %v2300_v10 = vrot.slane %v2284_v56, 1  ;;  %v2328_v44 = vrot.slane %v2284_v56, 2 }
 0x596   : > { %v2220_v36 = vpop.permute.xlu0 %2219 }
 0x597   : > { %v2283_v15 = vsel %vm455_vm5, %v2275_v35, %v2220_v36  ;;  %v2320_v25 = vmax.f32 %v2284_v56, %v2300_v10  ;;  %v2302_v56 = vrot.slane %v2285_v40, 1  ;;  %v2330_v36 = vrot.slane %v2285_v40, 2 }
 0x598   : > { %v2299_v32 = vrot.slane %v2283_v15, 1  ;;  %v2327_v46 = vrot.slane %v2283_v15, 2 }
 0x599   : > { %v2230_v30 = vpop.permute.xlu2 %2229  ;;  %v2348_v31 = vmax.f32 %v2320_v25, %v2328_v44 }
 0x59a   : > { %v2288_v51 = vsel %vm455_vm5, %v2280_v17, %v2230_v30  ;;  %v2301_v16 = vsel %vm472_vm6, %v2299_v32, %v2300_v10  ;;  %v2329_v9 = vsel %vm501_vm7, %v2327_v46, %v2328_v44 }
 0x59b   : > { %v2319_v59 = vmax.f32 %v2283_v15, %v2301_v16  ;;  %v2228_v38 = vpop.permute.xlu1 %2227  ;;  %v2306_v20 = vrot.slane %v2288_v51, 1  ;;  %v2334_v55 = vrot.slane %v2288_v51, 2  ;;  %v2387_v33 = vrot.slane %v2348_v31, 4 }
 0x59c   : > { %v2287_v2 = vsel %vm455_vm5, %v2279_v41, %v2228_v38  ;;  %v2395_v27 = vrot.slane %v2348_v31, 5  ;;  %v2403_v15 = vrot.slane %v2348_v31, 6  ;;  %v2281_v16 = vsel %vm446_vm4, %v2273_v58, %v5692_v28 }
 0x59d   : > { %v2347_v49 = vmax.f32 %v2319_v59, %v2329_v9  ;;  %v2305_v54 = vrot.slane %v2287_v2, 1  ;;  %v2333_v4 = vrot.slane %v2287_v2, 2  ;;  %v2324_v21 = vmax.f32 %v2288_v51, %v2306_v20 }
 0x59e   : > { %v2226_v50 = vpop.permute.xlu0 %2225 }
 0x59f   : > { %v2359_v0 = vrot.slane %v2347_v49, 1  ;;  %v2367_v23 = vrot.slane %v2347_v49, 2  ;;  %v2307_v63 = vsel %vm472_vm6, %v2305_v54, %v2306_v20  ;;  %v2375_v22 = vrot.slane %v2347_v49, 3 }
 0x5a0   : > { %v2323_v1 = vmax.f32 %v2287_v2, %v2307_v63  ;;  %v2335_v3 = vsel %vm501_vm7, %v2333_v4, %v2334_v55  ;;  %v2286_v26 = vsel %vm455_vm5, %v2278_v52, %v2226_v50  ;;  %v2352_v30 = vmax.f32 %v2324_v21, %v2334_v55 }
 0x5a1   : > { %v5768_v6 = vpop.permute.xlu2 %2482  ;;  %v2411_v19 = vsel %vm586_vm8, %v2347_v49, %v2359_v0  ;;  %v2303_v10 = vrot.slane %v2286_v26, 1  ;;  %v2331_v11 = vrot.slane %v2286_v26, 2 }
 0x5a2   : > { %v2415_v29 = vsel %vm591_vm9, %v2411_v19, %v2367_v23  ;;  %v2351_v35 = vmax.f32 %v2323_v1, %v2335_v3  ;;  %v2397_v28 = vrot.slane %v2352_v30, 5 }
 0x5a3   : > { %v2419_v34 = vsel %vm596_vm10, %v2415_v29, %v2375_v22  ;;  %v2234_v61 = vpop.permute.xlu1 %2233  ;;  %v2304_v8 = vsel %vm472_vm6, %v2302_v56, %v2303_v10  ;;  %v2322_v45 = vmax.f32 %v2286_v26, %v2303_v10  ;;  %v2332_v41 = vsel %vm501_vm7, %v2330_v36, %v2331_v11 }
 0x5a4   : > { %v2423_v5 = vsel %vm601_vm11, %v2419_v34, %v2387_v33  ;;  %v2361_v17 = vrot.slane %v2351_v35, 1  ;;  %v2369_v32 = vrot.slane %v2351_v35, 2  ;;  %v2321_v14 = vmax.f32 %v2285_v40, %v2304_v8 }
 0x5a5   : > { %v2427_v46 = vsel %vm606_vm12, %v2423_v5, %v2395_v27  ;;  %v2290_v25 = vsel %vm455_vm5, %v2282_v13, %v2234_v61  ;;  %v2377_v47 = vrot.slane %v2351_v35, 3  ;;  %v2350_v20 = vmax.f32 %v2322_v45, %v2331_v11 }
 0x5a6   : > { %v2431_v18 = vsel %vm501_vm7, %v2427_v46, %v2403_v15  ;;  %v2413_v51 = vsel %vm586_vm8, %v2351_v35, %v2361_v17  ;;  %v2232_v44 = vpop.permute.xlu0 %2231  ;;  %v2349_v59 = vmax.f32 %v2321_v14, %v2332_v41  ;;  %v2309_v2 = vrot.slane %v2290_v25, 1 }
 0x5a7   : > { %3523 = vst.msk [vmem:[%s4239_s26 + $0x20] sm:$0x7f] %vm615_vm13, %v2431_v18  ;;  %v2417_v39 = vsel %vm591_vm9, %v2413_v51, %v2369_v32  ;;  %v2289_v38 = vsel %vm455_vm5, %v2281_v16, %v2232_v44  ;;  %v2389_v40 = vrot.slane %v2352_v30, 4  ;;  %v2337_v0 = vrot.slane %v2290_v25, 2 }
 0x5a8   : > { %v2421_v9 = vsel %vm596_vm10, %v2417_v39, %v2377_v47  ;;  %v2360_v49 = vrot.slane %v2349_v59, 1  ;;  %v2368_v54 = vrot.slane %v2349_v59, 2  ;;  %v2308_v4 = vrot.slane %v2289_v38, 1 }
 0x5a9   : > { %v5788_v42 = vpop.permute.xlu2 %2488  ;;  %v2336_v58 = vrot.slane %v2289_v38, 2  ;;  %v2425_v52 = vsel %vm601_vm11, %v2421_v9, %v2389_v40  ;;  %v2376_v31 = vrot.slane %v2349_v59, 3  ;;  %v2388_v23 = vrot.slane %v2350_v20, 4 }
 0x5aa   : > { %v2412_v50 = vsel %vm586_vm8, %v2349_v59, %v2360_v49  ;;  %v2326_v63 = vmax.f32 %v2290_v25, %v2309_v2  ;;  %v2310_v13 = vsel %vm472_vm6, %v2308_v4, %v2309_v2  ;;  %v2396_v56 = vrot.slane %v2350_v20, 5 }
 0x5ab   : > { %v2487_v53 = vpop.permute.xlu1 %2486  ;;  %v2416_v55 = vsel %vm591_vm9, %v2412_v50, %v2368_v54  ;;  %v2325_v1 = vmax.f32 %v2289_v38, %v2310_v13  ;;  %v2429_v19 = vsel %vm606_vm12, %v2425_v52, %v2397_v28  ;;  %v2404_v3 = vrot.slane %v2350_v20, 6  ;;  %v3547_v13 = vld [vmem:[%s3772_s18 + $0xd0] sm:$0xff] }
 0x5ac   : > { %v2420_v21 = vsel %vm596_vm10, %v2416_v55, %v2376_v31  ;;  %v2338_v33 = vsel %vm501_vm7, %v2336_v58, %v2337_v0  ;;  %v2405_v29 = vrot.slane %v2352_v30, 6  ;;  %v2354_v34 = vmax.f32 %v2326_v63, %v2337_v0  ;;  %v3548_v0 = vld [vmem:[%s3772_s18 + $0xd8] sm:$0xff] }
 0x5ad   : > { %v2424_v26 = vsel %vm601_vm11, %v2420_v21, %v2388_v23  ;;  %v2353_v10 = vmax.f32 %v2325_v1, %v2338_v33  ;;  %v2506_v41 = vmax.f32 %v5625_v24, %v5768_v6  ;;  %v2509_v24 = vmax.f32 %v5652_v60, %v5788_v42  ;;  %v3556_v21 = vld [vmem:[%s3772_s18 + $0xe8] sm:$0xff] }
 0x5ae   : > { %v2485_v22 = vpop.permute.xlu0 %2484  ;;  %v2428_v35 = vsel %vm606_vm12, %v2424_v26, %v2396_v56  ;;  %v2433_v11 = vsel %vm501_vm7, %v2429_v19, %v2405_v29  ;;  %v2390_v46 = vrot.slane %v2354_v34, 4  ;;  %v2398_v45 = vrot.slane %v2354_v34, 5  ;;  %v3555_v26 = vld [vmem:[%s3772_s18 + $0xe0] sm:$0xff] }
 0x5af   : > { %v2432_v27 = vsel %vm501_vm7, %v2428_v35, %v2404_v3  ;;  %v2362_v61 = vrot.slane %v2353_v10, 1  ;;  %v2370_v15 = vrot.slane %v2353_v10, 2  ;;  %3525 = vst.msk [vmem:[%s4239_s26 + $0x90] sm:$0x7f] %vm615_vm13, %v2433_v11  ;;  %v2378_v17 = vrot.slane %v2353_v10, 3 }
 0x5b0   : > { %3524 = vst.msk [vmem:[%s4239_s26 + $0x58] sm:$0x7f] %vm615_vm13, %v2432_v27  ;;  %v2507_v8 = vmax.f32 %v5587_v12, %v2485_v22  ;;  %v2406_v14 = vrot.slane %v2354_v34, 6  ;;  %v2508_v49 = vmax.f32 %v5574_v37, %v2487_v53  ;;  %v2914_v63 = vmax.f32 %v5577_v62, %v3548_v0  ;;  %v6505_v22 = vld [vmem:[#allocation9_spill] sm:$0xff]  ;;  %v3551_v62 = vld [vmem:[%s3772_s18 + $0x2d0] sm:$0xff]  ;;  %v3550_v34 = vld [vmem:[%s3772_s18 + $0x1d8] sm:$0xff] }
 0x5b1   : > { %v2495_v36 = vpop.permute.xlu2 %2494  ;;  %v2414_v32 = vsel %vm586_vm8, %v2353_v10, %v2362_v61  ;;  %v2913_v19 = vmax.f32 %v6505_v22, %v3547_v13  ;;  %v3559_v61 = vld [vmem:[%s3772_s18 + $0x2e0] sm:$0xff] }
 0x5b2   : > { %v2418_v30 = vsel %vm591_vm9, %v2414_v32, %v2370_v15  ;;  %v2512_v42 = vmax.f32 %v5668_v57, %v2495_v36  ;;  %v5944_v3 = vmax.f32 %v2914_v63, %v3556_v21  ;;  %v6506_v36 = vld [vmem:[#allocation7_spill] sm:$0xff] }
 0x5b3   : > { %v2493_v5 = vpop.permute.xlu1 %2492  ;;  %v2422_v18 = vsel %vm596_vm10, %v2418_v30, %v2378_v17  ;;  %v5952_v35 = vmax.f32 %v2913_v19, %v3555_v26  ;;  %v2917_v27 = vmax.f32 %v6506_v36, %v3551_v62  ;;  %v3549_v32 = vld [vmem:[%s3772_s18 + $0x1d0] sm:$0xff]  ;;  %v3558_v30 = vld [vmem:[%s3772_s18 + $0x1e8] sm:$0xff] }
 0x5b4   : > { %v2426_v25 = vsel %vm601_vm11, %v2422_v18, %v2390_v46 }
 0x5b5   : > { %v2430_v44 = vsel %vm606_vm12, %v2426_v25, %v2398_v45  ;;  %v5966_v46 = vmax.f32 %v2917_v27, %v3559_v61  ;;  %v3554_v45 = vld [vmem:[%s3772_s18 + $0x3d8] sm:$0xff] }
 0x5b6   : > { %v2491_v51 = vpop.permute.xlu0 %2490  ;;  %v2434_v47 = vsel %vm501_vm7, %v2430_v44, %v2406_v14  ;;  %v3557_v44 = vld [vmem:[%s3772_s18 + $0x1e0] sm:$0xff] }
 0x5b7   : > { %3526 = vst.msk [vmem:[%s4239_s26 + $0xc8] sm:$0x7f] %vm615_vm13, %v2434_v47  ;;  %v2510_v38 = vmax.f32 %v5619_v48, %v2491_v51  ;;  %v6508_v51 = vld [vmem:[#allocation5_spill] sm:$0xff]  ;;  %v6509_v47 = vld [vmem:[#allocation12_spill] sm:$0xff] }
 0x5b8   : > { %v2915_v14 = vmax.f32 %v6508_v51, %v3549_v32 }
 0x5b9   : > { %v2517_v16 = vpop.permute.xlu2 %2516 }
 0x5ba   : > { %v5813_v39 = vmax.f32 %v2507_v8, %v2517_v16 }
 0x5bb   : > { %v2515_v12 = vpop.permute.xlu1 %2514 }
 0x5bc   : > { %2556 = vrot.lane.b32.xlu1 %v5813_v39, %s3687_s16  ;;  %v5821_v59 = vmax.f32 %v2506_v41, %v2515_v12  ;;  %v2920_v41 = vmax.f32 %v6509_v47, %v3554_v45  ;;  %v3553_v12 = vld [vmem:[%s3772_s18 + $0x3d0] sm:$0xff] }
 0x5be   : > { %v2497_v9 = vpop.permute.xlu0 %2496  ;;  %2554 = vrot.lane.b32.xlu0 %v5821_v59, %s3687_s16 }
 0x5bf   : > { %v2513_v48 = vmax.f32 %v5647_v7, %v2497_v9  ;;  %v2511_v7 = vmax.f32 %v5603_v43, %v2493_v5  ;;  %v6507_v5 = vld [vmem:[#allocation10_spill] sm:$0xff] }
 0x5c0   : > { %v2916_v17 = vmax.f32 %v6507_v5, %v3550_v34 }
 0x5c1   : > { %v2523_v20 = vpop.permute.xlu2 %2522 }
 0x5c2   : > { %v5826_v2 = vmax.f32 %v2510_v38, %v2523_v20  ;;  %v5975_v25 = vmax.f32 %v2916_v17, %v3558_v30  ;;  %v3562_v38 = vld [vmem:[%s3772_s18 + $0x3e8] sm:$0xff] }
 0x5c3   : > { %v2521_v6 = vpop.permute.xlu1 %2520 }
 0x5c4   : > { %2562 = vrot.lane.b32.xlu1 %v5826_v2, %s3687_s16  ;;  %v5832_v40 = vmax.f32 %v2509_v24, %v2521_v6  ;;  %v5986_v24 = vmax.f32 %v2915_v14, %v3557_v44 }
 0x5c6   : > { %v2519_v54 = vpop.permute.xlu0 %2518  ;;  %2560 = vrot.lane.b32.xlu0 %v5832_v40, %s3687_s16 }
 0x5c7   : > { %v5838_v28 = vmax.f32 %v2508_v49, %v2519_v54  ;;  %v5995_v54 = vmax.f32 %v2920_v41, %v3562_v38 }
 0x5c9   : > { %v2529_v4 = vpop.permute.xlu2 %2528  ;;  %2558 = vrot.lane.b32.xlu2 %v5838_v28, %s3687_s16 }
 0x5ca   : > { %v5842_v60 = vmax.f32 %v2513_v48, %v2529_v4  ;;  %v3552_v48 = vld [vmem:[%s3772_s18 + $0x2d8] sm:$0xff]  ;;  %v3561_v4 = vld [vmem:[%s3772_s18 + $0x3e0] sm:$0xff] }
 0x5cb   : > { %v2527_v58 = vpop.permute.xlu1 %2526 }
 0x5cc   : > { %2568 = vrot.lane.b32.xlu1 %v5842_v60, %s3687_s16  ;;  %v5847_v37 = vmax.f32 %v2512_v42, %v2527_v58 }
 0x5ce   : > { %v2525_v53 = vpop.permute.xlu0 %2524  ;;  %2566 = vrot.lane.b32.xlu0 %v5847_v37, %s3687_s16 }
 0x5cf   : > { %v5852_v52 = vmax.f32 %v2511_v7, %v2525_v53 }
 0x5d1   : > { %2564 = vrot.lane.b32.xlu2 %v5852_v52, %s3687_s16 }
 0x5d4   : > { %2582 = vrot.lane.b32.xlu1 %v5838_v28, %s3688_s19 }
 0x5d6   : > { %2580 = vrot.lane.b32.xlu0 %v5813_v39, %s3688_s19 }
 0x5d9   : > { %2578 = vrot.lane.b32.xlu2 %v5821_v59, %s3688_s19 }
 0x5dc   : > { %2588 = vrot.lane.b32.xlu1 %v5852_v52, %s3688_s19 }
 0x5de   : > { %2586 = vrot.lane.b32.xlu0 %v5826_v2, %s3688_s19 }
 0x5e1   : > { %2584 = vrot.lane.b32.xlu2 %v5832_v40, %s3688_s19 }
 0x5e4   : > { %2602 = vrot.lane.b32.xlu1 %v5821_v59, %s3689_s20 }
 0x5e6   : > { %2592 = vrot.lane.b32.xlu0 %v5842_v60, %s3688_s19 }
 0x5e9   : > { %2590 = vrot.lane.b32.xlu2 %v5847_v37, %s3688_s19 }
 0x5ec   : > { %2608 = vrot.lane.b32.xlu1 %v5832_v40, %s3689_s20 }
 0x5ee   : > { %2606 = vrot.lane.b32.xlu0 %v5838_v28, %s3689_s20 }
 0x5f1   : > { %2604 = vrot.lane.b32.xlu2 %v5813_v39, %s3689_s20 }
 0x5f4   : > { %2614 = vrot.lane.b32.xlu1 %v5847_v37, %s3689_s20 }
 0x5f6   : > { %2612 = vrot.lane.b32.xlu0 %v5852_v52, %s3689_s20 }
 0x5f9   : > { %2610 = vrot.lane.b32.xlu2 %v5826_v2, %s3689_s20 }
 0x5fc   : > { %2628 = vrot.lane.b32.xlu1 %v5813_v39, %s3690_s21 }
 0x5fe   : > { %2626 = vrot.lane.b32.xlu0 %v5821_v59, %s3690_s21 }
 0x601   : > { %2616 = vrot.lane.b32.xlu2 %v5842_v60, %s3689_s20 }
 0x604   : > { %2634 = vrot.lane.b32.xlu1 %v5826_v2, %s3690_s21 }
 0x606   : > { %2632 = vrot.lane.b32.xlu0 %v5832_v40, %s3690_s21 }
 0x609   : > { %2630 = vrot.lane.b32.xlu2 %v5838_v28, %s3690_s21 }
 0x60c   : > { %2640 = vrot.lane.b32.xlu1 %v5842_v60, %s3690_s21 }
 0x60e   : > { %2638 = vrot.lane.b32.xlu0 %v5847_v37, %s3690_s21 }
 0x611   : > { %2636 = vrot.lane.b32.xlu2 %v5852_v52, %s3690_s21 }
 0x614   : > { %2654 = vrot.lane.b32.xlu1 %v5838_v28, %s3691_s22 }
 0x616   : > { %2652 = vrot.lane.b32.xlu0 %v5813_v39, %s3691_s22 }
 0x619   : > { %2650 = vrot.lane.b32.xlu2 %v5821_v59, %s3691_s22 }
 0x61c   : > { %2660 = vrot.lane.b32.xlu1 %v5852_v52, %s3691_s22 }
 0x61e   : > { %2658 = vrot.lane.b32.xlu0 %v5826_v2, %s3691_s22 }
 0x621   : > { %2656 = vrot.lane.b32.xlu2 %v5832_v40, %s3691_s22 }
 0x623   : > { %v2559_v43 = vpop.permute.xlu2 %2558 }
 0x624   : > { %2674 = vrot.lane.b32.xlu1 %v5821_v59, %s3692_s23  ;;  %v2700_v9 = vsel %vm410_vm0, %v5838_v28, %v2559_v43  ;;  %v3560_v43 = vld [vmem:[%s3772_s18 + $0x2e8] sm:$0xff] }
 0x626   : > { %2664 = vrot.lane.b32.xlu0 %v5842_v60, %s3691_s22 }
 0x629   : > { %2662 = vrot.lane.b32.xlu2 %v5847_v37, %s3691_s22 }
 0x62b   : > { %v5922_v57 = vpop.permute.xlu2 %2564 }
 0x62c   : > { %2680 = vrot.lane.b32.xlu1 %v5832_v40, %s3692_s23 }
 0x62e   : > { %v2557_v31 = vpop.permute.xlu1 %2556  ;;  %2678 = vrot.lane.b32.xlu0 %v5838_v28, %s3692_s23 }
 0x62f   : > { %v2699_v42 = vsel %vm410_vm0, %v5813_v39, %v2557_v31 }
 0x630   : > { %v2555_v50 = vpop.permute.xlu0 %2554 }
 0x631   : > { %2676 = vrot.lane.b32.xlu2 %v5813_v39, %s3692_s23  ;;  %v2698_v23 = vsel %vm410_vm0, %v5821_v59, %v2555_v50  ;;  %v2703_v39 = vsel %vm410_vm0, %v5852_v52, %v5922_v57 }
 0x633   : > { %v2579_v55 = vpop.permute.xlu2 %2578 }
 0x634   : > { %2686 = vrot.lane.b32.xlu1 %v5847_v37, %s3692_s23  ;;  %v5938_v56 = vsel %vm419_vm1, %v2698_v23, %v2579_v55 }
 0x636   : > { %v2563_v1 = vpop.permute.xlu1 %2562  ;;  %2684 = vrot.lane.b32.xlu0 %v5852_v52, %s3692_s23 }
 0x637   : > { %v2702_v63 = vsel %vm410_vm0, %v5826_v2, %v2563_v1 }
 0x638   : > { %v2561_v33 = vpop.permute.xlu0 %2560 }
 0x639   : > { %2682 = vrot.lane.b32.xlu2 %v5826_v2, %s3692_s23  ;;  %v2701_v29 = vsel %vm410_vm0, %v5832_v40, %v2561_v33  ;;  %v6510_v40 = vld [vmem:[#allocation11_spill] sm:$0xff] }
 0x63a   : > { %v2919_v49 = vmax.f32 %v6510_v40, %v3553_v12 }
 0x63b   : > { %v2585_v10 = vpop.permute.xlu2 %2584 }
 0x63c   : > { %2939 = vrot.lane.b32.xlu1 %v5944_v3, %s3687_s16  ;;  %v5959_v11 = vsel %vm419_vm1, %v2701_v29, %v2585_v10  ;;  %v6004_v53 = vmax.f32 %v2919_v49, %v3561_v4 }
 0x63e   : > { %v2569_v15 = vpop.permute.xlu1 %2568  ;;  %2937 = vrot.lane.b32.xlu0 %v5952_v35, %s3687_s16 }
 0x63f   : > { %v2705_v2 = vsel %vm410_vm0, %v5842_v60, %v2569_v15 }
 0x640   : > { %v2567_v8 = vpop.permute.xlu0 %2566 }
 0x641   : > { %2688 = vrot.lane.b32.xlu2 %v5842_v60, %s3692_s23  ;;  %v2704_v18 = vsel %vm410_vm0, %v5847_v37, %v2567_v8  ;;  %v6511_v37 = vld [vmem:[#allocation8_spill] sm:$0xff] }
 0x642   : > { %v2918_v7 = vmax.f32 %v6511_v37, %v3552_v48 }
 0x643   : > { %v2591_v16 = vpop.permute.xlu2 %2590 }
 0x644   : > { %2945 = vrot.lane.b32.xlu1 %v5966_v46, %s3687_s16  ;;  %v2712_v59 = vsel %vm419_vm1, %v2704_v18, %v2591_v16  ;;  %v6013_v23 = vmax.f32 %v2918_v7, %v3560_v43 }
 0x646   : > { %v2583_v20 = vpop.permute.xlu1 %2582  ;;  %2943 = vrot.lane.b32.xlu0 %v5975_v25, %s3687_s16 }
 0x647   : > { %v5989_v6 = vsel %vm419_vm1, %v2700_v9, %v2583_v20 }
 0x648   : > { %v2581_v58 = vpop.permute.xlu0 %2580 }
 0x649   : > { %2941 = vrot.lane.b32.xlu2 %v5986_v24, %s3687_s16  ;;  %v2707_v28 = vsel %vm419_vm1, %v2699_v42, %v2581_v58 }
 0x64b   : > { %v2605_v50 = vpop.permute.xlu2 %2604 }
 0x64c   : > { %2951 = vrot.lane.b32.xlu1 %v5995_v54, %s3687_s16  ;;  %v2715_v0 = vsel %vm428_vm2, %v2707_v28, %v2605_v50 }
 0x64e   : > { %v2589_v31 = vpop.permute.xlu1 %2588  ;;  %2949 = vrot.lane.b32.xlu0 %v6004_v53, %s3687_s16 }
 0x64f   : > { %v6018_v55 = vsel %vm419_vm1, %v2703_v39, %v2589_v31 }
 0x650   : > { %v2587_v13 = vpop.permute.xlu0 %2586 }
 0x651   : > { %2947 = vrot.lane.b32.xlu2 %v6013_v23, %s3687_s16  ;;  %v2710_v21 = vsel %vm419_vm1, %v2702_v63, %v2587_v13 }
 0x653   : > { %v2611_v22 = vpop.permute.xlu2 %2610 }
 0x654   : > { %2973 = vrot.lane.b32.xlu1 %v5986_v24, %s3688_s19  ;;  %v6028_v52 = vsel %vm428_vm2, %v2710_v21, %v2611_v22 }
 0x656   : > { %v2603_v57 = vpop.permute.xlu1 %2602  ;;  %2971 = vrot.lane.b32.xlu0 %v5944_v3, %s3688_s19 }
 0x658   : > { %v2593_v1 = vpop.permute.xlu0 %2592 }
 0x659   : > { %2969 = vrot.lane.b32.xlu2 %v5952_v35, %s3688_s19  ;;  %v2713_v19 = vsel %vm419_vm1, %v2705_v2, %v2593_v1 }
 0x65b   : > { %v2617_v26 = vpop.permute.xlu2 %2616 }
 0x65c   : > { %2979 = vrot.lane.b32.xlu1 %v6013_v23, %s3688_s19  ;;  %v2721_v33 = vsel %vm428_vm2, %v2713_v19, %v2617_v26 }
 0x65e   : > { %v2609_v62 = vpop.permute.xlu1 %2608  ;;  %2977 = vrot.lane.b32.xlu0 %v5966_v46, %s3688_s19 }
 0x65f   : > { %v2717_v29 = vsel %vm428_vm2, %v5959_v11, %v2609_v62 }
 0x660   : > { %v2607_v60 = vpop.permute.xlu0 %2606 }
 0x661   : > { %2975 = vrot.lane.b32.xlu2 %v5975_v25, %s3688_s19  ;;  %v2716_v50 = vsel %vm428_vm2, %v5989_v6, %v2607_v60 }
 0x663   : > { %v2631_v10 = vpop.permute.xlu2 %2630 }
 0x666   : > { %v2615_v36 = vpop.permute.xlu1 %2614  ;;  %2983 = vrot.lane.b32.xlu0 %v5995_v54, %s3688_s19 }
 0x667   : > { %v2720_v27 = vsel %vm428_vm2, %v2712_v59, %v2615_v36  ;;  %v2714_v59 = vsel %vm428_vm2, %v5938_v56, %v2603_v57  ;;  %v2724_v57 = vsel %vm437_vm3, %v2716_v50, %v2631_v10 }
 0x668   : > { %v6049_v34 = vpop.permute.xlu0 %2612 }
 0x669   : > { %2981 = vrot.lane.b32.xlu2 %v6004_v53, %s3688_s19 }
 0x66b   : > { %v6053_v61 = vpop.permute.xlu2 %2636 }
 0x66e   : > { %v2629_v15 = vpop.permute.xlu1 %2628 }
 0x66f   : > { %v2723_v16 = vsel %vm437_vm3, %v2715_v0, %v2629_v15 }
 0x670   : > { %v2627_v11 = vpop.permute.xlu0 %2626 }
 0x671   : > { %v2722_v9 = vsel %vm437_vm3, %v2714_v59, %v2627_v11 }
 0x673   : > { %v2651_v5 = vpop.permute.xlu2 %2650 }
 0x674   : > { %v2730_v49 = vsel %vm446_vm4, %v2722_v9, %v2651_v5 }
 0x676   : > { %v2635_v17 = vpop.permute.xlu1 %2634 }
 0x677   : > { %v2726_v2 = vsel %vm437_vm3, %v6028_v52, %v2635_v17 }
 0x678   : > { %v2633_v32 = vpop.permute.xlu0 %2632 }
 0x679   : > { %v2725_v0 = vsel %vm437_vm3, %v2717_v29, %v2633_v32 }
 0x67b   : > { %v2657_v30 = vpop.permute.xlu2 %2656 }
 0x67c   : > { %v2733_v1 = vsel %vm446_vm4, %v2725_v0, %v2657_v30 }
 0x67e   : > { %v2641_v8 = vpop.permute.xlu1 %2640 }
 0x67f   : > { %v2729_v39 = vsel %vm437_vm3, %v2721_v33, %v2641_v8 }
 0x680   : > { %v2639_v45 = vpop.permute.xlu0 %2638 }
 0x681   : > { %v2728_v29 = vsel %vm437_vm3, %v2720_v27, %v2639_v45 }
 0x683   : > { %v6055_v18 = vpop.permute.xlu2 %2662 }
 0x686   : > { %v2655_v51 = vpop.permute.xlu1 %2654 }
 0x687   : > { %v2732_v60 = vsel %vm446_vm4, %v2724_v57, %v2655_v51  ;;  %v2719_v51 = vsel %vm428_vm2, %v6018_v55, %v6049_v34 }
 0x688   : > { %v2653_v14 = vpop.permute.xlu0 %2652 }
 0x689   : > { %v2731_v41 = vsel %vm446_vm4, %v2723_v16, %v2653_v14 }
 0x68b   : > { %v2677_v44 = vpop.permute.xlu2 %2676 }
 0x68c   : > { %v2739_v38 = vsel %vm455_vm5, %v2731_v41, %v2677_v44 }
 0x68d   : > { %v2755_v40 = vrot.slane %v2739_v38, 1  ;;  %v2783_v42 = vrot.slane %v2739_v38, 2 }
 0x68e   : > { %v6058_v47 = vpop.permute.xlu1 %2660 }
 0x68f   : > { %v2775_v37 = vmax.f32 %v2739_v38, %v2755_v40 }
 0x690   : > { %v2659_v12 = vpop.permute.xlu0 %2658 }
 0x691   : > { %v2803_v21 = vmax.f32 %v2775_v37, %v2783_v42  ;;  %v2734_v36 = vsel %vm446_vm4, %v2726_v2, %v2659_v12 }
 0x693   : > { %v2683_v20 = vpop.permute.xlu2 %2682  ;;  %v2842_v15 = vrot.slane %v2803_v21, 4  ;;  %v2850_v17 = vrot.slane %v2803_v21, 5  ;;  %v2858_v16 = vrot.slane %v2803_v21, 6 }
 0x696   : > { %v2675_v48 = vpop.permute.xlu1 %2674 }
 0x697   : > { %v2738_v4 = vsel %vm455_vm5, %v2730_v49, %v2675_v48  ;;  %v2736_v49 = vsel %vm446_vm4, %v2728_v29, %v6055_v18  ;;  %v2742_v48 = vsel %vm455_vm5, %v2734_v36, %v2683_v20 }
 0x698   : > { %v2754_v58 = vrot.slane %v2738_v4, 1  ;;  %v2782_v28 = vrot.slane %v2738_v4, 2  ;;  %v2665_v7 = vpop.permute.xlu0 %2664 }
 0x699   : > { %v2737_v63 = vsel %vm446_vm4, %v2729_v39, %v2665_v7  ;;  %v2788_v39 = vrot.slane %v2742_v48, 2 }
 0x69a   : > { %v2756_v43 = vsel %vm472_vm6, %v2754_v58, %v2755_v40  ;;  %v2784_v56 = vsel %vm501_vm7, %v2782_v28, %v2783_v42  ;;  %v2727_v28 = vsel %vm437_vm3, %v2719_v51, %v6053_v61 }
 0x69b   : > { %v2774_v31 = vmax.f32 %v2738_v4, %v2756_v43  ;;  %v2689_v13 = vpop.permute.xlu2 %2688  ;;  %v2735_v18 = vsel %vm446_vm4, %v2727_v28, %v6058_v47 }
 0x69c   : > { %v2745_v62 = vsel %vm455_vm5, %v2737_v63, %v2689_v13 }
 0x69d   : > { %v2802_v22 = vmax.f32 %v2774_v31, %v2784_v56  ;;  %v2764_v30 = vrot.slane %v2745_v62, 1  ;;  %v2760_v56 = vrot.slane %v2742_v48, 1  ;;  %v2792_v20 = vrot.slane %v2745_v62, 2 }
 0x69e   : > { %v2681_v19 = vpop.permute.xlu1 %2680 }
 0x69f   : > { %v2814_v26 = vrot.slane %v2802_v22, 1  ;;  %v2822_v6 = vrot.slane %v2802_v22, 2  ;;  %v2741_v33 = vsel %vm455_vm5, %v2733_v1, %v2681_v19  ;;  %v2830_v10 = vrot.slane %v2802_v22, 3 }
 0x6a0   : > { %v2758_v52 = vrot.slane %v2741_v33, 1  ;;  %v2679_v5 = vpop.permute.xlu0 %2678  ;;  %v2786_v44 = vrot.slane %v2741_v33, 2  ;;  %v2781_v42 = vmax.f32 %v2745_v62, %v2764_v30 }
 0x6a1   : > { %v2866_v11 = vsel %vm586_vm8, %v2802_v22, %v2814_v26  ;;  %v2740_v8 = vsel %vm455_vm5, %v2732_v60, %v2679_v5 }
 0x6a2   : > { %v2870_v32 = vsel %vm591_vm9, %v2866_v11, %v2822_v6  ;;  %v2757_v27 = vrot.slane %v2740_v8, 1  ;;  %v2785_v45 = vrot.slane %v2740_v8, 2  ;;  %v2777_v38 = vmax.f32 %v2741_v33, %v2758_v52 }
 0x6a3   : > { %v2874_v14 = vsel %vm596_vm10, %v2870_v32, %v2830_v10  ;;  %v6091_v12 = vpop.permute.xlu2 %2941  ;;  %v2809_v21 = vmax.f32 %v2781_v42, %v2792_v20 }
 0x6a4   : > { %v2878_v41 = vsel %vm601_vm11, %v2874_v14, %v2842_v15  ;;  %v2759_v9 = vsel %vm472_vm6, %v2757_v27, %v2758_v52  ;;  %v2787_v40 = vsel %vm501_vm7, %v2785_v45, %v2786_v44  ;;  %v2805_v50 = vmax.f32 %v2777_v38, %v2786_v44 }
 0x6a5   : > { %v2882_v59 = vsel %vm606_vm12, %v2878_v41, %v2850_v17  ;;  %v2776_v55 = vmax.f32 %v2740_v8, %v2759_v9  ;;  %v2845_v51 = vrot.slane %v2809_v21, 4 }
 0x6a6   : > { %v2886_v4 = vsel %vm501_vm7, %v2882_v59, %v2858_v16  ;;  %v2687_v34 = vpop.permute.xlu1 %2686  ;;  %v2843_v6 = vrot.slane %v2805_v50, 4  ;;  %v2851_v62 = vrot.slane %v2805_v50, 5  ;;  %v2859_v60 = vrot.slane %v2805_v50, 6 }
 0x6a7   : > { %3543 = vst.msk [vmem:[%s4239_s26 + $0x28] sm:$0x7f] %vm615_vm13, %v2886_v4  ;;  %v2744_v58 = vsel %vm455_vm5, %v2736_v49, %v2687_v34  ;;  %v2804_v37 = vmax.f32 %v2776_v55, %v2787_v40  ;;  %v2853_v59 = vrot.slane %v2809_v21, 5  ;;  %v2861_v49 = vrot.slane %v2809_v21, 6 }
 0x6a8   : > { %v2763_v7 = vrot.slane %v2744_v58, 1  ;;  %v2791_v43 = vrot.slane %v2744_v58, 2  ;;  %v2685_v0 = vpop.permute.xlu0 %2684 }
 0x6a9   : > { %v2815_v31 = vrot.slane %v2804_v37, 1  ;;  %v2823_v63 = vrot.slane %v2804_v37, 2  ;;  %v2743_v61 = vsel %vm455_vm5, %v2735_v18, %v2685_v0  ;;  %v2831_v2 = vrot.slane %v2804_v37, 3 }
 0x6aa   : > { %v2765_v13 = vsel %vm472_vm6, %v2763_v7, %v2764_v30  ;;  %v2793_v57 = vsel %vm501_vm7, %v2791_v43, %v2792_v20  ;;  %v2761_v19 = vrot.slane %v2743_v61, 1  ;;  %v2789_v47 = vrot.slane %v2743_v61, 2 }
 0x6ab   : > { %v2780_v22 = vmax.f32 %v2744_v58, %v2765_v13  ;;  %v2867_v1 = vsel %vm586_vm8, %v2804_v37, %v2815_v31  ;;  %v6111_v26 = vpop.permute.xlu2 %2947 }
 0x6ac   : > { %v2871_v33 = vsel %vm591_vm9, %v2867_v1, %v2823_v63  ;;  %v2762_v15 = vsel %vm472_vm6, %v2760_v56, %v2761_v19  ;;  %v2790_v10 = vsel %vm501_vm7, %v2788_v39, %v2789_v47  ;;  %v2779_v32 = vmax.f32 %v2743_v61, %v2761_v19 }
 0x6ad   : > { %v2808_v29 = vmax.f32 %v2780_v22, %v2793_v57  ;;  %v2875_v36 = vsel %vm596_vm10, %v2871_v33, %v2831_v2  ;;  %v2778_v8 = vmax.f32 %v2742_v48, %v2762_v15 }
 0x6ae   : > { %v2940_v11 = vpop.permute.xlu1 %2939  ;;  %v2879_v52 = vsel %vm601_vm11, %v2875_v36, %v2843_v6  ;;  %v2807_v9 = vmax.f32 %v2779_v32, %v2789_v47 }
 0x6af   : > { %v2817_v5 = vrot.slane %v2808_v29, 1  ;;  %v2825_v17 = vrot.slane %v2808_v29, 2  ;;  %v2883_v30 = vsel %vm606_vm12, %v2879_v52, %v2851_v62  ;;  %v2833_v44 = vrot.slane %v2808_v29, 3 }
 0x6b0   : > { %v2887_v14 = vsel %vm501_vm7, %v2883_v30, %v2859_v60  ;;  %v2938_v45 = vpop.permute.xlu0 %2937  ;;  %v2806_v41 = vmax.f32 %v2778_v8, %v2790_v10  ;;  %v2844_v18 = vrot.slane %v2807_v9, 4  ;;  %v2852_v56 = vrot.slane %v2807_v9, 5 }
 0x6b1   : > { %v2869_v27 = vsel %vm586_vm8, %v2808_v29, %v2817_v5  ;;  %3544 = vst.msk [vmem:[%s4239_s26 + $0x60] sm:$0x7f] %vm615_vm13, %v2887_v14  ;;  %v2961_v40 = vmax.f32 %v5952_v35, %v2938_v45  ;;  %v2860_v50 = vrot.slane %v2807_v9, 6  ;;  %v2962_v62 = vmax.f32 %v5944_v3, %v2940_v11 }
 0x6b2   : > { %v2873_v16 = vsel %vm591_vm9, %v2869_v27, %v2825_v17  ;;  %v2816_v4 = vrot.slane %v2806_v41, 1  ;;  %v2824_v55 = vrot.slane %v2806_v41, 2  ;;  %v2832_v37 = vrot.slane %v2806_v41, 3 }
 0x6b3   : > { %v2877_v38 = vsel %vm596_vm10, %v2873_v16, %v2833_v44  ;;  %v2970_v34 = vpop.permute.xlu2 %2969 }
 0x6b4   : > { %v2881_v48 = vsel %vm601_vm11, %v2877_v38, %v2845_v51  ;;  %v6128_v58 = vmax.f32 %v2961_v40, %v2970_v34  ;;  %v2868_v7 = vsel %vm586_vm8, %v2806_v41, %v2816_v4 }
 0x6b5   : > { %v2885_v42 = vsel %vm606_vm12, %v2881_v48, %v2853_v59  ;;  %v2872_v35 = vsel %vm591_vm9, %v2868_v7, %v2824_v55 }
 0x6b6   : > { %v2889_v28 = vsel %vm501_vm7, %v2885_v42, %v2861_v49  ;;  %v2946_v43 = vpop.permute.xlu1 %2945  ;;  %3009 = vrot.lane.b32.xlu1 %v6128_v58, %s3687_s16  ;;  %v2876_v20 = vsel %vm596_vm10, %v2872_v35, %v2832_v37 }
 0x6b7   : > { %v2880_v0 = vsel %vm601_vm11, %v2876_v20, %v2844_v18  ;;  %3546 = vst.msk [vmem:[%s4239_s26 + $0xd0] sm:$0x7f] %vm615_vm13, %v2889_v28  ;;  %v2965_v3 = vmax.f32 %v5966_v46, %v2946_v43 }
 0x6b8   : > { %v2944_v39 = vpop.permute.xlu0 %2943  ;;  %v2884_v31 = vsel %vm606_vm12, %v2880_v0, %v2852_v56 }
 0x6b9   : > { %v2964_v63 = vmax.f32 %v5975_v25, %v2944_v39  ;;  %v2888_v13 = vsel %vm501_vm7, %v2884_v31, %v2860_v50  ;;  %v2963_v25 = vmax.f32 %v5986_v24, %v6091_v12  ;;  %v2966_v24 = vmax.f32 %v6013_v23, %v6111_v26 }
 0x6ba   : > { %3545 = vst.msk [vmem:[%s4239_s26 + $0x98] sm:$0x7f] %vm615_vm13, %v2888_v13 }
 0x6bb   : > { %v2976_v21 = vpop.permute.xlu2 %2975 }
 0x6bc   : > { %v6144_v22 = vmax.f32 %v2964_v63, %v2976_v21 }
 0x6be   : > { %v2952_v57 = vpop.permute.xlu1 %2951  ;;  %3015 = vrot.lane.b32.xlu1 %v6144_v22, %s3687_s16 }
 0x6bf   : > { %v2968_v23 = vmax.f32 %v5995_v54, %v2952_v57 }
 0x6c0   : > { %v2950_v61 = vpop.permute.xlu0 %2949 }
 0x6c1   : > { %v2967_v2 = vmax.f32 %v6004_v53, %v2950_v61 }
 0x6c3   : > { %v2982_v1 = vpop.permute.xlu2 %2981 }
 0x6c4   : > { %v6151_v19 = vmax.f32 %v2967_v2, %v2982_v1 }
 0x6c6   : > { %v2974_v47 = vpop.permute.xlu1 %2973  ;;  %3021 = vrot.lane.b32.xlu1 %v6151_v19, %s3687_s16 }
 0x6c7   : > { %v6155_v6 = vmax.f32 %v2963_v25, %v2974_v47 }
 0x6c8   : > { %v2972_v33 = vpop.permute.xlu0 %2971 }
 0x6c9   : > { %3013 = vrot.lane.b32.xlu0 %v6155_v6, %s3687_s16  ;;  %v6160_v29 = vmax.f32 %v2962_v62, %v2972_v33 }
 0x6cb   : > { %3011 = vrot.lane.b32.xlu2 %v6160_v29, %s3687_s16 }
 0x6ce   : > { %v2980_v53 = vpop.permute.xlu1 %2979  ;;  %3035 = vrot.lane.b32.xlu1 %v6160_v29, %s3688_s19 }
 0x6cf   : > { %v6168_v12 = vmax.f32 %v2966_v24, %v2980_v53 }
 0x6d0   : > { %v2978_v60 = vpop.permute.xlu0 %2977 }
 0x6d1   : > { %3019 = vrot.lane.b32.xlu0 %v6168_v12, %s3687_s16  ;;  %v6173_v36 = vmax.f32 %v2965_v3, %v2978_v60 }
 0x6d3   : > { %3017 = vrot.lane.b32.xlu2 %v6173_v36, %s3687_s16 }
 0x6d6   : > { %3041 = vrot.lane.b32.xlu1 %v6173_v36, %s3688_s19 }
 0x6d8   : > { %v2984_v26 = vpop.permute.xlu0 %2983 }
 0x6d9   : > { %3033 = vrot.lane.b32.xlu0 %v6128_v58, %s3688_s19  ;;  %v6182_v15 = vmax.f32 %v2968_v23, %v2984_v26 }
 0x6db   : > { %3023 = vrot.lane.b32.xlu2 %v6182_v15, %s3687_s16 }
 0x6de   : > { %3047 = vrot.lane.b32.xlu1 %v6182_v15, %s3688_s19 }
 0x6e1   : > { %3039 = vrot.lane.b32.xlu0 %v6144_v22, %s3688_s19 }
 0x6e3   : > { %3037 = vrot.lane.b32.xlu2 %v6155_v6, %s3688_s19 }
 0x6e6   : > { %3061 = vrot.lane.b32.xlu1 %v6155_v6, %s3689_s20 }
 0x6e9   : > { %3045 = vrot.lane.b32.xlu0 %v6151_v19, %s3688_s19 }
 0x6eb   : > { %3043 = vrot.lane.b32.xlu2 %v6168_v12, %s3688_s19 }
 0x6ee   : > { %3067 = vrot.lane.b32.xlu1 %v6168_v12, %s3689_s20 }
 0x6f1   : > { %3059 = vrot.lane.b32.xlu0 %v6160_v29, %s3689_s20 }
 0x6f3   : > { %3057 = vrot.lane.b32.xlu2 %v6128_v58, %s3689_s20 }
 0x6f6   : > { %3081 = vrot.lane.b32.xlu1 %v6128_v58, %s3690_s21 }
 0x6f9   : > { %3065 = vrot.lane.b32.xlu0 %v6173_v36, %s3689_s20 }
 0x6fb   : > { %3063 = vrot.lane.b32.xlu2 %v6144_v22, %s3689_s20 }
 0x6fe   : > { %3087 = vrot.lane.b32.xlu1 %v6144_v22, %s3690_s21 }
 0x701   : > { %3071 = vrot.lane.b32.xlu0 %v6182_v15, %s3689_s20 }
 0x703   : > { %3069 = vrot.lane.b32.xlu2 %v6151_v19, %s3689_s20 }
 0x706   : > { %3107 = vrot.lane.b32.xlu1 %v6160_v29, %s3691_s22 }
 0x709   : > { %3085 = vrot.lane.b32.xlu0 %v6155_v6, %s3690_s21 }
 0x70b   : > { %3083 = vrot.lane.b32.xlu2 %v6160_v29, %s3690_s21 }
 0x70e   : > { %3111 = vrot.lane.b32.xlu1 %v6144_v22, %s3691_s22 }
 0x711   : > { %3105 = vrot.lane.b32.xlu0 %v6128_v58, %s3691_s22 }
 0x713   : > { %3089 = vrot.lane.b32.xlu2 %v6173_v36, %s3690_s21 }
 0x716   : > { %3093 = vrot.lane.b32.xlu1 %v6151_v19, %s3690_s21 }
 0x719   : > { %3109 = vrot.lane.b32.xlu0 %v6155_v6, %s3691_s22 }
 0x71b   : > { %3091 = vrot.lane.b32.xlu2 %v6168_v12, %s3690_s21 }
 0x71e   : > { %3115 = vrot.lane.b32.xlu1 %v6168_v12, %s3691_s22 }
 0x721   : > { %3131 = vrot.lane.b32.xlu0 %v6160_v29, %s3692_s23 }
 0x723   : > { %3129 = vrot.lane.b32.xlu2 %v6128_v58, %s3692_s23 }
 0x725   : > { %v3012_v46 = vpop.permute.xlu2 %3011 }
 0x726   : > { %3117 = vrot.lane.b32.xlu1 %v6151_v19, %s3691_s22  ;;  %v3154_v14 = vsel %vm410_vm0, %v6160_v29, %v3012_v46 }
 0x728   : > { %v3010_v54 = vpop.permute.xlu1 %3009 }
 0x729   : > { %3113 = vrot.lane.b32.xlu0 %v6173_v36, %s3691_s22  ;;  %v3153_v40 = vsel %vm410_vm0, %v6128_v58, %v3010_v54 }
 0x72b   : > { %3095 = vrot.lane.b32.xlu2 %v6182_v15, %s3690_s21 }
 0x72d   : > { %v3018_v10 = vpop.permute.xlu2 %3017 }
 0x72e   : > { %3139 = vrot.lane.b32.xlu1 %v6168_v12, %s3692_s23  ;;  %v3157_v59 = vsel %vm410_vm0, %v6173_v36, %v3018_v10 }
 0x730   : > { %v3016_v11 = vpop.permute.xlu1 %3015 }
 0x731   : > { %3135 = vrot.lane.b32.xlu0 %v6144_v22, %s3692_s23  ;;  %v3156_v28 = vsel %vm410_vm0, %v6144_v22, %v3016_v11 }
 0x733   : > { %3133 = vrot.lane.b32.xlu2 %v6155_v6, %s3692_s23 }
 0x735   : > { %v3024_v52 = vpop.permute.xlu2 %3023 }
 0x736   : > { %v3160_v55 = vsel %vm410_vm0, %v6182_v15, %v3024_v52 }
 0x738   : > { %v3022_v5 = vpop.permute.xlu1 %3021 }
 0x739   : > { %3137 = vrot.lane.b32.xlu0 %v6173_v36, %s3692_s23  ;;  %v3159_v58 = vsel %vm410_vm0, %v6151_v19, %v3022_v5 }
 0x73b   : > { %v3014_v17 = vpop.permute.xlu0 %3013  ;;  %3119 = vrot.lane.b32.xlu2 %v6182_v15, %s3691_s22 }
 0x73c   : > { %v3155_v32 = vsel %vm410_vm0, %v6155_v6, %v3014_v17 }
 0x73d   : > { %v3038_v30 = vpop.permute.xlu2 %3037 }
 0x73e   : > { %v6259_v8 = vsel %vm419_vm1, %v3155_v32, %v3038_v30 }
 0x740   : > { %v3036_v44 = vpop.permute.xlu1 %3035 }
 0x741   : > { %3143 = vrot.lane.b32.xlu0 %v6182_v15, %s3692_s23  ;;  %v3162_v27 = vsel %vm419_vm1, %v3154_v14, %v3036_v44 }
 0x743   : > { %v3020_v45 = vpop.permute.xlu0 %3019  ;;  %3141 = vrot.lane.b32.xlu2 %v6151_v19, %s3692_s23 }
 0x744   : > { %v3158_v51 = vsel %vm410_vm0, %v6168_v12, %v3020_v45 }
 0x745   : > { %v3044_v16 = vpop.permute.xlu2 %3043 }
 0x746   : > { %v6271_v41 = vsel %vm419_vm1, %v3158_v51, %v3044_v16 }
 0x748   : > { %v3042_v38 = vpop.permute.xlu1 %3041 }
 0x749   : > { %v6276_v9 = vsel %vm419_vm1, %v3157_v59, %v3042_v38 }
 0x74b   : > { %v3034_v49 = vpop.permute.xlu0 %3033 }
 0x74c   : > { %v3161_v48 = vsel %vm419_vm1, %v3153_v40, %v3034_v49 }
 0x74d   : > { %v3058_v4 = vpop.permute.xlu2 %3057 }
 0x74e   : > { %v3169_v62 = vsel %vm428_vm2, %v3161_v48, %v3058_v4 }
 0x750   : > { %v3048_v34 = vpop.permute.xlu1 %3047 }
 0x751   : > { %v6284_v42 = vsel %vm419_vm1, %v3160_v55, %v3048_v34 }
 0x753   : > { %v3040_v37 = vpop.permute.xlu0 %3039 }
 0x754   : > { %v3164_v7 = vsel %vm419_vm1, %v3156_v28, %v3040_v37 }
 0x755   : > { %v3064_v43 = vpop.permute.xlu2 %3063 }
 0x756   : > { %v3172_v28 = vsel %vm428_vm2, %v3164_v7, %v3064_v43 }
 0x758   : > { %v3062_v18 = vpop.permute.xlu1 %3061 }
 0x759   : > { %v3171_v16 = vsel %vm428_vm2, %v6259_v8, %v3062_v18 }
 0x75b   : > { %v3046_v35 = vpop.permute.xlu0 %3045 }
 0x75c   : > { %v6292_v56 = vsel %vm419_vm1, %v3159_v58, %v3046_v35 }
 0x75d   : > { %v6294_v20 = vpop.permute.xlu2 %3069 }
 0x760   : > { %v3068_v50 = vpop.permute.xlu1 %3067 }
 0x763   : > { %v3060_v0 = vpop.permute.xlu0 %3059 }
 0x764   : > { %v3170_v29 = vsel %vm428_vm2, %v3162_v27, %v3060_v0  ;;  %v3174_v0 = vsel %vm428_vm2, %v6271_v41, %v3068_v50 }
 0x765   : > { %v3084_v39 = vpop.permute.xlu2 %3083 }
 0x766   : > { %v3178_v3 = vsel %vm437_vm3, %v3170_v29, %v3084_v39 }
 0x768   : > { %v3082_v31 = vpop.permute.xlu1 %3081 }
 0x769   : > { %v3177_v33 = vsel %vm437_vm3, %v3169_v62, %v3082_v31 }
 0x76b   : > { %v6296_v63 = vpop.permute.xlu0 %3065 }
 0x76c   : > { %v3173_v41 = vsel %vm428_vm2, %v6276_v9, %v6296_v63 }
 0x76d   : > { %v6298_v21 = vpop.permute.xlu2 %3089 }
 0x770   : > { %v3088_v13 = vpop.permute.xlu1 %3087 }
 0x771   : > { %v3180_v8 = vsel %vm437_vm3, %v3172_v28, %v3088_v13 }
 0x773   : > { %v6300_v22 = vpop.permute.xlu0 %3071 }
 0x775   : > { %v3092_v2 = vpop.permute.xlu2 %3091 }
 0x778   : > { %v3108_v57 = vpop.permute.xlu1 %3107 }
 0x779   : > { %v3186_v36 = vsel %vm446_vm4, %v3178_v3, %v3108_v57  ;;  %v3181_v3 = vsel %vm437_vm3, %v3173_v41, %v6298_v21  ;;  %v3176_v21 = vsel %vm428_vm2, %v6284_v42, %v6300_v22 }
 0x77b   : > { %v3086_v61 = vpop.permute.xlu0 %3085 }
 0x77c   : > { %v3179_v59 = vsel %vm437_vm3, %v3171_v16, %v3086_v61  ;;  %v3182_v61 = vsel %vm437_vm3, %v3174_v0, %v3092_v2 }
 0x77d   : > { %v3130_v19 = vpop.permute.xlu2 %3129 }
 0x780   : > { %v3112_v1 = vpop.permute.xlu1 %3111 }
 0x781   : > { %v3188_v39 = vsel %vm446_vm4, %v3180_v8, %v3112_v1 }
 0x783   : > { %v3106_v25 = vpop.permute.xlu0 %3105 }
 0x784   : > { %v3185_v24 = vsel %vm446_vm4, %v3177_v33, %v3106_v25 }
 0x785   : > { %v6308_v53 = vpop.permute.xlu2 %3095  ;;  %v3193_v60 = vsel %vm455_vm5, %v3185_v24, %v3130_v19 }
 0x786   : > { %v3209_v15 = vrot.slane %v3193_v60, 1  ;;  %v3237_v46 = vrot.slane %v3193_v60, 2  ;;  %v3184_v22 = vsel %vm437_vm3, %v3176_v21, %v6308_v53 }
 0x788   : > { %v6302_v47 = vpop.permute.xlu1 %3093 }
 0x78b   : > { %v3110_v6 = vpop.permute.xlu0 %3109 }
 0x78c   : > { %v3187_v49 = vsel %vm446_vm4, %v3179_v59, %v3110_v6 }
 0x78d   : > { %v3134_v14 = vpop.permute.xlu2 %3133 }
 0x78e   : > { %v3195_v18 = vsel %vm455_vm5, %v3187_v49, %v3134_v14 }
 0x78f   : > { %v3212_v13 = vrot.slane %v3195_v18, 1  ;;  %v3240_v25 = vrot.slane %v3195_v18, 2 }
 0x790   : > { %v3116_v12 = vpop.permute.xlu1 %3115 }
 0x791   : > { %v3190_v50 = vsel %vm446_vm4, %v3182_v61, %v3116_v12 }
 0x793   : > { %v3132_v23 = vpop.permute.xlu0 %3131 }
 0x794   : > { %v3194_v26 = vsel %vm455_vm5, %v3186_v36, %v3132_v23 }
 0x795   : > { %v3210_v54 = vrot.slane %v3194_v26, 1  ;;  %v3238_v10 = vrot.slane %v3194_v26, 2  ;;  %v3120_v19 = vpop.permute.xlu2 %3119 }
 0x797   : > { %v3211_v11 = vsel %vm472_vm6, %v3209_v15, %v3210_v54  ;;  %v3230_v52 = vmax.f32 %v3194_v26, %v3210_v54  ;;  %v3239_v5 = vsel %vm501_vm7, %v3237_v46, %v3238_v10  ;;  %v3175_v46 = vsel %vm428_vm2, %v6292_v56, %v6294_v20 }
 0x798   : > { %v3229_v17 = vmax.f32 %v3193_v60, %v3211_v11  ;;  %v6316_v30 = vpop.permute.xlu1 %3117  ;;  %v3183_v56 = vsel %vm437_vm3, %v3175_v46, %v6302_v47  ;;  %v3192_v47 = vsel %vm446_vm4, %v3184_v22, %v3120_v19 }
 0x799   : > { %v3258_v44 = vmax.f32 %v3230_v52, %v3238_v10  ;;  %v3191_v16 = vsel %vm446_vm4, %v3183_v56, %v6316_v30 }
 0x79a   : > { %v3257_v32 = vmax.f32 %v3229_v17, %v3239_v5 }
 0x79b   : > { %v3114_v27 = vpop.permute.xlu0 %3113  ;;  %v3297_v48 = vrot.slane %v3258_v44, 4  ;;  %v3305_v55 = vrot.slane %v3258_v44, 5  ;;  %v3313_v37 = vrot.slane %v3258_v44, 6 }
 0x79c   : > { %v3269_v45 = vrot.slane %v3257_v32, 1  ;;  %v3277_v51 = vrot.slane %v3257_v32, 2  ;;  %v3285_v38 = vrot.slane %v3257_v32, 3  ;;  %v3189_v23 = vsel %vm446_vm4, %v3181_v3, %v3114_v27 }
 0x79e   : > { %v3321_v40 = vsel %vm586_vm8, %v3257_v32, %v3269_v45  ;;  %v3142_v32 = vpop.permute.xlu2 %3141 }
 0x79f   : > { %v3325_v4 = vsel %vm591_vm9, %v3321_v40, %v3277_v51  ;;  %v3199_v40 = vsel %vm455_vm5, %v3191_v16, %v3142_v32 }
 0x7a0   : > { %v3329_v34 = vsel %vm596_vm10, %v3325_v4, %v3285_v38  ;;  %v3140_v7 = vpop.permute.xlu1 %3139 }
 0x7a1   : > { %v3333_v58 = vsel %vm601_vm11, %v3329_v34, %v3297_v48  ;;  %v3198_v1 = vsel %vm455_vm5, %v3190_v50, %v3140_v7 }
 0x7a2   : > { %v3337_v35 = vsel %vm606_vm12, %v3333_v58, %v3305_v55  ;;  %v3216_v60 = vrot.slane %v3198_v1, 1  ;;  %v3244_v54 = vrot.slane %v3198_v1, 2  ;;  %v3246_v58 = vrot.slane %v3199_v40, 2 }
 0x7a3   : > { %v3341_v31 = vsel %vm501_vm7, %v3337_v35, %v3313_v37  ;;  %v3136_v57 = vpop.permute.xlu0 %3135  ;;  %v3218_v37 = vrot.slane %v3199_v40, 1 }
 0x7a4   : > { %3563 = vst.msk [vmem:[%s4239_s26 + $0x30] sm:$0x7f] %vm615_vm13, %v3341_v31  ;;  %v3196_v43 = vsel %vm455_vm5, %v3188_v39, %v3136_v57  ;;  %v3234_v52 = vmax.f32 %v3198_v1, %v3216_v60 }
 0x7a5   : > { %v3213_v6 = vrot.slane %v3196_v43, 1  ;;  %v3241_v62 = vrot.slane %v3196_v43, 2 }
 0x7a6   : > { %v3262_v49 = vmax.f32 %v3234_v52, %v3244_v54 }
 0x7a7   : > { %v3214_v2 = vsel %vm472_vm6, %v3212_v13, %v3213_v6  ;;  %v3232_v33 = vmax.f32 %v3196_v43, %v3213_v6  ;;  %v3242_v29 = vsel %vm501_vm7, %v3240_v25, %v3241_v62 }
 0x7a8   : > { %v3231_v24 = vmax.f32 %v3195_v18, %v3214_v2  ;;  %v3299_v35 = vrot.slane %v3262_v49, 4  ;;  %v3307_v43 = vrot.slane %v3262_v49, 5  ;;  %v3315_v19 = vrot.slane %v3262_v49, 6 }
 0x7a9   : > { %v3260_v26 = vmax.f32 %v3232_v33, %v3241_v62 }
 0x7aa   : > { %v3259_v36 = vmax.f32 %v3231_v24, %v3242_v29 }
 0x7ab   : > { %v3138_v15 = vpop.permute.xlu0 %3137  ;;  %v3298_v14 = vrot.slane %v3260_v26, 4  ;;  %v3306_v20 = vrot.slane %v3260_v26, 5  ;;  %v3314_v59 = vrot.slane %v3260_v26, 6 }
 0x7ac   : > { %v3270_v9 = vrot.slane %v3259_v36, 1  ;;  %v3278_v63 = vrot.slane %v3259_v36, 2  ;;  %v3197_v12 = vsel %vm455_vm5, %v3189_v23, %v3138_v15  ;;  %v3286_v5 = vrot.slane %v3259_v36, 3 }
 0x7ad   : > { %v3215_v10 = vrot.slane %v3197_v12, 1  ;;  %v3243_v11 = vrot.slane %v3197_v12, 2 }
 0x7ae   : > { %v3322_v17 = vsel %vm586_vm8, %v3259_v36, %v3270_v9 }
 0x7af   : > { %v3326_v44 = vsel %vm591_vm9, %v3322_v17, %v3278_v63  ;;  %v3217_v27 = vsel %vm472_vm6, %v3215_v10, %v3216_v60  ;;  %v3245_v45 = vsel %vm501_vm7, %v3243_v11, %v3244_v54 }
 0x7b0   : > { %v3330_v51 = vsel %vm596_vm10, %v3326_v44, %v3286_v5  ;;  %v3233_v42 = vmax.f32 %v3197_v12, %v3217_v27 }
 0x7b1   : > { %v3334_v38 = vsel %vm601_vm11, %v3330_v51, %v3298_v14 }
 0x7b2   : > { %v3338_v48 = vsel %vm606_vm12, %v3334_v38, %v3306_v20  ;;  %v3261_v4 = vmax.f32 %v3233_v42, %v3245_v45 }
 0x7b3   : > { %v3342_v55 = vsel %vm501_vm7, %v3338_v48, %v3314_v59  ;;  %v3144_v34 = vpop.permute.xlu0 %3143 }
 0x7b4   : > { %3564 = vst.msk [vmem:[%s4239_s26 + $0x68] sm:$0x7f] %vm615_vm13, %v3342_v55  ;;  %v3271_v53 = vrot.slane %v3261_v4, 1  ;;  %v3279_v28 = vrot.slane %v3261_v4, 2  ;;  %v3200_v30 = vsel %vm455_vm5, %v3192_v47, %v3144_v34  ;;  %v3287_v0 = vrot.slane %v3261_v4, 3 }
 0x7b5   : > { %v3219_v8 = vrot.slane %v3200_v30, 1  ;;  %v3247_v18 = vrot.slane %v3200_v30, 2 }
 0x7b6   : > { %v3323_v39 = vsel %vm586_vm8, %v3261_v4, %v3271_v53 }
 0x7b7   : > { %v3327_v31 = vsel %vm591_vm9, %v3323_v39, %v3279_v28  ;;  %v3220_v57 = vsel %vm472_vm6, %v3218_v37, %v3219_v8  ;;  %v3236_v61 = vmax.f32 %v3200_v30, %v3219_v8  ;;  %v3248_v7 = vsel %vm501_vm7, %v3246_v58, %v3247_v18 }
 0x7b8   : > { %v3331_v13 = vsel %vm596_vm10, %v3327_v31, %v3287_v0  ;;  %v3235_v25 = vmax.f32 %v3199_v40, %v3220_v57 }
 0x7b9   : > { %v3335_v6 = vsel %vm601_vm11, %v3331_v13, %v3299_v35  ;;  %v3264_v1 = vmax.f32 %v3236_v61, %v3247_v18 }
 0x7ba   : > { %v3339_v62 = vsel %vm606_vm12, %v3335_v6, %v3307_v43  ;;  %v3263_v41 = vmax.f32 %v3235_v25, %v3248_v7 }
 0x7bb   : > { %v3343_v50 = vsel %vm501_vm7, %v3339_v62, %v3315_v19  ;;  %v3300_v3 = vrot.slane %v3264_v1, 4  ;;  %v3308_v36 = vrot.slane %v3264_v1, 5  ;;  %v3316_v26 = vrot.slane %v3264_v1, 6 }
 0x7bc   : > { %3565 = vst.msk [vmem:[%s4239_s26 + $0xa0] sm:$0x7f] %vm615_vm13, %v3343_v50  ;;  %v3272_v2 = vrot.slane %v3263_v41, 1  ;;  %v3280_v33 = vrot.slane %v3263_v41, 2  ;;  %v3288_v29 = vrot.slane %v3263_v41, 3 }
 0x7be   : > { %v3324_v24 = vsel %vm586_vm8, %v3263_v41, %v3272_v2 }
 0x7bf   : > { %v3328_v60 = vsel %vm591_vm9, %v3324_v24, %v3280_v33 }
 0x7c0   : > { %v3332_v23 = vsel %vm596_vm10, %v3328_v60, %v3288_v29 }
 0x7c1   : > { %v3336_v15 = vsel %vm601_vm11, %v3332_v23, %v3300_v3 }
 0x7c2   : > { %v3340_v9 = vsel %vm606_vm12, %v3336_v15, %v3308_v36 }
 0x7c3   : > { %v3344_v63 = vsel %vm501_vm7, %v3340_v9, %v3316_v26 }
 0x7c4   : > { %3566 = vst.msk [vmem:[%s4239_s26 + $0xd8] sm:$0x7f] %vm615_vm13, %v3344_v63 }
 0x7c5 PF: > { %p11_p7 = scmp.ge.s32.totalorder %s3723_s11, 4   ;;  %s6512_s6 = smov %s3675_s7 }
 0x7c6   : > { %s6513_s7 = smov %s3679_s8  ;;  %s6514_s8 = smov %s3733_s14 }
 0x7c7   : > { %s6515_s9 = smov %s3723_s11  ;;  %13 = sbr.rel (!%p11_p7) target bundleno = 3 (0x3), region = 84 }
 0x7cc   :  { %3374 = vsyncpa [#allocation3], 1 }
 0x7cd   :  { %3376 = vsyncpa [#allocation3 + $0x1], 1 }

</bundles_post_ra>
